<compile_context>
chip_gen: v6e
topology: v6e:2x2x1
jax: 0.10.0
libtpu: 0.0.40
codegen_flags: <defaults>
</compile_context>

<pallas_src>
import jax
import jax.numpy as jnp
import numpy as np
from jax.experimental import pallas as pl
from jax.experimental.pallas import tpu as pltpu


FC1_K = 64 * 7 * 7        # 3136 features feeding fc1
FC1_K_PAD = 3200          # padded to a multiple of 128 so K can be tiled
FC1_TK = 640              # fc1 K-tile (5 pipelined grid steps)
FC2_N_PAD = 128           # lane-dense fc2 output (n_actions padded to 128)


# ----------------------------------------------------------------------------
# Pallas kernel 1: fused GEMM + bias + ReLU (used for the three conv GEMMs)
# ----------------------------------------------------------------------------
def _gemm_bias_relu_kernel(x_ref, w_ref, b_ref, o_ref):
    x = x_ref[...].astype(jnp.bfloat16)                   # bf16 MXU operands
    acc = jnp.dot(x, w_ref[...], preferred_element_type=jnp.float32)
    o_ref[...] = jnp.maximum(acc + b_ref[...], 0.0)       # bias is (1, N) f32


def pallas_gemm_bias_relu(x, w, b, *, tm=None):
    """relu(x @ w + b): x (M, K) f32, w (K, N) bf16, b (1, N) f32 -> (M, N) f32."""
    M, K = x.shape
    Kw, N = w.shape
    assert K == Kw, (K, Kw)
    out_shape = jax.ShapeDtypeStruct((M, N), jnp.float32)

    if tm is not None and M > tm and M % tm == 0 and tm % 8 == 0:
        # Tile over M; "parallel" lets multi-core chips (v7x) split the rows.
        return pl.pallas_call(
            _gemm_bias_relu_kernel,
            out_shape=out_shape,
            grid=(M // tm,),
            in_specs=[pl.BlockSpec((tm, K), lambda i: (i, 0)),
                      pl.BlockSpec((K, N), lambda i: (0, 0)),
                      pl.BlockSpec((1, N), lambda i: (0, 0))],
            out_specs=pl.BlockSpec((tm, N), lambda i: (i, 0)),
            compiler_params=pltpu.CompilerParams(
                dimension_semantics=("parallel",)),
        )(x, w, b)

    # Small GEMM: whole operands live in VMEM, single invocation, no grid.
    vmem = pl.BlockSpec(memory_space=pltpu.MemorySpace.VMEM)
    return pl.pallas_call(
        _gemm_bias_relu_kernel,
        out_shape=out_shape,
        in_specs=[vmem, vmem, vmem],
        out_specs=vmem,
    )(x, w, b)


# ----------------------------------------------------------------------------
# Pallas kernel 2: fused FC head  relu(x @ W1 + b1) @ W2 + b2
#   - grid over fc1's K dimension so the large W1 weight DMA is pipelined
#     against MXU work; fc2 runs on the final grid step from the accumulator.
# ----------------------------------------------------------------------------
def _fc_head_kernel(x_ref, w1_ref, b1_ref, w2_ref, b2_ref, o_ref, acc_ref):
    k = pl.program_id(0)

    @pl.when(k == 0)
    def _():
        acc_ref[...] = jnp.zeros_like(acc_ref)

    acc_ref[...] += jnp.dot(x_ref[...].astype(jnp.bfloat16), w1_ref[...],
                            preferred_element_type=jnp.float32)

    @pl.when(k == pl.num_programs(0) - 1)
    def _():
        h = jnp.maximum(acc_ref[...] + b1_ref[...], 0.0).astype(jnp.bfloat16)
        o_ref[...] = jnp.dot(h, w2_ref[...],
                             preferred_element_type=jnp.float32) + b2_ref[...]


def pallas_fc_head(x, w1, b1, w2, b2, *, tk):
    """x (M, K) f32, w1 (K, H) bf16, b1 (1, H) f32, w2 (H, Np) bf16, b2 (1, Np)."""
    M, K = x.shape
    K1, H = w1.shape
    H2, Np = w2.shape
    assert K == K1 and H == H2 and K % tk == 0, (K, K1, H, H2, tk)
    return pl.pallas_call(
        _fc_head_kernel,
        out_shape=jax.ShapeDtypeStruct((M, Np), jnp.float32),
        grid=(K // tk,),
        in_specs=[pl.BlockSpec((M, tk), lambda k: (0, k)),
                  pl.BlockSpec((tk, H), lambda k: (k, 0)),
                  pl.BlockSpec((1, H), lambda k: (0, 0)),
                  pl.BlockSpec((H, Np), lambda k: (0, 0)),
                  pl.BlockSpec((1, Np), lambda k: (0, 0))],
        out_specs=pl.BlockSpec((M, Np), lambda k: (0, 0)),
        scratch_shapes=[pltpu.VMEM((M, H), jnp.float32)],
        compiler_params=pltpu.CompilerParams(
            dimension_semantics=("arbitrary",)),   # K is a reduction axis
    )(x, w1, b1, w2, b2)


# ----------------------------------------------------------------------------
# im2col glue (plain JAX, NHWC, (kh, kw, cin) column order)
# ----------------------------------------------------------------------------
def im2col_nhwc(x, k, s):
    """x: (B, H, W, C) -> patches (B*Ho*Wo, k*k*C), columns in (kh, kw, cin) order."""
    B, H, W, C = x.shape
    Ho = (H - k) // s + 1
    Wo = (W - k) // s + 1
    cols = []
    for i in range(k):
        for j in range(k):
            cols.append(x[:, i:i + s * (Ho - 1) + 1:s,
                             j:j + s * (Wo - 1) + 1:s, :])      # (B, Ho, Wo, C)
    p = jnp.concatenate(cols, axis=-1)                          # (B, Ho, Wo, k*k*C)
    return p.reshape(B * Ho * Wo, k * k * C), Ho, Wo


def conv_layer(a_nhwc, w2d, b, k, s, *, tm=None):
    B = a_nhwc.shape[0]
    patches, Ho, Wo = im2col_nhwc(a_nhwc, k, s)
    cout = w2d.shape[1]
    y = pallas_gemm_bias_relu(patches, w2d, b, tm=tm)           # (B*Ho*Wo, cout)
    return y.reshape(B, Ho, Wo, cout)                           # stays NHWC


# ----------------------------------------------------------------------------
# Parameter init (PyTorch-default-style uniform, f32) + one-time GEMM packing
# ----------------------------------------------------------------------------
def _init_conv(key, cout, cin, k):
    fan_in = cin * k * k
    bound = 1.0 / np.sqrt(fan_in)
    wk, bk = jax.random.split(key)
    w = jax.random.uniform(wk, (cout, cin, k, k), jnp.float32, -bound, bound)
    b = jax.random.uniform(bk, (cout,), jnp.float32, -bound, bound)
    return w, b


def _init_linear(key, in_f, out_f):
    bound = 1.0 / np.sqrt(in_f)
    wk, bk = jax.random.split(key)
    w = jax.random.uniform(wk, (out_f, in_f), jnp.float32, -bound, bound)
    b = jax.random.uniform(bk, (out_f,), jnp.float32, -bound, bound)
    return w, b


def init_dqn_params(key, n_actions):
    k1, k2, k3, k4, k5 = jax.random.split(key, 5)
    return {
        "conv1": _init_conv(k1, 32, 1, 8),
        "conv2": _init_conv(k2, 64, 32, 4),
        "conv3": _init_conv(k3, 64, 64, 3),
        "fc1": _init_linear(k4, FC1_K, 512),
        "fc2": _init_linear(k5, 512, n_actions),
    }


def pack_dqn_params(params, n_actions):
    """One-time conversion to GEMM-ready layouts (pre-transposed, bf16, padded)."""
    def pack_conv(w, b):
        cout, cin, k, _ = w.shape
        w2d = w.transpose(2, 3, 1, 0).reshape(k * k * cin, cout)   # (kh,kw,cin) x cout
        return w2d.astype(jnp.bfloat16), b.reshape(1, cout)

    packed = {}
    packed["c1w"], packed["c1b"] = pack_conv(*params["conv1"])
    packed["c2w"], packed["c2b"] = pack_conv(*params["conv2"])
    packed["c3w"], packed["c3b"] = pack_conv(*params["conv3"])

    # fc1: torch K-order is (c, h, w) from the NCHW flatten; we flatten NHWC,
    # so permute the K dim to (h, w, c) and pad K to a multiple of 128.
    w1, b1 = params["fc1"]                                   # (512, 3136), (512,)
    out_f = w1.shape[0]
    w1 = w1.reshape(out_f, 64, 7, 7).transpose(2, 3, 1, 0).reshape(FC1_K, out_f)
    w1 = jnp.pad(w1, ((0, FC1_K_PAD - FC1_K), (0, 0)))
    packed["f1w"] = w1.astype(jnp.bfloat16)
    packed["f1b"] = b1.reshape(1, out_f)

    # fc2: transpose to (512, n_actions) and pad N to 128 (lane-dense store).
    w2, b2 = params["fc2"]                                   # (n_actions, 512)
    packed["f2w"] = jnp.pad(w2.T, ((0, 0), (0, FC2_N_PAD - n_actions))).astype(jnp.bfloat16)
    packed["f2b"] = jnp.pad(b2, (0, FC2_N_PAD - n_actions)).reshape(1, FC2_N_PAD)
    return packed


# ----------------------------------------------------------------------------
# DQN forward (Pallas) and pure-XLA reference (same bf16 weights, f32 accum)
# ----------------------------------------------------------------------------
def dqn_forward_pallas(packed, x, n_actions):
    B = x.shape[0]
    a = jnp.transpose(x, (0, 2, 3, 1))                                # NCHW -> NHWC once
    a = conv_layer(a, packed["c1w"], packed["c1b"], 8, 4, tm=400)     # (B, 20, 20, 32)
    a = conv_layer(a, packed["c2w"], packed["c2b"], 4, 2)             # (B,  9,  9, 64)
    a = conv_layer(a, packed["c3w"], packed["c3b"], 3, 1)             # (B,  7,  7, 64)
    feat = a.reshape(B, FC1_K)                                        # (h, w, c) flatten
    feat = jnp.pad(feat, ((0, 0), (0, FC1_K_PAD - FC1_K)))
    out = pallas_fc_head(feat, packed["f1w"], packed["f1b"],
                         packed["f2w"], packed["f2b"], tk=FC1_TK)     # (B, 128)
    return out[:, :n_actions]


def dqn_forward_ref(packed, x, n_actions):
    def conv(a, w2d, b, k, s):
        cout = w2d.shape[1]
        cin = w2d.shape[0] // (k * k)
        w = w2d.reshape(k, k, cin, cout)                              # HWIO, bf16
        y = jax.lax.conv_general_dilated(
            a.astype(jnp.bfloat16), w, (s, s), "VALID",
            dimension_numbers=("NHWC", "HWIO", "NHWC"),
            preferred_element_type=jnp.float32)
        return jax.nn.relu(y + b[:, None, None, :])

    B = x.shape[0]
    a = jnp.transpose(x, (0, 2, 3, 1))
    a = conv(a, packed["c1w"], packed["c1b"], 8, 4)
    a = conv(a, packed["c2w"], packed["c2b"], 4, 2)
    a = conv(a, packed["c3w"], packed["c3b"], 3, 1)
    feat = a.reshape(B, FC1_K)
    feat = jnp.pad(feat, ((0, 0), (0, FC1_K_PAD - FC1_K)))
    h = jax.nn.relu(jnp.dot(feat.astype(jnp.bfloat16), packed["f1w"],
                            preferred_element_type=jnp.float32) + packed["f1b"])
    y = jnp.dot(h.astype(jnp.bfloat16), packed["f2w"],
                preferred_element_type=jnp.float32) + packed["f2b"]
    return y[:, :n_actions]


if __name__ == "__main__":
    n_actions = 8          # stand-in for vzd.DoomGame().get_available_buttons_size()
    batch = 2

    key = jax.random.PRNGKey(0)
    pkey, xkey = jax.random.split(key)
    params = init_dqn_params(pkey, n_actions)
    packed = pack_dqn_params(params, n_actions)     # one-time, outside the forward

    # fc1 expects 64*7*7 features, which pins the spatial input to 84x84 (NCHW).
    x = jax.random.uniform(xkey, (batch, 1, 84, 84), jnp.float32)

    fwd = jax.jit(dqn_forward_pallas, static_argnums=2)
    out = jax.block_until_ready(fwd(packed, x, n_actions))
    assert out.shape == (batch, n_actions), out.shape

    ref = jax.block_until_ready(
        jax.jit(dqn_forward_ref, static_argnums=2)(packed, x, n_actions))
    np.testing.assert_allclose(np.asarray(out), np.asarray(ref), rtol=5e-3, atol=5e-3)

    print("KERNEL_OK")
</pallas_src>

<mosaic_0001>
module attributes {stable_mosaic.version = 11 : i64} {
  func.func @_gemm_bias_relu_kernel(%arg0: i32, %arg1: memref<400x64xf32, #tpu.memory_space<vmem>>, %arg2: memref<64x32xbf16, #tpu.memory_space<vmem>>, %arg3: memref<1x32xf32, #tpu.memory_space<vmem>>, %arg4: memref<400x32xf32, #tpu.memory_space<vmem>>) attributes {dimension_semantics = [#tpu.dimension_semantics<parallel>], iteration_bounds = array<i64: 2>, scalar_prefetch = 0 : i64, scratch_operands = 0 : i64, tpu.core_type = #tpu.core_type<tc>, window_params = [{transform_indices = @transform_0, window_bounds = array<i64: 400, 64>}, {pipeline_mode = #tpu.pipeline_mode<synchronous>, transform_indices = @transform_1, window_bounds = array<i64: 64, 32>}, {pipeline_mode = #tpu.pipeline_mode<synchronous>, transform_indices = @transform_2, window_bounds = array<i64: 1, 32>}, {transform_indices = @transform_3, window_bounds = array<i64: 400, 32>}]} {
    %c0 = arith.constant 0 : index
    %c0_0 = arith.constant 0 : index
    %0 = vector.load %arg1[%c0, %c0_0] : memref<400x64xf32, #tpu.memory_space<vmem>>, vector<400x64xf32>
    %1 = arith.truncf %0 : vector<400x64xf32> to vector<400x64xbf16>
    %c0_1 = arith.constant 0 : index
    %c0_2 = arith.constant 0 : index
    %2 = vector.load %arg2[%c0_1, %c0_2] : memref<64x32xbf16, #tpu.memory_space<vmem>>, vector<64x32xbf16>
    %cst = arith.constant dense<0.000000e+00> : vector<400x32xf32>
    %3 = tpu.matmul %1, %2, %cst {dimension_numbers = #tpu.dot_dimension_numbers<[1], [0], [0], [1], [0, 0, 1, 1], [], []>} : vector<400x64xbf16>, vector<64x32xbf16>, vector<400x32xf32> -> vector<400x32xf32>
    %c0_3 = arith.constant 0 : index
    %c0_4 = arith.constant 0 : index
    %4 = vector.load %arg3[%c0_3, %c0_4] : memref<1x32xf32, #tpu.memory_space<vmem>>, vector<1x32xf32>
    %5 = vector.broadcast %4 : vector<1x32xf32> to vector<400x32xf32>
    %6 = arith.addf %3, %5 : vector<400x32xf32>
    %cst_5 = arith.constant 0.000000e+00 : f32
    %7 = vector.broadcast %cst_5 : f32 to vector<400x32xf32>
    %8 = arith.maximumf %6, %7 : vector<400x32xf32>
    %c0_6 = arith.constant 0 : index
    %c0_7 = arith.constant 0 : index
    %9 = vector.load %arg4[%c0_6, %c0_7] : memref<400x32xf32, #tpu.memory_space<vmem>>, vector<400x32xf32>
    tpu.vector_store %arg4[%c0_6, %c0_7], %8 {strides = array<i32>} : memref<400x32xf32, #tpu.memory_space<vmem>>, vector<400x32xf32>,
    return
  }
  func.func @transform_0(%arg0: i32) -> (i32, i32) {
    %c0_i32 = arith.constant 0 : i32
    %c0_i32_0 = arith.constant 0 : i32
    return %arg0, %c0_i32 : i32, i32
  }
  func.func @transform_1(%arg0: i32) -> (i32, i32) {
    %c0_i32 = arith.constant 0 : i32
    %c0_i32_0 = arith.constant 0 : i32
    %c0_i32_1 = arith.constant 0 : i32
    return %c0_i32, %c0_i32_0 : i32, i32
  }
  func.func @transform_2(%arg0: i32) -> (i32, i32) {
    %c0_i32 = arith.constant 0 : i32
    %c0_i32_0 = arith.constant 0 : i32
    %c0_i32_1 = arith.constant 0 : i32
    return %c0_i32, %c0_i32_0 : i32, i32
  }
  func.func @transform_3(%arg0: i32) -> (i32, i32) {
    %c0_i32 = arith.constant 0 : i32
    %c0_i32_0 = arith.constant 0 : i32
    return %arg0, %c0_i32 : i32, i32
  }
}

module attributes {stable_mosaic.version = 11 : i64} {
  func.func @_gemm_bias_relu_kernel(%arg0: memref<162x512xf32, #tpu.memory_space<vmem>>, %arg1: memref<512x64xbf16, #tpu.memory_space<vmem>>, %arg2: memref<1x64xf32, #tpu.memory_space<vmem>>, %arg3: memref<162x64xf32, #tpu.memory_space<vmem>>) attributes {dimension_semantics = [], scalar_prefetch = 0 : i64, scratch_operands = 0 : i64, tpu.core_type = #tpu.core_type<tc>} {
    %c0 = arith.constant 0 : index
    %c0_0 = arith.constant 0 : index
    %0 = vector.load %arg0[%c0, %c0_0] : memref<162x512xf32, #tpu.memory_space<vmem>>, vector<162x512xf32>
    %1 = arith.truncf %0 : vector<162x512xf32> to vector<162x512xbf16>
    %c0_1 = arith.constant 0 : index
    %c0_2 = arith.constant 0 : index
    %2 = vector.load %arg1[%c0_1, %c0_2] : memref<512x64xbf16, #tpu.memory_space<vmem>>, vector<512x64xbf16>
    %cst = arith.constant dense<0.000000e+00> : vector<162x64xf32>
    %3 = tpu.matmul %1, %2, %cst {dimension_numbers = #tpu.dot_dimension_numbers<[1], [0], [0], [1], [0, 0, 1, 1], [], []>} : vector<162x512xbf16>, vector<512x64xbf16>, vector<162x64xf32> -> vector<162x64xf32>
    %c0_3 = arith.constant 0 : index
    %c0_4 = arith.constant 0 : index
    %4 = vector.load %arg2[%c0_3, %c0_4] : memref<1x64xf32, #tpu.memory_space<vmem>>, vector<1x64xf32>
    %5 = vector.broadcast %4 : vector<1x64xf32> to vector<162x64xf32>
    %6 = arith.addf %3, %5 : vector<162x64xf32>
    %cst_5 = arith.constant 0.000000e+00 : f32
    %7 = vector.broadcast %cst_5 : f32 to vector<162x64xf32>
    %8 = arith.maximumf %6, %7 : vector<162x64xf32>
    %c0_6 = arith.constant 0 : index
    %c0_7 = arith.constant 0 : index
    %9 = vector.load %arg3[%c0_6, %c0_7] : memref<162x64xf32, #tpu.memory_space<vmem>>, vector<162x64xf32>
    tpu.vector_store %arg3[%c0_6, %c0_7], %8 {strides = array<i32>} : memref<162x64xf32, #tpu.memory_space<vmem>>, vector<162x64xf32>,
    return
  }
}

module attributes {stable_mosaic.version = 11 : i64} {
  func.func @_gemm_bias_relu_kernel(%arg0: memref<98x576xf32, #tpu.memory_space<vmem>>, %arg1: memref<576x64xbf16, #tpu.memory_space<vmem>>, %arg2: memref<1x64xf32, #tpu.memory_space<vmem>>, %arg3: memref<98x64xf32, #tpu.memory_space<vmem>>) attributes {dimension_semantics = [], scalar_prefetch = 0 : i64, scratch_operands = 0 : i64, tpu.core_type = #tpu.core_type<tc>} {
    %c0 = arith.constant 0 : index
    %c0_0 = arith.constant 0 : index
    %0 = vector.load %arg0[%c0, %c0_0] : memref<98x576xf32, #tpu.memory_space<vmem>>, vector<98x576xf32>
    %1 = arith.truncf %0 : vector<98x576xf32> to vector<98x576xbf16>
    %c0_1 = arith.constant 0 : index
    %c0_2 = arith.constant 0 : index
    %2 = vector.load %arg1[%c0_1, %c0_2] : memref<576x64xbf16, #tpu.memory_space<vmem>>, vector<576x64xbf16>
    %cst = arith.constant dense<0.000000e+00> : vector<98x64xf32>
    %3 = tpu.matmul %1, %2, %cst {dimension_numbers = #tpu.dot_dimension_numbers<[1], [0], [0], [1], [0, 0, 1, 1], [], []>} : vector<98x576xbf16>, vector<576x64xbf16>, vector<98x64xf32> -> vector<98x64xf32>
    %c0_3 = arith.constant 0 : index
    %c0_4 = arith.constant 0 : index
    %4 = vector.load %arg2[%c0_3, %c0_4] : memref<1x64xf32, #tpu.memory_space<vmem>>, vector<1x64xf32>
    %5 = vector.broadcast %4 : vector<1x64xf32> to vector<98x64xf32>
    %6 = arith.addf %3, %5 : vector<98x64xf32>
    %cst_5 = arith.constant 0.000000e+00 : f32
    %7 = vector.broadcast %cst_5 : f32 to vector<98x64xf32>
    %8 = arith.maximumf %6, %7 : vector<98x64xf32>
    %c0_6 = arith.constant 0 : index
    %c0_7 = arith.constant 0 : index
    %9 = vector.load %arg3[%c0_6, %c0_7] : memref<98x64xf32, #tpu.memory_space<vmem>>, vector<98x64xf32>
    tpu.vector_store %arg3[%c0_6, %c0_7], %8 {strides = array<i32>} : memref<98x64xf32, #tpu.memory_space<vmem>>, vector<98x64xf32>,
    return
  }
}

module attributes {stable_mosaic.version = 11 : i64} {
  func.func @_fc_head_kernel(%arg0: i32, %arg1: memref<2x640xf32, #tpu.memory_space<vmem>>, %arg2: memref<640x512xbf16, #tpu.memory_space<vmem>>, %arg3: memref<1x512xf32, #tpu.memory_space<vmem>>, %arg4: memref<512x128xbf16, #tpu.memory_space<vmem>>, %arg5: memref<1x128xf32, #tpu.memory_space<vmem>>, %arg6: memref<2x128xf32, #tpu.memory_space<vmem>>, %arg7: memref<2x512xf32, #tpu.memory_space<vmem>>) attributes {dimension_semantics = [#tpu.dimension_semantics<arbitrary>], iteration_bounds = array<i64: 5>, scalar_prefetch = 0 : i64, scratch_operands = 1 : i64, tpu.core_type = #tpu.core_type<tc>, window_params = [{transform_indices = @transform_0, window_bounds = array<i64: 2, 640>}, {transform_indices = @transform_1, window_bounds = array<i64: 640, 512>}, {pipeline_mode = #tpu.pipeline_mode<synchronous>, transform_indices = @transform_2, window_bounds = array<i64: 1, 512>}, {pipeline_mode = #tpu.pipeline_mode<synchronous>, transform_indices = @transform_3, window_bounds = array<i64: 512, 128>}, {pipeline_mode = #tpu.pipeline_mode<synchronous>, transform_indices = @transform_4, window_bounds = array<i64: 1, 128>}, {pipeline_mode = #tpu.pipeline_mode<synchronous>, transform_indices = @transform_5, window_bounds = array<i64: 2, 128>}]} {
    %c0_i32 = arith.constant 0 : i32
    %0 = arith.cmpi eq, %arg0, %c0_i32 : i32
    %1 = arith.extui %0 : i1 to i32
    %c0_i32_0 = arith.constant 0 : i32
    %2 = arith.cmpi ne, %1, %c0_i32_0 : i32
    scf.if %2 {
      %cst_9 = arith.constant 0.000000e+00 : f32
      %13 = vector.broadcast %cst_9 : f32 to vector<2x512xf32>
      %c0_10 = arith.constant 0 : index
      %c0_11 = arith.constant 0 : index
      %14 = vector.load %arg7[%c0_10, %c0_11] : memref<2x512xf32, #tpu.memory_space<vmem>>, vector<2x512xf32>
      tpu.vector_store %arg7[%c0_10, %c0_11], %13 {strides = array<i32>} : memref<2x512xf32, #tpu.memory_space<vmem>>, vector<2x512xf32>,
    } else {
    }
    %c0 = arith.constant 0 : index
    %c0_1 = arith.constant 0 : index
    %3 = vector.load %arg7[%c0, %c0_1] : memref<2x512xf32, #tpu.memory_space<vmem>>, vector<2x512xf32>
    %c0_2 = arith.constant 0 : index
    %c0_3 = arith.constant 0 : index
    %4 = vector.load %arg1[%c0_2, %c0_3] : memref<2x640xf32, #tpu.memory_space<vmem>>, vector<2x640xf32>
    %5 = arith.truncf %4 : vector<2x640xf32> to vector<2x640xbf16>
    %c0_4 = arith.constant 0 : index
    %c0_5 = arith.constant 0 : index
    %6 = vector.load %arg2[%c0_4, %c0_5] : memref<640x512xbf16, #tpu.memory_space<vmem>>, vector<640x512xbf16>
    %cst = arith.constant dense<0.000000e+00> : vector<2x512xf32>
    %7 = tpu.matmul %5, %6, %cst {dimension_numbers = #tpu.dot_dimension_numbers<[1], [0], [0], [1], [0, 0, 1, 1], [], []>} : vector<2x640xbf16>, vector<640x512xbf16>, vector<2x512xf32> -> vector<2x512xf32>
    %8 = arith.addf %3, %7 : vector<2x512xf32>
    %c0_6 = arith.constant 0 : index
    %c0_7 = arith.constant 0 : index
    %9 = vector.load %arg7[%c0_6, %c0_7] : memref<2x512xf32, #tpu.memory_space<vmem>>, vector<2x512xf32>
    tpu.vector_store %arg7[%c0_6, %c0_7], %8 {strides = array<i32>} : memref<2x512xf32, #tpu.memory_space<vmem>>, vector<2x512xf32>,
    %c4_i32 = arith.constant 4 : i32
    %10 = arith.cmpi eq, %arg0, %c4_i32 : i32
    %11 = arith.extui %10 : i1 to i32
    %c0_i32_8 = arith.constant 0 : i32
    %12 = arith.cmpi ne, %11, %c0_i32_8 : i32
    scf.if %12 {
      %c0_9 = arith.constant 0 : index
      %c0_10 = arith.constant 0 : index
      %13 = vector.load %arg7[%c0_9, %c0_10] : memref<2x512xf32, #tpu.memory_space<vmem>>, vector<2x512xf32>
      %c0_11 = arith.constant 0 : index
      %c0_12 = arith.constant 0 : index
      %14 = vector.load %arg3[%c0_11, %c0_12] : memref<1x512xf32, #tpu.memory_space<vmem>>, vector<1x512xf32>
      %15 = vector.broadcast %14 : vector<1x512xf32> to vector<2x512xf32>
      %16 = arith.addf %13, %15 : vector<2x512xf32>
      %cst_13 = arith.constant 0.000000e+00 : f32
      %17 = vector.broadcast %cst_13 : f32 to vector<2x512xf32>
      %18 = arith.maximumf %16, %17 : vector<2x512xf32>
      %19 = arith.truncf %18 : vector<2x512xf32> to vector<2x512xbf16>
      %c0_14 = arith.constant 0 : index
      %c0_15 = arith.constant 0 : index
      %20 = vector.load %arg4[%c0_14, %c0_15] : memref<512x128xbf16, #tpu.memory_space<vmem>>, vector<512x128xbf16>
      %cst_16 = arith.constant dense<0.000000e+00> : vector<2x128xf32>
      %21 = tpu.matmul %19, %20, %cst_16 {dimension_numbers = #tpu.dot_dimension_numbers<[1], [0], [0], [1], [0, 0, 1, 1], [], []>} : vector<2x512xbf16>, vector<512x128xbf16>, vector<2x128xf32> -> vector<2x128xf32>
      %c0_17 = arith.constant 0 : index
      %c0_18 = arith.constant 0 : index
      %22 = vector.load %arg5[%c0_17, %c0_18] : memref<1x128xf32, #tpu.memory_space<vmem>>, vector<1x128xf32>
      %23 = vector.broadcast %22 : vector<1x128xf32> to vector<2x128xf32>
      %24 = arith.addf %21, %23 : vector<2x128xf32>
      %c0_19 = arith.constant 0 : index
      %c0_20 = arith.constant 0 : index
      %25 = vector.load %arg6[%c0_19, %c0_20] : memref<2x128xf32, #tpu.memory_space<vmem>>, vector<2x128xf32>
      tpu.vector_store %arg6[%c0_19, %c0_20], %24 {strides = array<i32>} : memref<2x128xf32, #tpu.memory_space<vmem>>, vector<2x128xf32>,
    } else {
    }
    return
  }
  func.func @transform_0(%arg0: i32) -> (i32, i32) {
    %c0_i32 = arith.constant 0 : i32
    %c0_i32_0 = arith.constant 0 : i32
    return %c0_i32, %arg0 : i32, i32
  }
  func.func @transform_1(%arg0: i32) -> (i32, i32) {
    %c0_i32 = arith.constant 0 : i32
    %c0_i32_0 = arith.constant 0 : i32
    return %arg0, %c0_i32 : i32, i32
  }
  func.func @transform_2(%arg0: i32) -> (i32, i32) {
    %c0_i32 = arith.constant 0 : i32
    %c0_i32_0 = arith.constant 0 : i32
    %c0_i32_1 = arith.constant 0 : i32
    return %c0_i32, %c0_i32_0 : i32, i32
  }
  func.func @transform_3(%arg0: i32) -> (i32, i32) {
    %c0_i32 = arith.constant 0 : i32
    %c0_i32_0 = arith.constant 0 : i32
    %c0_i32_1 = arith.constant 0 : i32
    return %c0_i32, %c0_i32_0 : i32, i32
  }
  func.func @transform_4(%arg0: i32) -> (i32, i32) {
    %c0_i32 = arith.constant 0 : i32
    %c0_i32_0 = arith.constant 0 : i32
    %c0_i32_1 = arith.constant 0 : i32
    return %c0_i32, %c0_i32_0 : i32, i32
  }
  func.func @transform_5(%arg0: i32) -> (i32, i32) {
    %c0_i32 = arith.constant 0 : i32
    %c0_i32_0 = arith.constant 0 : i32
    %c0_i32_1 = arith.constant 0 : i32
    return %c0_i32, %c0_i32_0 : i32, i32
  }
}

</mosaic_0001>

<bundles_post_ra>
// kernel: dqn_forward_pallas.4
= control target key start
LH: loop header
LB: loop body
LE: loop exit
PB: predicated region body
PF: predicated region fallthrough
CT: control target
= control target key end

     0   :  { %s983_s12 = smov 0   ;;  %s1311_s0 = inlined_call_operand.vmem [shape: f32[800,64], index: 0, kind: input, shape index: {}]   ;;  %s1312_s1 = inlined_call_operand.vmem [shape: bf16[64,32], index: 1, kind: input, shape index: {}]   ;;  %s1313_s2 = inlined_call_operand.vmem [shape: f32[1,32], index: 2, kind: input, shape index: {}]   ;;  %s1314_s3 = inlined_call_operand.vmem [shape: f32[800,32], index: 3, kind: output, shape index: {}]  }
   0x1 LB: > { %s755_s13 = sadd.s32 4294967295, %s959_s12   ;;  %p759_p0 = scmp.ge.s32.totalorder %s959_s12, 1  ;;  %s959_s12 = sphi %s983_s12, %s13_s12  }
   0x2   : > { %p138_p1 = scmp.lt.s32.totalorder %s959_s12, 3 }
   0x4   : > { %p139_p2 = pnand %p759_p0, %p138_p1 }
   0x5   : > { %s162_s18 = smul.u32 (!%p139_p2), 50, %s755_s13 }
   0x6   : > { %142 = sbr.rel (%p139_p2) target bundleno = 326 (0x146), region = 32 }
   0x7   : > { %p163_p3 = scmp.lt.s32.totalorder (!%p139_p2), %s162_s18, 99 }
   0xb   : > { %v949_v0 = vld [vmem:[%s1312_s1 + $0x18] sm:$0xff]   ;;  %v961_v1 = vmov 0.0   ;;  %v950_v2 = vld [vmem:[%s1312_s1 + $0x10] sm:$0xff]   ;;  %vm962_vm0 = vmmov 0   ;;  %v951_v3 = vld [vmem:[%s1312_s1 + $0x8] sm:$0xff]   ;;  %s1316_s18 = smov (!%p163_p3, %s162_s18), 99 }
   0xc   : > { %823 = vmatprep.subr.bf16.mxu0 %v961_v1  ;;  %931 = vmatprep.subr.bf16.mxu1 %v961_v1  ;;  %s760_s21 = sshll.u32 %s1316_s18, 3  ;;  %v952_v4 = vld [vmem:[%s1312_s1] sm:$0xff]   ;;  %vm289_vm1 = vcmask 523264   ;;  %vm648_vm2 = vcmask 261120  }
   0xd   : > { %824 = vmatpush3.bf16.msra.mxu0 %v949_v0  ;;  %935 = vmatpush3.bf16.msra.mxu1 %v949_v0  ;;  %s1021_s26 = scalar_lea.vmem %s1311_s0, %s760_s21  ;;  %s1158_s4 = scalar_lea.vmem %s1314_s3, %s760_s21 }
   0xe   : > { %825 = vmatprep.subr.bf16.mxu0 %v961_v1  ;;  %932 = vmatprep.subr.bf16.mxu1 %v961_v1  ;;  %v175_v5 = vld [vmem:[%s1021_s26] sm:$0xff]  ;;  %v176_v6 = vld [vmem:[%s1021_s26 + $0x8] sm:$0xff]  ;;  %v201_v7 = vld [vmem:[%s1021_s26 + $0xd0] sm:$0xff] }
   0xf   : > { %831 = vmatprep.mubr.msk.bf16.mxu0 %vm962_vm0, %v961_v1  ;;  %883 = vmatprep.mubr.msk.bf16.mxu1 %vm962_vm0, %v961_v1  ;;  %v202_v8 = vld [vmem:[%s1021_s26 + $0xd8] sm:$0xff]  ;;  %v225_v9 = vpack.c.bf16 %v176_v6, %v175_v5  ;;  %v177_v11 = vld [vmem:[%s1021_s26 + $0x10] sm:$0xff]  ;;  %v203_v13 = vld [vmem:[%s1021_s26 + $0xe0] sm:$0xff] }
  0x10   : > { %v238_v10 = vpack.c.bf16 %v202_v8, %v201_v7  ;;  %v178_v12 = vld [vmem:[%s1021_s26 + $0x18] sm:$0xff]  ;;  %v204_v14 = vld [vmem:[%s1021_s26 + $0xe8] sm:$0xff]  ;;  %v179_v17 = vld [vmem:[%s1021_s26 + $0x20] sm:$0xff] }
  0x11   : > { %826 = vmatpush3.bf16.msra.mxu0 %v950_v2  ;;  %936 = vmatpush3.bf16.msra.mxu1 %v950_v2  ;;  %v226_v15 = vpack.c.bf16 %v178_v12, %v177_v11  ;;  %v239_v16 = vpack.c.bf16 %v204_v14, %v203_v13  ;;  %v180_v18 = vld [vmem:[%s1021_s26 + $0x28] sm:$0xff]  ;;  %v205_v19 = vld [vmem:[%s1021_s26 + $0xf0] sm:$0xff]  ;;  %v206_v20 = vld [vmem:[%s1021_s26 + $0xf8] sm:$0xff] }
  0x12   : > { %827 = vmatprep.subr.bf16.mxu0 %v961_v1  ;;  %933 = vmatprep.subr.bf16.mxu1 %v961_v1  ;;  %v227_v21 = vpack.c.bf16 %v180_v18, %v179_v17  ;;  %v240_v22 = vpack.c.bf16 %v206_v20, %v205_v19  ;;  %v181_v23 = vld [vmem:[%s1021_s26 + $0x30] sm:$0xff]  ;;  %v182_v24 = vld [vmem:[%s1021_s26 + $0x38] sm:$0xff]  ;;  %v207_v25 = vld [vmem:[%s1021_s26 + $0x100] sm:$0xff] }
  0x13   : > { %v208_v26 = vld [vmem:[%s1021_s26 + $0x108] sm:$0xff]  ;;  %v228_v27 = vpack.c.bf16 %v182_v24, %v181_v23  ;;  %v183_v29 = vld [vmem:[%s1021_s26 + $0x40] sm:$0xff]  ;;  %v209_v31 = vld [vmem:[%s1021_s26 + $0x110] sm:$0xff] }
  0x14   : > { %v241_v28 = vpack.c.bf16 %v208_v26, %v207_v25  ;;  %v184_v30 = vld [vmem:[%s1021_s26 + $0x48] sm:$0xff]  ;;  %v210_v32 = vld [vmem:[%s1021_s26 + $0x118] sm:$0xff]  ;;  %v185_v35 = vld [vmem:[%s1021_s26 + $0x50] sm:$0xff] }
  0x15   : > { %828 = vmatpush3.bf16.msra.mxu0 %v951_v3  ;;  %937 = vmatpush3.bf16.msra.mxu1 %v951_v3  ;;  %v229_v33 = vpack.c.bf16 %v184_v30, %v183_v29  ;;  %v242_v34 = vpack.c.bf16 %v210_v32, %v209_v31  ;;  %v186_v36 = vld [vmem:[%s1021_s26 + $0x58] sm:$0xff]  ;;  %v211_v37 = vld [vmem:[%s1021_s26 + $0x120] sm:$0xff]  ;;  %v212_v38 = vld [vmem:[%s1021_s26 + $0x128] sm:$0xff] }
  0x16   : > { %829 = vmatprep.subr.bf16.mxu0 %v961_v1  ;;  %934 = vmatprep.subr.bf16.mxu1 %v961_v1  ;;  %v230_v39 = vpack.c.bf16 %v186_v36, %v185_v35  ;;  %v243_v40 = vpack.c.bf16 %v212_v38, %v211_v37  ;;  %v187_v41 = vld [vmem:[%s1021_s26 + $0x60] sm:$0xff]  ;;  %v188_v42 = vld [vmem:[%s1021_s26 + $0x68] sm:$0xff]  ;;  %v213_v43 = vld [vmem:[%s1021_s26 + $0x130] sm:$0xff] }
  0x17   : > { %v214_v44 = vld [vmem:[%s1021_s26 + $0x138] sm:$0xff]  ;;  %v231_v45 = vpack.c.bf16 %v188_v42, %v187_v41  ;;  %v189_v47 = vld [vmem:[%s1021_s26 + $0x70] sm:$0xff]  ;;  %v215_v49 = vld [vmem:[%s1021_s26 + $0x140] sm:$0xff] }
  0x18   : > { %v244_v46 = vpack.c.bf16 %v214_v44, %v213_v43  ;;  %v190_v48 = vld [vmem:[%s1021_s26 + $0x78] sm:$0xff]  ;;  %v216_v50 = vld [vmem:[%s1021_s26 + $0x148] sm:$0xff]  ;;  %v191_v53 = vld [vmem:[%s1021_s26 + $0x80] sm:$0xff] }
  0x19   : > { %830 = vmatpush3.bf16.msra.mxu0 %v952_v4  ;;  %938 = vmatpush3.bf16.msra.mxu1 %v952_v4  ;;  %v232_v51 = vpack.c.bf16 %v190_v48, %v189_v47  ;;  %v245_v52 = vpack.c.bf16 %v216_v50, %v215_v49  ;;  %v192_v54 = vld [vmem:[%s1021_s26 + $0x88] sm:$0xff]  ;;  %v217_v55 = vld [vmem:[%s1021_s26 + $0x150] sm:$0xff]  ;;  %v218_v56 = vld [vmem:[%s1021_s26 + $0x158] sm:$0xff] }
  0x1a   : > { %v233_v57 = vpack.c.bf16 %v192_v54, %v191_v53  ;;  %v246_v58 = vpack.c.bf16 %v218_v56, %v217_v55  ;;  %v193_v59 = vld [vmem:[%s1021_s26 + $0x90] sm:$0xff]  ;;  %v194_v60 = vld [vmem:[%s1021_s26 + $0x98] sm:$0xff]  ;;  %v219_v61 = vld [vmem:[%s1021_s26 + $0x160] sm:$0xff] }
  0x1b   : > { %v220_v62 = vld [vmem:[%s1021_s26 + $0x168] sm:$0xff]  ;;  %v234_v63 = vpack.c.bf16 %v194_v60, %v193_v59  ;;  %v195_v2 = vld [vmem:[%s1021_s26 + $0xa0] sm:$0xff]  ;;  %v221_v4 = vld [vmem:[%s1021_s26 + $0x170] sm:$0xff] }
  0x1c   : > { %832 = vmatmul.mubr.msk.bf16.vlgmr.msra.gmra.mxu0 %vm289_vm1, %v225_v9  ;;  %884 = vmatmul.mubr.msk.bf16.vlgmr.msra.gmra.mxu1 %vm289_vm1, %v238_v10  ;;  %v247_v0 = vpack.c.bf16 %v220_v62, %v219_v61  ;;  %v196_v3 = vld [vmem:[%s1021_s26 + $0xa8] sm:$0xff]  ;;  %v222_v5 = vld [vmem:[%s1021_s26 + $0x178] sm:$0xff]  ;;  %v197_v8 = vld [vmem:[%s1021_s26 + $0xb0] sm:$0xff] }
  0x1d   : > { %835 = vmatprep.mubr.msk.bf16.mxu0 %vm962_vm0, %v961_v1  ;;  %887 = vmatprep.mubr.msk.bf16.mxu1 %vm962_vm0, %v961_v1  ;;  %v235_v6 = vpack.c.bf16 %v196_v3, %v195_v2  ;;  %v248_v7 = vpack.c.bf16 %v222_v5, %v221_v4  ;;  %v198_v9 = vld [vmem:[%s1021_s26 + $0xb8] sm:$0xff]  ;;  %v223_v10 = vld [vmem:[%s1021_s26 + $0x180] sm:$0xff]  ;;  %v224_v11 = vld [vmem:[%s1021_s26 + $0x188] sm:$0xff] }
  0x1e   : > { %v236_v12 = vpack.c.bf16 %v198_v9, %v197_v8  ;;  %v249_v13 = vpack.c.bf16 %v224_v11, %v223_v10  ;;  %v199_v14 = vld [vmem:[%s1021_s26 + $0xc0] sm:$0xff] }
  0x1f   : > { %v1149_v17 = vld [vmem:[%s1313_s2] ss:$0 sm:$0xff] }
  0x24   : > { %836 = vmatmul.mubr.msk.bf16.gmra.mxu0 %vm289_vm1, %v226_v15  ;;  %888 = vmatmul.mubr.msk.bf16.gmra.mxu1 %vm289_vm1, %v239_v16  ;;  %v200_v15 = vld [vmem:[%s1021_s26 + $0xc8] sm:$0xff] }
  0x25   : > { %839 = vmatprep.mubr.msk.bf16.mxu0 %vm962_vm0, %v961_v1  ;;  %891 = vmatprep.mubr.msk.bf16.mxu1 %vm962_vm0, %v961_v1  ;;  %v237_v16 = vpack.c.bf16 %v200_v15, %v199_v14 }
  0x2c   : > { %840 = vmatmul.mubr.msk.bf16.gmra.mxu0 %vm289_vm1, %v227_v21  ;;  %892 = vmatmul.mubr.msk.bf16.gmra.mxu1 %vm289_vm1, %v240_v22 }
  0x2d   : > { %843 = vmatprep.mubr.msk.bf16.mxu0 %vm962_vm0, %v961_v1  ;;  %895 = vmatprep.mubr.msk.bf16.mxu1 %vm962_vm0, %v961_v1 }
  0x34   : > { %844 = vmatmul.mubr.msk.bf16.gmra.mxu0 %vm289_vm1, %v228_v27  ;;  %896 = vmatmul.mubr.msk.bf16.gmra.mxu1 %vm289_vm1, %v241_v28 }
  0x35   : > { %847 = vmatprep.mubr.msk.bf16.mxu0 %vm962_vm0, %v961_v1  ;;  %899 = vmatprep.mubr.msk.bf16.mxu1 %vm962_vm0, %v961_v1 }
  0x3c   : > { %848 = vmatmul.mubr.msk.bf16.gmra.mxu0 %vm289_vm1, %v229_v33  ;;  %900 = vmatmul.mubr.msk.bf16.gmra.mxu1 %vm289_vm1, %v242_v34 }
  0x3d   : > { %851 = vmatprep.mubr.msk.bf16.mxu0 %vm962_vm0, %v961_v1  ;;  %903 = vmatprep.mubr.msk.bf16.mxu1 %vm962_vm0, %v961_v1 }
  0x44   : > { %852 = vmatmul.mubr.msk.bf16.gmra.mxu0 %vm289_vm1, %v230_v39  ;;  %904 = vmatmul.mubr.msk.bf16.gmra.mxu1 %vm289_vm1, %v243_v40 }
  0x45   : > { %855 = vmatprep.mubr.msk.bf16.mxu0 %vm962_vm0, %v961_v1  ;;  %907 = vmatprep.mubr.msk.bf16.mxu1 %vm962_vm0, %v961_v1 }
  0x4c   : > { %856 = vmatmul.mubr.msk.bf16.gmra.mxu0 %vm289_vm1, %v231_v45  ;;  %908 = vmatmul.mubr.msk.bf16.gmra.mxu1 %vm289_vm1, %v244_v46 }
  0x4d   : > { %859 = vmatprep.mubr.msk.bf16.mxu0 %vm962_vm0, %v961_v1  ;;  %911 = vmatprep.mubr.msk.bf16.mxu1 %vm962_vm0, %v961_v1 }
  0x54   : > { %860 = vmatmul.mubr.msk.bf16.gmra.mxu0 %vm289_vm1, %v232_v51  ;;  %912 = vmatmul.mubr.msk.bf16.gmra.mxu1 %vm289_vm1, %v245_v52 }
  0x55   : > { %863 = vmatprep.mubr.msk.bf16.mxu0 %vm962_vm0, %v961_v1  ;;  %915 = vmatprep.mubr.msk.bf16.mxu1 %vm962_vm0, %v961_v1 }
  0x5c   : > { %864 = vmatmul.mubr.msk.bf16.gmra.mxu0 %vm289_vm1, %v233_v57  ;;  %916 = vmatmul.mubr.msk.bf16.gmra.mxu1 %vm289_vm1, %v246_v58 }
  0x5d   : > { %867 = vmatprep.mubr.msk.bf16.mxu0 %vm962_vm0, %v961_v1  ;;  %919 = vmatprep.mubr.msk.bf16.mxu1 %vm962_vm0, %v961_v1 }
  0x64   : > { %868 = vmatmul.mubr.msk.bf16.gmra.mxu0 %vm289_vm1, %v234_v63  ;;  %920 = vmatmul.mubr.msk.bf16.gmra.mxu1 %vm289_vm1, %v247_v0 }
  0x65   : > { %871 = vmatprep.mubr.msk.bf16.mxu0 %vm962_vm0, %v961_v1  ;;  %923 = vmatprep.mubr.msk.bf16.mxu1 %vm962_vm0, %v961_v1 }
  0x6c   : > { %872 = vmatmul.mubr.msk.bf16.gmra.mxu0 %vm289_vm1, %v235_v6  ;;  %924 = vmatmul.mubr.msk.bf16.gmra.mxu1 %vm289_vm1, %v248_v7 }
  0x6d   : > { %875 = vmatprep.mubr.msk.bf16.mxu0 %vm962_vm0, %v961_v1  ;;  %927 = vmatprep.mubr.msk.bf16.mxu1 %vm962_vm0, %v961_v1 }
  0x74   : > { %876 = vmatmul.mubr.msk.bf16.gmra.mxu0 %vm289_vm1, %v236_v12  ;;  %928 = vmatmul.mubr.msk.bf16.gmra.mxu1 %vm289_vm1, %v249_v13 }
  0x75   : > { %879 = vmatprep.mubr.msk.bf16.mxu0 %vm962_vm0, %v961_v1 }
  0x7c   : > { %880 = vmatmul.mubr.msk.bf16.gmra.mxu0 %vm289_vm1, %v237_v16 }
  0xdc   : > { %v399_v18 = vpop.f32.mrf.mxu0  ;;  %v503_v19 = vpop.f32.mrf.mxu1 }
  0xdd   : > { %v400_v20 = vadd.f32 %v1149_v17, %v399_v18  ;;  %v504_v21 = vadd.f32 %v1149_v17, %v503_v19 }
  0xde   : > { %v833_v1 = vpop.f32.mrf.mxu0  ;;  %v885_v22 = vpop.f32.mrf.mxu1 }
  0xdf   : > { %v598_v23 = vmax.f32 %v400_v20, 0.0  ;;  %v624_v24 = vmax.f32 %v504_v21, 0.0 }
  0xe0   : > { %v402_v25 = vpop.f32.mrf.mxu0  ;;  %v506_v26 = vpop.f32.mrf.mxu1 }
  0xe1   : > { %649 = vst.msk [vmem:[%s1158_s4] sm:$0xff] %vm648_vm2, %v598_v23  ;;  %675 = vst.msk [vmem:[%s1158_s4 + $0xd0] sm:$0xff] %vm648_vm2, %v624_v24  ;;  %v403_v27 = vadd.f32 %v1149_v17, %v402_v25  ;;  %v507_v28 = vadd.f32 %v1149_v17, %v506_v26 }
  0xe2   : > { %v834_v29 = vpop.f32.mrf.mxu0  ;;  %v886_v30 = vpop.f32.mrf.mxu1 }
  0xe3   : > { %v599_v31 = vmax.f32 %v403_v27, 0.0  ;;  %v625_v32 = vmax.f32 %v507_v28, 0.0 }
  0xe4   : > { %v407_v33 = vpop.f32.mrf.mxu0  ;;  %v511_v34 = vpop.f32.mrf.mxu1 }
  0xe5   : > { %650 = vst.msk [vmem:[%s1158_s4 + $0x8] sm:$0xff] %vm648_vm2, %v599_v31  ;;  %676 = vst.msk [vmem:[%s1158_s4 + $0xd8] sm:$0xff] %vm648_vm2, %v625_v32  ;;  %v408_v35 = vadd.f32 %v1149_v17, %v407_v33  ;;  %v512_v36 = vadd.f32 %v1149_v17, %v511_v34 }
  0xe6   : > { %v837_v37 = vpop.f32.mrf.mxu0  ;;  %v889_v38 = vpop.f32.mrf.mxu1 }
  0xe7   : > { %v600_v39 = vmax.f32 %v408_v35, 0.0  ;;  %v626_v40 = vmax.f32 %v512_v36, 0.0 }
  0xe8   : > { %v410_v41 = vpop.f32.mrf.mxu0  ;;  %v514_v42 = vpop.f32.mrf.mxu1 }
  0xe9   : > { %651 = vst.msk [vmem:[%s1158_s4 + $0x10] sm:$0xff] %vm648_vm2, %v600_v39  ;;  %677 = vst.msk [vmem:[%s1158_s4 + $0xe0] sm:$0xff] %vm648_vm2, %v626_v40  ;;  %v411_v43 = vadd.f32 %v1149_v17, %v410_v41  ;;  %v515_v44 = vadd.f32 %v1149_v17, %v514_v42 }
  0xea   : > { %v838_v45 = vpop.f32.mrf.mxu0  ;;  %v890_v46 = vpop.f32.mrf.mxu1 }
  0xeb   : > { %v601_v47 = vmax.f32 %v411_v43, 0.0  ;;  %v627_v48 = vmax.f32 %v515_v44, 0.0 }
  0xec   : > { %v415_v49 = vpop.f32.mrf.mxu0  ;;  %v519_v50 = vpop.f32.mrf.mxu1 }
  0xed   : > { %652 = vst.msk [vmem:[%s1158_s4 + $0x18] sm:$0xff] %vm648_vm2, %v601_v47  ;;  %678 = vst.msk [vmem:[%s1158_s4 + $0xe8] sm:$0xff] %vm648_vm2, %v627_v48  ;;  %v416_v51 = vadd.f32 %v1149_v17, %v415_v49  ;;  %v520_v52 = vadd.f32 %v1149_v17, %v519_v50 }
  0xee   : > { %v841_v53 = vpop.f32.mrf.mxu0  ;;  %v893_v54 = vpop.f32.mrf.mxu1 }
  0xef   : > { %v602_v55 = vmax.f32 %v416_v51, 0.0  ;;  %v628_v56 = vmax.f32 %v520_v52, 0.0 }
  0xf0   : > { %v418_v57 = vpop.f32.mrf.mxu0  ;;  %v522_v58 = vpop.f32.mrf.mxu1 }
  0xf1   : > { %653 = vst.msk [vmem:[%s1158_s4 + $0x20] sm:$0xff] %vm648_vm2, %v602_v55  ;;  %679 = vst.msk [vmem:[%s1158_s4 + $0xf0] sm:$0xff] %vm648_vm2, %v628_v56  ;;  %v419_v59 = vadd.f32 %v1149_v17, %v418_v57  ;;  %v523_v60 = vadd.f32 %v1149_v17, %v522_v58 }
  0xf2   : > { %v842_v61 = vpop.f32.mrf.mxu0  ;;  %v894_v62 = vpop.f32.mrf.mxu1 }
  0xf3   : > { %v603_v63 = vmax.f32 %v419_v59, 0.0  ;;  %v629_v0 = vmax.f32 %v523_v60, 0.0 }
  0xf4   : > { %v423_v2 = vpop.f32.mrf.mxu0  ;;  %v527_v3 = vpop.f32.mrf.mxu1 }
  0xf5   : > { %654 = vst.msk [vmem:[%s1158_s4 + $0x28] sm:$0xff] %vm648_vm2, %v603_v63  ;;  %680 = vst.msk [vmem:[%s1158_s4 + $0xf8] sm:$0xff] %vm648_vm2, %v629_v0  ;;  %v424_v4 = vadd.f32 %v1149_v17, %v423_v2  ;;  %v528_v5 = vadd.f32 %v1149_v17, %v527_v3 }
  0xf6   : > { %v845_v6 = vpop.f32.mrf.mxu0  ;;  %v897_v7 = vpop.f32.mrf.mxu1 }
  0xf7   : > { %v604_v8 = vmax.f32 %v424_v4, 0.0  ;;  %v630_v9 = vmax.f32 %v528_v5, 0.0 }
  0xf8   : > { %v426_v10 = vpop.f32.mrf.mxu0  ;;  %v530_v11 = vpop.f32.mrf.mxu1 }
  0xf9   : > { %655 = vst.msk [vmem:[%s1158_s4 + $0x30] sm:$0xff] %vm648_vm2, %v604_v8  ;;  %681 = vst.msk [vmem:[%s1158_s4 + $0x100] sm:$0xff] %vm648_vm2, %v630_v9  ;;  %v427_v12 = vadd.f32 %v1149_v17, %v426_v10  ;;  %v531_v13 = vadd.f32 %v1149_v17, %v530_v11 }
  0xfa   : > { %v846_v14 = vpop.f32.mrf.mxu0  ;;  %v898_v15 = vpop.f32.mrf.mxu1 }
  0xfb   : > { %v605_v16 = vmax.f32 %v427_v12, 0.0  ;;  %v631_v18 = vmax.f32 %v531_v13, 0.0 }
  0xfc   : > { %v431_v19 = vpop.f32.mrf.mxu0  ;;  %v535_v20 = vpop.f32.mrf.mxu1 }
  0xfd   : > { %656 = vst.msk [vmem:[%s1158_s4 + $0x38] sm:$0xff] %vm648_vm2, %v605_v16  ;;  %682 = vst.msk [vmem:[%s1158_s4 + $0x108] sm:$0xff] %vm648_vm2, %v631_v18  ;;  %v432_v21 = vadd.f32 %v1149_v17, %v431_v19  ;;  %v536_v1 = vadd.f32 %v1149_v17, %v535_v20 }
  0xfe   : > { %v849_v22 = vpop.f32.mrf.mxu0  ;;  %v901_v23 = vpop.f32.mrf.mxu1 }
  0xff   : > { %v606_v24 = vmax.f32 %v432_v21, 0.0  ;;  %v632_v25 = vmax.f32 %v536_v1, 0.0 }
 0x100   : > { %v434_v26 = vpop.f32.mrf.mxu0  ;;  %v538_v27 = vpop.f32.mrf.mxu1 }
 0x101   : > { %657 = vst.msk [vmem:[%s1158_s4 + $0x40] sm:$0xff] %vm648_vm2, %v606_v24  ;;  %683 = vst.msk [vmem:[%s1158_s4 + $0x110] sm:$0xff] %vm648_vm2, %v632_v25  ;;  %v435_v28 = vadd.f32 %v1149_v17, %v434_v26  ;;  %v539_v29 = vadd.f32 %v1149_v17, %v538_v27 }
 0x102   : > { %v850_v30 = vpop.f32.mrf.mxu0  ;;  %v902_v31 = vpop.f32.mrf.mxu1 }
 0x103   : > { %v607_v32 = vmax.f32 %v435_v28, 0.0  ;;  %v633_v33 = vmax.f32 %v539_v29, 0.0 }
 0x104   : > { %v439_v34 = vpop.f32.mrf.mxu0  ;;  %v543_v35 = vpop.f32.mrf.mxu1 }
 0x105   : > { %658 = vst.msk [vmem:[%s1158_s4 + $0x48] sm:$0xff] %vm648_vm2, %v607_v32  ;;  %684 = vst.msk [vmem:[%s1158_s4 + $0x118] sm:$0xff] %vm648_vm2, %v633_v33  ;;  %v440_v36 = vadd.f32 %v1149_v17, %v439_v34  ;;  %v544_v37 = vadd.f32 %v1149_v17, %v543_v35 }
 0x106   : > { %v853_v38 = vpop.f32.mrf.mxu0  ;;  %v905_v39 = vpop.f32.mrf.mxu1 }
 0x107   : > { %v608_v40 = vmax.f32 %v440_v36, 0.0  ;;  %v634_v41 = vmax.f32 %v544_v37, 0.0 }
 0x108   : > { %v442_v42 = vpop.f32.mrf.mxu0  ;;  %v546_v43 = vpop.f32.mrf.mxu1 }
 0x109   : > { %659 = vst.msk [vmem:[%s1158_s4 + $0x50] sm:$0xff] %vm648_vm2, %v608_v40  ;;  %685 = vst.msk [vmem:[%s1158_s4 + $0x120] sm:$0xff] %vm648_vm2, %v634_v41  ;;  %v443_v44 = vadd.f32 %v1149_v17, %v442_v42  ;;  %v547_v45 = vadd.f32 %v1149_v17, %v546_v43 }
 0x10a   : > { %v854_v46 = vpop.f32.mrf.mxu0  ;;  %v906_v47 = vpop.f32.mrf.mxu1 }
 0x10b   : > { %v609_v48 = vmax.f32 %v443_v44, 0.0  ;;  %v635_v49 = vmax.f32 %v547_v45, 0.0 }
 0x10c   : > { %v447_v50 = vpop.f32.mrf.mxu0  ;;  %v551_v51 = vpop.f32.mrf.mxu1 }
 0x10d   : > { %660 = vst.msk [vmem:[%s1158_s4 + $0x58] sm:$0xff] %vm648_vm2, %v609_v48  ;;  %686 = vst.msk [vmem:[%s1158_s4 + $0x128] sm:$0xff] %vm648_vm2, %v635_v49  ;;  %v448_v52 = vadd.f32 %v1149_v17, %v447_v50  ;;  %v552_v53 = vadd.f32 %v1149_v17, %v551_v51 }
 0x10e   : > { %v857_v54 = vpop.f32.mrf.mxu0  ;;  %v909_v55 = vpop.f32.mrf.mxu1 }
 0x10f   : > { %v610_v56 = vmax.f32 %v448_v52, 0.0  ;;  %v636_v57 = vmax.f32 %v552_v53, 0.0 }
 0x110   : > { %v450_v58 = vpop.f32.mrf.mxu0  ;;  %v554_v59 = vpop.f32.mrf.mxu1 }
 0x111   : > { %661 = vst.msk [vmem:[%s1158_s4 + $0x60] sm:$0xff] %vm648_vm2, %v610_v56  ;;  %687 = vst.msk [vmem:[%s1158_s4 + $0x130] sm:$0xff] %vm648_vm2, %v636_v57  ;;  %v451_v60 = vadd.f32 %v1149_v17, %v450_v58  ;;  %v555_v61 = vadd.f32 %v1149_v17, %v554_v59 }
 0x112   : > { %v858_v62 = vpop.f32.mrf.mxu0  ;;  %v910_v63 = vpop.f32.mrf.mxu1 }
 0x113   : > { %v611_v0 = vmax.f32 %v451_v60, 0.0  ;;  %v637_v2 = vmax.f32 %v555_v61, 0.0 }
 0x114   : > { %v455_v3 = vpop.f32.mrf.mxu0  ;;  %v559_v4 = vpop.f32.mrf.mxu1 }
 0x115   : > { %662 = vst.msk [vmem:[%s1158_s4 + $0x68] sm:$0xff] %vm648_vm2, %v611_v0  ;;  %688 = vst.msk [vmem:[%s1158_s4 + $0x138] sm:$0xff] %vm648_vm2, %v637_v2  ;;  %v456_v5 = vadd.f32 %v1149_v17, %v455_v3  ;;  %v560_v6 = vadd.f32 %v1149_v17, %v559_v4 }
 0x116   : > { %v861_v7 = vpop.f32.mrf.mxu0  ;;  %v913_v8 = vpop.f32.mrf.mxu1 }
 0x117   : > { %v612_v9 = vmax.f32 %v456_v5, 0.0  ;;  %v638_v10 = vmax.f32 %v560_v6, 0.0 }
 0x118   : > { %v458_v11 = vpop.f32.mrf.mxu0  ;;  %v562_v12 = vpop.f32.mrf.mxu1 }
 0x119   : > { %663 = vst.msk [vmem:[%s1158_s4 + $0x70] sm:$0xff] %vm648_vm2, %v612_v9  ;;  %689 = vst.msk [vmem:[%s1158_s4 + $0x140] sm:$0xff] %vm648_vm2, %v638_v10  ;;  %v459_v13 = vadd.f32 %v1149_v17, %v458_v11  ;;  %v563_v14 = vadd.f32 %v1149_v17, %v562_v12 }
 0x11a   : > { %v862_v15 = vpop.f32.mrf.mxu0  ;;  %v914_v16 = vpop.f32.mrf.mxu1 }
 0x11b   : > { %v613_v18 = vmax.f32 %v459_v13, 0.0  ;;  %v639_v19 = vmax.f32 %v563_v14, 0.0 }
 0x11c   : > { %v463_v20 = vpop.f32.mrf.mxu0  ;;  %v567_v21 = vpop.f32.mrf.mxu1 }
 0x11d   : > { %664 = vst.msk [vmem:[%s1158_s4 + $0x78] sm:$0xff] %vm648_vm2, %v613_v18  ;;  %690 = vst.msk [vmem:[%s1158_s4 + $0x148] sm:$0xff] %vm648_vm2, %v639_v19  ;;  %v464_v1 = vadd.f32 %v1149_v17, %v463_v20  ;;  %v568_v22 = vadd.f32 %v1149_v17, %v567_v21 }
 0x11e   : > { %v865_v23 = vpop.f32.mrf.mxu0  ;;  %v917_v24 = vpop.f32.mrf.mxu1 }
 0x11f   : > { %v614_v25 = vmax.f32 %v464_v1, 0.0  ;;  %v640_v26 = vmax.f32 %v568_v22, 0.0 }
 0x120   : > { %v466_v27 = vpop.f32.mrf.mxu0  ;;  %v570_v28 = vpop.f32.mrf.mxu1 }
 0x121   : > { %665 = vst.msk [vmem:[%s1158_s4 + $0x80] sm:$0xff] %vm648_vm2, %v614_v25  ;;  %691 = vst.msk [vmem:[%s1158_s4 + $0x150] sm:$0xff] %vm648_vm2, %v640_v26  ;;  %v467_v29 = vadd.f32 %v1149_v17, %v466_v27  ;;  %v571_v30 = vadd.f32 %v1149_v17, %v570_v28 }
 0x122   : > { %v866_v31 = vpop.f32.mrf.mxu0  ;;  %v918_v32 = vpop.f32.mrf.mxu1 }
 0x123   : > { %v615_v33 = vmax.f32 %v467_v29, 0.0  ;;  %v641_v34 = vmax.f32 %v571_v30, 0.0 }
 0x124   : > { %v471_v35 = vpop.f32.mrf.mxu0  ;;  %v575_v36 = vpop.f32.mrf.mxu1 }
 0x125   : > { %666 = vst.msk [vmem:[%s1158_s4 + $0x88] sm:$0xff] %vm648_vm2, %v615_v33  ;;  %692 = vst.msk [vmem:[%s1158_s4 + $0x158] sm:$0xff] %vm648_vm2, %v641_v34  ;;  %v472_v37 = vadd.f32 %v1149_v17, %v471_v35  ;;  %v576_v38 = vadd.f32 %v1149_v17, %v575_v36 }
 0x126   : > { %v869_v39 = vpop.f32.mrf.mxu0  ;;  %v921_v40 = vpop.f32.mrf.mxu1 }
 0x127   : > { %v616_v41 = vmax.f32 %v472_v37, 0.0  ;;  %v642_v42 = vmax.f32 %v576_v38, 0.0 }
 0x128   : > { %v474_v43 = vpop.f32.mrf.mxu0  ;;  %v578_v44 = vpop.f32.mrf.mxu1 }
 0x129   : > { %667 = vst.msk [vmem:[%s1158_s4 + $0x90] sm:$0xff] %vm648_vm2, %v616_v41  ;;  %693 = vst.msk [vmem:[%s1158_s4 + $0x160] sm:$0xff] %vm648_vm2, %v642_v42  ;;  %v475_v45 = vadd.f32 %v1149_v17, %v474_v43  ;;  %v579_v46 = vadd.f32 %v1149_v17, %v578_v44 }
 0x12a   : > { %v870_v47 = vpop.f32.mrf.mxu0  ;;  %v922_v48 = vpop.f32.mrf.mxu1 }
 0x12b   : > { %v617_v49 = vmax.f32 %v475_v45, 0.0  ;;  %v643_v50 = vmax.f32 %v579_v46, 0.0 }
 0x12c   : > { %v479_v51 = vpop.f32.mrf.mxu0  ;;  %v583_v52 = vpop.f32.mrf.mxu1 }
 0x12d   : > { %668 = vst.msk [vmem:[%s1158_s4 + $0x98] sm:$0xff] %vm648_vm2, %v617_v49  ;;  %694 = vst.msk [vmem:[%s1158_s4 + $0x168] sm:$0xff] %vm648_vm2, %v643_v50  ;;  %v480_v53 = vadd.f32 %v1149_v17, %v479_v51  ;;  %v584_v54 = vadd.f32 %v1149_v17, %v583_v52 }
 0x12e   : > { %v873_v55 = vpop.f32.mrf.mxu0  ;;  %v925_v56 = vpop.f32.mrf.mxu1 }
 0x12f   : > { %v618_v57 = vmax.f32 %v480_v53, 0.0  ;;  %v644_v58 = vmax.f32 %v584_v54, 0.0 }
 0x130   : > { %v482_v59 = vpop.f32.mrf.mxu0  ;;  %v586_v60 = vpop.f32.mrf.mxu1 }
 0x131   : > { %669 = vst.msk [vmem:[%s1158_s4 + $0xa0] sm:$0xff] %vm648_vm2, %v618_v57  ;;  %695 = vst.msk [vmem:[%s1158_s4 + $0x170] sm:$0xff] %vm648_vm2, %v644_v58  ;;  %v483_v61 = vadd.f32 %v1149_v17, %v482_v59  ;;  %v587_v62 = vadd.f32 %v1149_v17, %v586_v60 }
 0x132   : > { %v874_v63 = vpop.f32.mrf.mxu0  ;;  %v926_v0 = vpop.f32.mrf.mxu1 }
 0x133   : > { %v619_v2 = vmax.f32 %v483_v61, 0.0  ;;  %v645_v3 = vmax.f32 %v587_v62, 0.0 }
 0x134   : > { %v487_v4 = vpop.f32.mrf.mxu0  ;;  %v591_v5 = vpop.f32.mrf.mxu1 }
 0x135   : > { %670 = vst.msk [vmem:[%s1158_s4 + $0xa8] sm:$0xff] %vm648_vm2, %v619_v2  ;;  %696 = vst.msk [vmem:[%s1158_s4 + $0x178] sm:$0xff] %vm648_vm2, %v645_v3  ;;  %v488_v6 = vadd.f32 %v1149_v17, %v487_v4  ;;  %v592_v7 = vadd.f32 %v1149_v17, %v591_v5 }
 0x136   : > { %v877_v8 = vpop.f32.mrf.mxu0  ;;  %v929_v9 = vpop.f32.mrf.mxu1 }
 0x137   : > { %v620_v10 = vmax.f32 %v488_v6, 0.0  ;;  %v646_v11 = vmax.f32 %v592_v7, 0.0 }
 0x138   : > { %v490_v12 = vpop.f32.mrf.mxu0  ;;  %v594_v13 = vpop.f32.mrf.mxu1 }
 0x139   : > { %671 = vst.msk [vmem:[%s1158_s4 + $0xb0] sm:$0xff] %vm648_vm2, %v620_v10  ;;  %697 = vst.msk [vmem:[%s1158_s4 + $0x180] sm:$0xff] %vm648_vm2, %v646_v11  ;;  %v491_v14 = vadd.f32 %v1149_v17, %v490_v12  ;;  %v595_v15 = vadd.f32 %v1149_v17, %v594_v13 }
 0x13a   : > { %v878_v16 = vpop.f32.mrf.mxu0  ;;  %v930_v18 = vpop.f32.mrf.mxu1 }
 0x13b   : > { %v621_v19 = vmax.f32 %v491_v14, 0.0  ;;  %v647_v20 = vmax.f32 %v595_v15, 0.0 }
 0x13c   : > { %v495_v21 = vpop.f32.mrf.mxu0 }
 0x13d   : > { %672 = vst.msk [vmem:[%s1158_s4 + $0xb8] sm:$0xff] %vm648_vm2, %v621_v19  ;;  %698 = vst.msk [vmem:[%s1158_s4 + $0x188] sm:$0xff] %vm648_vm2, %v647_v20  ;;  %v496_v1 = vadd.f32 %v1149_v17, %v495_v21 }
 0x13e   : > { %v881_v22 = vpop.f32.mrf.mxu0 }
 0x13f   : > { %v622_v23 = vmax.f32 %v496_v1, 0.0 }
 0x140   : > { %v498_v24 = vpop.f32.mrf.mxu0 }
 0x141   : > { %673 = vst.msk [vmem:[%s1158_s4 + $0xc0] sm:$0xff] %vm648_vm2, %v622_v23  ;;  %v499_v25 = vadd.f32 %v1149_v17, %v498_v24 }
 0x142   : > { %v882_v26 = vpop.f32.mrf.mxu0 }
 0x143   : > { %v623_v27 = vmax.f32 %v499_v25, 0.0 }
 0x145   : > { %674 = vst.msk [vmem:[%s1158_s4 + $0xc8] sm:$0xff] %vm648_vm2, %v623_v27 }
 0x146 PF: > { %s13_s12 = sadd.s32 1, %s959_s12  }
 0x147   : > { %p10_p4 = scmp.ge.s32.totalorder %s13_s12, 4  }
 0x149   :  { %12 = sbr.rel (!%p10_p4) target bundleno = 1 (0x1), region = 62 }

// kernel: dqn_forward_pallas.5
= control target key start
LH: loop header
LB: loop body
LE: loop exit
PB: predicated region body
PF: predicated region fallthrough
CT: control target
= control target key end

     0   :  { %vm667_vm0 = vcmask 523264   ;;  %vm688_vm1 = vcmask 517120   ;;  %s1400_s1 = inlined_call_operand.vmem [shape: bf16[512,64], index: 1, kind: input, shape index: {}]   ;;  %s1401_s0 = inlined_call_operand.vmem [shape: f32[162,512], index: 0, kind: input, shape index: {}]   ;;  %s1402_s2 = inlined_call_operand.vmem [shape: f32[1,64], index: 2, kind: input, shape index: {}]   ;;  %s1403_s3 = inlined_call_operand.vmem [shape: f32[162,64], index: 3, kind: output, shape index: {}]  }
   0x1   :  { %v891_v0 = vld [vmem:[%s1400_s1 + $0x78] sm:$0xff]   ;;  %v895_v4 = vld [vmem:[%s1400_s1 + $0x70] sm:$0xff]   ;;  %v899_v8 = vld [vmem:[%s1400_s1 + $0x68] sm:$0xff]  }
   0x2   :  { %v892_v1 = vld [vmem:[%s1400_s1 + $0xf8] sm:$0xff]   ;;  %727 = vmatprep.subr.bf16.mxu0 %v891_v0  ;;  %v896_v5 = vld [vmem:[%s1400_s1 + $0xf0] sm:$0xff]   ;;  %v900_v9 = vld [vmem:[%s1400_s1 + $0xe8] sm:$0xff]  }
   0x3   :  { %v893_v2 = vld [vmem:[%s1400_s1 + $0x38] sm:$0xff]   ;;  %809 = vmatprep.subr.bf16.mxu1 %v892_v1  ;;  %v897_v6 = vld [vmem:[%s1400_s1 + $0x30] sm:$0xff]   ;;  %v901_v10 = vld [vmem:[%s1400_s1 + $0x28] sm:$0xff]  }
   0x4   :  { %v894_v3 = vld [vmem:[%s1400_s1 + $0xb8] sm:$0xff]   ;;  %728 = vmatpush3.bf16.msra.mxu0 %v893_v2  ;;  %v898_v7 = vld [vmem:[%s1400_s1 + $0xb0] sm:$0xff]   ;;  %v902_v11 = vld [vmem:[%s1400_s1 + $0xa8] sm:$0xff]  }
   0x5   :  { %810 = vmatpush3.bf16.msra.mxu1 %v894_v3  ;;  %729 = vmatprep.subr.bf16.mxu0 %v895_v4  ;;  %v903_v12 = vld [vmem:[%s1400_s1 + $0x60] sm:$0xff]   ;;  %v907_v16 = vld [vmem:[%s1400_s1 + $0x58] sm:$0xff]   ;;  %v911_v20 = vld [vmem:[%s1400_s1 + $0x50] sm:$0xff]  }
   0x6   :  { %811 = vmatprep.subr.bf16.mxu1 %v896_v5  ;;  %v904_v13 = vld [vmem:[%s1400_s1 + $0xe0] sm:$0xff]   ;;  %v908_v17 = vld [vmem:[%s1400_s1 + $0xd8] sm:$0xff]   ;;  %v912_v21 = vld [vmem:[%s1400_s1 + $0xd0] sm:$0xff]  }
   0x7   :  { %v905_v14 = vld [vmem:[%s1400_s1 + $0x20] sm:$0xff]   ;;  %v909_v18 = vld [vmem:[%s1400_s1 + $0x18] sm:$0xff]   ;;  %v913_v22 = vld [vmem:[%s1400_s1 + $0x10] sm:$0xff]  }
   0x8   :  { %730 = vmatpush3.bf16.msra.mxu0 %v897_v6  ;;  %v906_v15 = vld [vmem:[%s1400_s1 + $0xa0] sm:$0xff]   ;;  %v910_v19 = vld [vmem:[%s1400_s1 + $0x98] sm:$0xff]   ;;  %v914_v23 = vld [vmem:[%s1400_s1 + $0x90] sm:$0xff]  }
   0x9   :  { %812 = vmatpush3.bf16.msra.mxu1 %v898_v7  ;;  %731 = vmatprep.subr.bf16.mxu0 %v899_v8  ;;  %v915_v24 = vld [vmem:[%s1400_s1 + $0x48] sm:$0xff]   ;;  %v919_v28 = vld [vmem:[%s1400_s1 + $0x40] sm:$0xff]   ;;  %v18_v34 = vld [vmem:[%s1401_s0 + $0x18] sm:$0xff] }
   0xa   :  { %813 = vmatprep.subr.bf16.mxu1 %v900_v9  ;;  %v916_v25 = vld [vmem:[%s1400_s1 + $0xc8] sm:$0xff]   ;;  %v920_v29 = vld [vmem:[%s1400_s1 + $0xc0] sm:$0xff]   ;;  %v22_v36 = vld [vmem:[%s1401_s0 + $0x38] sm:$0xff] }
   0xb   :  { %v917_v26 = vld [vmem:[%s1400_s1 + $0x8] sm:$0xff]   ;;  %v921_v30 = vld [vmem:[%s1400_s1] sm:$0xff]   ;;  %v102_v39 = vpack.c.bf16 %v22_v36, %v18_v34  ;;  %v17_v41 = vld [vmem:[%s1401_s0 + $0x10] sm:$0xff] }
   0xc   :  { %732 = vmatpush3.bf16.msra.mxu0 %v901_v10  ;;  %v918_v27 = vld [vmem:[%s1400_s1 + $0x88] sm:$0xff]   ;;  %v922_v31 = vld [vmem:[%s1400_s1 + $0x80] sm:$0xff]   ;;  %v21_v42 = vld [vmem:[%s1401_s0 + $0x30] sm:$0xff] }
   0xd   :  { %814 = vmatpush3.bf16.msra.mxu1 %v902_v11  ;;  %733 = vmatprep.subr.bf16.mxu0 %v903_v12  ;;  %v16_v32 = vld [vmem:[%s1401_s0 + $0x8] sm:$0xff]  ;;  %v15_v37 = vld [vmem:[%s1401_s0] sm:$0xff]  ;;  %v101_v44 = vpack.c.bf16 %v21_v42, %v17_v41  ;;  %v26_v46 = vld [vmem:[%s1401_s0 + $0x58] sm:$0xff] }
   0xe   :  { %815 = vmatprep.subr.bf16.mxu1 %v904_v13  ;;  %v20_v33 = vld [vmem:[%s1401_s0 + $0x28] sm:$0xff]  ;;  %v19_v38 = vld [vmem:[%s1401_s0 + $0x20] sm:$0xff]  ;;  %v30_v47 = vld [vmem:[%s1401_s0 + $0x78] sm:$0xff]  ;;  %558 = vmatprep.mubr.bf16.mxu1 %v102_v39 }
   0xf   :  { %v100_v35 = vpack.c.bf16 %v20_v33, %v16_v32  ;;  %v99_v40 = vpack.c.bf16 %v19_v38, %v15_v37  ;;  %v24_v43 = vld [vmem:[%s1401_s0 + $0x48] sm:$0xff]  ;;  %v106_v49 = vpack.c.bf16 %v30_v47, %v26_v46  ;;  %v23_v50 = vld [vmem:[%s1401_s0 + $0x40] sm:$0xff]  ;;  %v25_v52 = vld [vmem:[%s1401_s0 + $0x50] sm:$0xff] }
  0x10   :  { %734 = vmatpush3.bf16.msra.mxu0 %v905_v14  ;;  %v28_v45 = vld [vmem:[%s1401_s0 + $0x68] sm:$0xff]  ;;  %v27_v51 = vld [vmem:[%s1401_s0 + $0x60] sm:$0xff]  ;;  %v29_v53 = vld [vmem:[%s1401_s0 + $0x70] sm:$0xff] }
  0x11   :  { %816 = vmatpush3.bf16.msra.mxu1 %v906_v15  ;;  %735 = vmatprep.subr.bf16.mxu0 %v907_v16  ;;  %v104_v48 = vpack.c.bf16 %v28_v45, %v24_v43  ;;  %v32_v54 = vld [vmem:[%s1401_s0 + $0x88] sm:$0xff]  ;;  %v34_v56 = vld [vmem:[%s1401_s0 + $0x98] sm:$0xff]  ;;  %v103_v58 = vpack.c.bf16 %v27_v51, %v23_v50  ;;  %v105_v59 = vpack.c.bf16 %v29_v53, %v25_v52  ;;  %v31_v62 = vld [vmem:[%s1401_s0 + $0x80] sm:$0xff] }
  0x12   :  { %817 = vmatprep.subr.bf16.mxu1 %v908_v17  ;;  %438 = vmatprep.mubr.bf16.mxu0 %v100_v35  ;;  %v36_v55 = vld [vmem:[%s1401_s0 + $0xa8] sm:$0xff]  ;;  %v38_v57 = vld [vmem:[%s1401_s0 + $0xb8] sm:$0xff]  ;;  %v35_v63 = vld [vmem:[%s1401_s0 + $0xa0] sm:$0xff] }
  0x13   :  { %v108_v60 = vpack.c.bf16 %v36_v55, %v32_v54  ;;  %v110_v61 = vpack.c.bf16 %v38_v57, %v34_v56  ;;  %v33_v0 = vld [vmem:[%s1401_s0 + $0x90] sm:$0xff]  ;;  %v40_v2 = vld [vmem:[%s1401_s0 + $0xc8] sm:$0xff]  ;;  %v42_v4 = vld [vmem:[%s1401_s0 + $0xd8] sm:$0xff]  ;;  %v107_v6 = vpack.c.bf16 %v35_v63, %v31_v62 }
  0x14   :  { %736 = vmatpush3.bf16.msra.mxu0 %v909_v18  ;;  %v37_v1 = vld [vmem:[%s1401_s0 + $0xb0] sm:$0xff]  ;;  %v44_v3 = vld [vmem:[%s1401_s0 + $0xe8] sm:$0xff]  ;;  %v46_v5 = vld [vmem:[%s1401_s0 + $0xf8] sm:$0xff] }
  0x15   :  { %818 = vmatpush3.bf16.msra.mxu1 %v910_v19  ;;  %737 = vmatprep.subr.bf16.mxu0 %v911_v20  ;;  %v109_v7 = vpack.c.bf16 %v37_v1, %v33_v0  ;;  %v112_v8 = vpack.c.bf16 %v44_v3, %v40_v2  ;;  %v114_v9 = vpack.c.bf16 %v46_v5, %v42_v4  ;;  %v39_v10 = vld [vmem:[%s1401_s0 + $0xc0] sm:$0xff]  ;;  %v41_v12 = vld [vmem:[%s1401_s0 + $0xd0] sm:$0xff]  ;;  %v48_v14 = vld [vmem:[%s1401_s0 + $0x108] sm:$0xff] }
  0x16   :  { %819 = vmatprep.subr.bf16.mxu1 %v912_v21  ;;  %v43_v11 = vld [vmem:[%s1401_s0 + $0xe0] sm:$0xff]  ;;  %v45_v13 = vld [vmem:[%s1401_s0 + $0xf0] sm:$0xff]  ;;  %v52_v15 = vld [vmem:[%s1401_s0 + $0x128] sm:$0xff] }
  0x17   :  { %v50_v16 = vld [vmem:[%s1401_s0 + $0x118] sm:$0xff]  ;;  %v111_v18 = vpack.c.bf16 %v43_v11, %v39_v10  ;;  %v113_v19 = vpack.c.bf16 %v45_v13, %v41_v12  ;;  %v116_v20 = vpack.c.bf16 %v52_v15, %v48_v14  ;;  %v55_v34 = vld [vmem:[%s1401_s0 + $0x140] sm:$0xff]  ;;  %v57_v36 = vld [vmem:[%s1401_s0 + $0x150] sm:$0xff] }
  0x18   :  { %738 = vmatpush3.bf16.msra.mxu0 %v913_v22  ;;  %v54_v17 = vld [vmem:[%s1401_s0 + $0x138] sm:$0xff]  ;;  %v47_v22 = vld [vmem:[%s1401_s0 + $0x100] sm:$0xff]  ;;  %v61_v37 = vld [vmem:[%s1401_s0 + $0x170] sm:$0xff] }
  0x19   :  { %820 = vmatpush3.bf16.msra.mxu1 %v914_v23  ;;  %739 = vmatprep.subr.bf16.mxu0 %v915_v24  ;;  %v118_v21 = vpack.c.bf16 %v54_v17, %v50_v16  ;;  %v51_v23 = vld [vmem:[%s1401_s0 + $0x120] sm:$0xff]  ;;  %v49_v24 = vld [vmem:[%s1401_s0 + $0x110] sm:$0xff]  ;;  %v64_v38 = vld [vmem:[%s1401_s0 + $0x188] sm:$0xff]  ;;  %v121_v43 = vpack.c.bf16 %v61_v37, %v57_v36 }
  0x1a   :  { %821 = vmatprep.subr.bf16.mxu1 %v916_v25  ;;  %v53_v25 = vld [vmem:[%s1401_s0 + $0x130] sm:$0xff]  ;;  %v59_v35 = vld [vmem:[%s1401_s0 + $0x160] sm:$0xff]  ;;  %v68_v39 = vld [vmem:[%s1401_s0 + $0x1a8] sm:$0xff] }
  0x1b   :  { %v70_v41 = vld [vmem:[%s1401_s0 + $0x1b8] sm:$0xff]  ;;  %v119_v42 = vpack.c.bf16 %v59_v35, %v55_v34  ;;  %v63_v46 = vld [vmem:[%s1401_s0 + $0x180] sm:$0xff]  ;;  %v72_v50 = vld [vmem:[%s1401_s0 + $0x1c8] sm:$0xff] }
  0x1c   :  { %740 = vmatpush3.bf16.msra.mxu0 %v917_v26  ;;  %v56_v26 = vld [vmem:[%s1401_s0 + $0x148] sm:$0xff]  ;;  %v67_v47 = vld [vmem:[%s1401_s0 + $0x1a0] sm:$0xff]  ;;  %v74_v52 = vld [vmem:[%s1401_s0 + $0x1d8] sm:$0xff] }
  0x1d   :  { %822 = vmatpush3.bf16.msra.mxu1 %v918_v27  ;;  %741 = vmatprep.subr.bf16.mxu0 %v919_v28  ;;  %v60_v27 = vld [vmem:[%s1401_s0 + $0x168] sm:$0xff]  ;;  %v58_v28 = vld [vmem:[%s1401_s0 + $0x158] sm:$0xff]  ;;  %v123_v54 = vpack.c.bf16 %v67_v47, %v63_v46  ;;  %v1294_v34 = vld [vmem:[%s1402_s2] ss:$0 sm:$0xff] }
  0x1e   :  { %823 = vmatprep.subr.bf16.mxu1 %v920_v29  ;;  %v62_v29 = vld [vmem:[%s1401_s0 + $0x178] sm:$0xff]  ;;  %v120_v32 = vpack.c.bf16 %v60_v27, %v56_v26  ;;  %v76_v51 = vld [vmem:[%s1401_s0 + $0x1e8] sm:$0xff] }
  0x1f   :  { %v122_v33 = vpack.c.bf16 %v62_v29, %v58_v28  ;;  %v78_v53 = vld [vmem:[%s1401_s0 + $0x1f8] sm:$0xff]  ;;  %v128_v56 = vpack.c.bf16 %v76_v51, %v72_v50  ;;  %v80_v62 = vld [vmem:[%s1401_s0 + $0x208] sm:$0xff]  ;;  %v95_v28 = vld [vmem:[%s1401_s0 + $0x280] sm:$0x3] }
  0x20   :  { %742 = vmatpush3.bf16.msra.mxu0 %v921_v30  ;;  %v115_v30 = vpack.c.bf16 %v51_v23, %v47_v22  ;;  %v130_v57 = vpack.c.bf16 %v78_v53, %v74_v52  ;;  %v84_v63 = vld [vmem:[%s1401_s0 + $0x228] sm:$0xff]  ;;  %v82_v0 = vld [vmem:[%s1401_s0 + $0x218] sm:$0xff]  ;;  %v97_v29 = vld [vmem:[%s1401_s0 + $0x290] sm:$0x3] }
  0x21   :  { %824 = vmatpush3.bf16.msra.mxu1 %v922_v31  ;;  %v117_v31 = vpack.c.bf16 %v53_v25, %v49_v24  ;;  %v86_v1 = vld [vmem:[%s1401_s0 + $0x238] sm:$0xff]  ;;  %v132_v4 = vpack.c.bf16 %v84_v63, %v80_v62  ;;  %v88_v10 = vld [vmem:[%s1401_s0 + $0x248] sm:$0xff] }
  0x22   :  { %v134_v5 = vpack.c.bf16 %v86_v1, %v82_v0  ;;  %v92_v11 = vld [vmem:[%s1401_s0 + $0x268] sm:$0xff]  ;;  %v90_v12 = vld [vmem:[%s1401_s0 + $0x258] sm:$0xff] }
  0x23   :  { %439 = vmatmul.mubr.bf16.vlgmr.msra.gmra.mxu0 %v99_v40  ;;  %v66_v40 = vld [vmem:[%s1401_s0 + $0x198] sm:$0xff]  ;;  %v136_v16 = vpack.c.bf16 %v92_v11, %v88_v10  ;;  %v96_v22 = vld [vmem:[%s1401_s0 + $0x288] sm:$0x3] }
  0x24   :  { %559 = vmatmul.mubr.bf16.vlgmr.msra.gmra.mxu1 %v101_v44  ;;  %446 = vmatprep.mubr.bf16.mxu0 %v104_v48  ;;  %v124_v44 = vpack.c.bf16 %v68_v39, %v64_v38  ;;  %v126_v45 = vpack.c.bf16 %v70_v41, %v66_v40  ;;  %v65_v48 = vld [vmem:[%s1401_s0 + $0x190] sm:$0xff]  ;;  %v94_v13 = vld [vmem:[%s1401_s0 + $0x278] sm:$0xff]  ;;  %v140_v26 = vpack.c.bf16 %v96_v22, %v96_v22 }
  0x25   :  { %566 = vmatprep.mubr.bf16.mxu1 %v106_v49  ;;  %v69_v49 = vld [vmem:[%s1401_s0 + $0x1b0] sm:$0xff]  ;;  %v138_v17 = vpack.c.bf16 %v94_v13, %v90_v12  ;;  %v98_v23 = vld [vmem:[%s1401_s0 + $0x298] sm:$0x3] }
  0x26   :  { %v125_v55 = vpack.c.bf16 %v69_v49, %v65_v48  ;;  %v142_v27 = vpack.c.bf16 %v98_v23, %v98_v23 }
  0x2b   :  { %447 = vmatmul.mubr.bf16.gmra.mxu0 %v103_v58  ;;  %v71_v58 = vld [vmem:[%s1401_s0 + $0x1c0] sm:$0xff] }
  0x2c   :  { %567 = vmatmul.mubr.bf16.gmra.mxu1 %v105_v59  ;;  %454 = vmatprep.mubr.bf16.mxu0 %v108_v60  ;;  %v75_v59 = vld [vmem:[%s1401_s0 + $0x1e0] sm:$0xff]  ;;  %v73_v60 = vld [vmem:[%s1401_s0 + $0x1d0] sm:$0xff] }
  0x2d   :  { %574 = vmatprep.mubr.bf16.mxu1 %v110_v61  ;;  %v77_v61 = vld [vmem:[%s1401_s0 + $0x1f0] sm:$0xff]  ;;  %v127_v2 = vpack.c.bf16 %v75_v59, %v71_v58 }
  0x2e   :  { %v129_v3 = vpack.c.bf16 %v77_v61, %v73_v60 }
  0x33   :  { %455 = vmatmul.mubr.bf16.gmra.mxu0 %v107_v6  ;;  %v79_v6 = vld [vmem:[%s1401_s0 + $0x200] sm:$0xff] }
  0x34   :  { %575 = vmatmul.mubr.bf16.gmra.mxu1 %v109_v7  ;;  %462 = vmatprep.mubr.bf16.mxu0 %v112_v8  ;;  %v83_v7 = vld [vmem:[%s1401_s0 + $0x220] sm:$0xff]  ;;  %v81_v8 = vld [vmem:[%s1401_s0 + $0x210] sm:$0xff] }
  0x35   :  { %582 = vmatprep.mubr.bf16.mxu1 %v114_v9  ;;  %v85_v9 = vld [vmem:[%s1401_s0 + $0x230] sm:$0xff]  ;;  %v131_v14 = vpack.c.bf16 %v83_v7, %v79_v6 }
  0x36   :  { %v133_v15 = vpack.c.bf16 %v85_v9, %v81_v8 }
  0x3b   :  { %463 = vmatmul.mubr.bf16.gmra.mxu0 %v111_v18  ;;  %v87_v18 = vld [vmem:[%s1401_s0 + $0x240] sm:$0xff] }
  0x3c   :  { %583 = vmatmul.mubr.bf16.gmra.mxu1 %v113_v19  ;;  %470 = vmatprep.mubr.bf16.mxu0 %v116_v20  ;;  %v91_v19 = vld [vmem:[%s1401_s0 + $0x260] sm:$0xff]  ;;  %v89_v20 = vld [vmem:[%s1401_s0 + $0x250] sm:$0xff] }
  0x3d   :  { %590 = vmatprep.mubr.bf16.mxu1 %v118_v21  ;;  %v93_v21 = vld [vmem:[%s1401_s0 + $0x270] sm:$0xff]  ;;  %v135_v24 = vpack.c.bf16 %v91_v19, %v87_v18 }
  0x3e   :  { %v137_v25 = vpack.c.bf16 %v93_v21, %v89_v20 }
  0x43   :  { %471 = vmatmul.mubr.bf16.gmra.mxu0 %v115_v30  ;;  %v139_v30 = vpack.c.bf16 %v95_v28, %v95_v28 }
  0x44   :  { %591 = vmatmul.mubr.bf16.gmra.mxu1 %v117_v31  ;;  %478 = vmatprep.mubr.bf16.mxu0 %v120_v32  ;;  %v141_v31 = vpack.c.bf16 %v97_v29, %v97_v29 }
  0x45   :  { %598 = vmatprep.mubr.bf16.mxu1 %v122_v33 }
  0x4b   :  { %479 = vmatmul.mubr.bf16.gmra.mxu0 %v119_v42 }
  0x4c   :  { %599 = vmatmul.mubr.bf16.gmra.mxu1 %v121_v43  ;;  %486 = vmatprep.mubr.bf16.mxu0 %v124_v44 }
  0x4d   :  { %606 = vmatprep.mubr.bf16.mxu1 %v126_v45 }
  0x53   :  { %487 = vmatmul.mubr.bf16.gmra.mxu0 %v123_v54 }
  0x54   :  { %607 = vmatmul.mubr.bf16.gmra.mxu1 %v125_v55  ;;  %494 = vmatprep.mubr.bf16.mxu0 %v128_v56 }
  0x55   :  { %614 = vmatprep.mubr.bf16.mxu1 %v130_v57 }
  0x5b   :  { %495 = vmatmul.mubr.bf16.gmra.mxu0 %v127_v2 }
  0x5c   :  { %615 = vmatmul.mubr.bf16.gmra.mxu1 %v129_v3  ;;  %502 = vmatprep.mubr.bf16.mxu0 %v132_v4 }
  0x5d   :  { %622 = vmatprep.mubr.bf16.mxu1 %v134_v5 }
  0x63   :  { %503 = vmatmul.mubr.bf16.gmra.mxu0 %v131_v14 }
  0x64   :  { %623 = vmatmul.mubr.bf16.gmra.mxu1 %v133_v15  ;;  %510 = vmatprep.mubr.bf16.mxu0 %v136_v16 }
  0x65   :  { %630 = vmatprep.mubr.bf16.mxu1 %v138_v17 }
  0x6b   :  { %511 = vmatmul.mubr.bf16.gmra.mxu0 %v135_v24 }
  0x6c   :  { %631 = vmatmul.mubr.bf16.gmra.mxu1 %v137_v25  ;;  %518 = vmatprep.mubr.bf16.mxu0 %v140_v26 }
  0x6d   :  { %638 = vmatprep.mubr.bf16.mxu1 %v142_v27 }
  0x73   :  { %519 = vmatmul.mubr.bf16.gmra.mxu0 %v139_v30 }
  0x74   :  { %639 = vmatmul.mubr.bf16.gmra.mxu1 %v141_v31 }
  0xe3   :  { %v743_v32 = vpop.f32.mrf.mxu0 }
  0xe4   :  { %v825_v33 = vpop.f32.mrf.mxu1 }
  0xe5   :  { %v744_v35 = vpop.f32.mrf.mxu0 }
  0xe6   :  { %v745_v36 = vadd.f32 %v744_v35, %v743_v32  ;;  %v826_v37 = vpop.f32.mrf.mxu1 }
  0xe7   :  { %v746_v38 = vpop.f32.mrf.mxu0  ;;  %v827_v40 = vadd.f32 %v826_v37, %v825_v33 }
  0xe8   :  { %v441_v39 = vadd.f32 %v745_v36, %v1294_v34  ;;  %v828_v41 = vpop.f32.mrf.mxu1 }
  0xe9   :  { %v747_v42 = vpop.f32.mrf.mxu0 }
  0xea   :  { %v561_v43 = vadd.f32 %v827_v40, %v441_v39  ;;  %v748_v44 = vadd.f32 %v747_v42, %v746_v38  ;;  %v829_v45 = vpop.f32.mrf.mxu1 }
  0xeb   :  { %v749_v46 = vpop.f32.mrf.mxu0  ;;  %v830_v49 = vadd.f32 %v829_v45, %v828_v41 }
  0xec   :  { %v646_v47 = vmax.f32 %v561_v43, 0.0  ;;  %v444_v48 = vadd.f32 %v748_v44, %v1294_v34  ;;  %v831_v50 = vpop.f32.mrf.mxu1 }
  0xed   :  { %v750_v51 = vpop.f32.mrf.mxu0 }
  0xee   :  { %668 = vst.msk [vmem:[%s1403_s3] sm:$0xff] %vm667_vm0, %v646_v47  ;;  %v564_v52 = vadd.f32 %v830_v49, %v444_v48  ;;  %v751_v53 = vadd.f32 %v750_v51, %v749_v46  ;;  %v832_v54 = vpop.f32.mrf.mxu1 }
  0xef   :  { %v752_v55 = vpop.f32.mrf.mxu0  ;;  %v833_v58 = vadd.f32 %v832_v54, %v831_v50 }
  0xf0   :  { %v647_v56 = vmax.f32 %v564_v52, 0.0  ;;  %v449_v57 = vadd.f32 %v751_v53, %v1294_v34  ;;  %v834_v59 = vpop.f32.mrf.mxu1 }
  0xf1   :  { %v753_v60 = vpop.f32.mrf.mxu0 }
  0xf2   :  { %669 = vst.msk [vmem:[%s1403_s3 + $0x8] sm:$0xff] %vm667_vm0, %v647_v56  ;;  %v569_v61 = vadd.f32 %v833_v58, %v449_v57  ;;  %v754_v62 = vadd.f32 %v753_v60, %v752_v55  ;;  %v835_v63 = vpop.f32.mrf.mxu1 }
  0xf3   :  { %v755_v0 = vpop.f32.mrf.mxu0  ;;  %v836_v3 = vadd.f32 %v835_v63, %v834_v59 }
  0xf4   :  { %v648_v1 = vmax.f32 %v569_v61, 0.0  ;;  %v452_v2 = vadd.f32 %v754_v62, %v1294_v34  ;;  %v837_v4 = vpop.f32.mrf.mxu1 }
  0xf5   :  { %v756_v5 = vpop.f32.mrf.mxu0 }
  0xf6   :  { %670 = vst.msk [vmem:[%s1403_s3 + $0x10] sm:$0xff] %vm667_vm0, %v648_v1  ;;  %v572_v6 = vadd.f32 %v836_v3, %v452_v2  ;;  %v757_v7 = vadd.f32 %v756_v5, %v755_v0  ;;  %v838_v8 = vpop.f32.mrf.mxu1 }
  0xf7   :  { %v758_v9 = vpop.f32.mrf.mxu0  ;;  %v839_v12 = vadd.f32 %v838_v8, %v837_v4 }
  0xf8   :  { %v649_v10 = vmax.f32 %v572_v6, 0.0  ;;  %v457_v11 = vadd.f32 %v757_v7, %v1294_v34  ;;  %v840_v13 = vpop.f32.mrf.mxu1 }
  0xf9   :  { %v759_v14 = vpop.f32.mrf.mxu0 }
  0xfa   :  { %671 = vst.msk [vmem:[%s1403_s3 + $0x18] sm:$0xff] %vm667_vm0, %v649_v10  ;;  %v577_v15 = vadd.f32 %v839_v12, %v457_v11  ;;  %v760_v16 = vadd.f32 %v759_v14, %v758_v9  ;;  %v841_v17 = vpop.f32.mrf.mxu1 }
  0xfb   :  { %v761_v18 = vpop.f32.mrf.mxu0  ;;  %v842_v21 = vadd.f32 %v841_v17, %v840_v13 }
  0xfc   :  { %v650_v19 = vmax.f32 %v577_v15, 0.0  ;;  %v460_v20 = vadd.f32 %v760_v16, %v1294_v34  ;;  %v843_v22 = vpop.f32.mrf.mxu1 }
  0xfd   :  { %v762_v23 = vpop.f32.mrf.mxu0 }
  0xfe   :  { %672 = vst.msk [vmem:[%s1403_s3 + $0x20] sm:$0xff] %vm667_vm0, %v650_v19  ;;  %v580_v24 = vadd.f32 %v842_v21, %v460_v20  ;;  %v763_v25 = vadd.f32 %v762_v23, %v761_v18  ;;  %v844_v26 = vpop.f32.mrf.mxu1 }
  0xff   :  { %v764_v27 = vpop.f32.mrf.mxu0  ;;  %v845_v30 = vadd.f32 %v844_v26, %v843_v22 }
 0x100   :  { %v651_v28 = vmax.f32 %v580_v24, 0.0  ;;  %v465_v29 = vadd.f32 %v763_v25, %v1294_v34  ;;  %v846_v31 = vpop.f32.mrf.mxu1 }
 0x101   :  { %v765_v32 = vpop.f32.mrf.mxu0 }
 0x102   :  { %673 = vst.msk [vmem:[%s1403_s3 + $0x28] sm:$0xff] %vm667_vm0, %v651_v28  ;;  %v585_v33 = vadd.f32 %v845_v30, %v465_v29  ;;  %v766_v35 = vadd.f32 %v765_v32, %v764_v27  ;;  %v847_v36 = vpop.f32.mrf.mxu1 }
 0x103   :  { %v767_v37 = vpop.f32.mrf.mxu0  ;;  %v848_v40 = vadd.f32 %v847_v36, %v846_v31 }
 0x104   :  { %v652_v38 = vmax.f32 %v585_v33, 0.0  ;;  %v468_v39 = vadd.f32 %v766_v35, %v1294_v34  ;;  %v849_v41 = vpop.f32.mrf.mxu1 }
 0x105   :  { %v768_v42 = vpop.f32.mrf.mxu0 }
 0x106   :  { %674 = vst.msk [vmem:[%s1403_s3 + $0x30] sm:$0xff] %vm667_vm0, %v652_v38  ;;  %v588_v43 = vadd.f32 %v848_v40, %v468_v39  ;;  %v769_v44 = vadd.f32 %v768_v42, %v767_v37  ;;  %v850_v45 = vpop.f32.mrf.mxu1 }
 0x107   :  { %v770_v46 = vpop.f32.mrf.mxu0  ;;  %v851_v49 = vadd.f32 %v850_v45, %v849_v41 }
 0x108   :  { %v653_v47 = vmax.f32 %v588_v43, 0.0  ;;  %v473_v48 = vadd.f32 %v769_v44, %v1294_v34  ;;  %v852_v50 = vpop.f32.mrf.mxu1 }
 0x109   :  { %v771_v51 = vpop.f32.mrf.mxu0 }
 0x10a   :  { %675 = vst.msk [vmem:[%s1403_s3 + $0x38] sm:$0xff] %vm667_vm0, %v653_v47  ;;  %v593_v52 = vadd.f32 %v851_v49, %v473_v48  ;;  %v772_v53 = vadd.f32 %v771_v51, %v770_v46  ;;  %v853_v54 = vpop.f32.mrf.mxu1 }
 0x10b   :  { %v773_v55 = vpop.f32.mrf.mxu0  ;;  %v854_v58 = vadd.f32 %v853_v54, %v852_v50 }
 0x10c   :  { %v654_v56 = vmax.f32 %v593_v52, 0.0  ;;  %v476_v57 = vadd.f32 %v772_v53, %v1294_v34  ;;  %v855_v59 = vpop.f32.mrf.mxu1 }
 0x10d   :  { %v774_v60 = vpop.f32.mrf.mxu0 }
 0x10e   :  { %676 = vst.msk [vmem:[%s1403_s3 + $0x40] sm:$0xff] %vm667_vm0, %v654_v56  ;;  %v596_v61 = vadd.f32 %v854_v58, %v476_v57  ;;  %v775_v62 = vadd.f32 %v774_v60, %v773_v55  ;;  %v856_v63 = vpop.f32.mrf.mxu1 }
 0x10f   :  { %v776_v0 = vpop.f32.mrf.mxu0  ;;  %v857_v3 = vadd.f32 %v856_v63, %v855_v59 }
 0x110   :  { %v655_v1 = vmax.f32 %v596_v61, 0.0  ;;  %v481_v2 = vadd.f32 %v775_v62, %v1294_v34  ;;  %v858_v4 = vpop.f32.mrf.mxu1 }
 0x111   :  { %v777_v5 = vpop.f32.mrf.mxu0 }
 0x112   :  { %677 = vst.msk [vmem:[%s1403_s3 + $0x48] sm:$0xff] %vm667_vm0, %v655_v1  ;;  %v601_v6 = vadd.f32 %v857_v3, %v481_v2  ;;  %v778_v7 = vadd.f32 %v777_v5, %v776_v0  ;;  %v859_v8 = vpop.f32.mrf.mxu1 }
 0x113   :  { %v779_v9 = vpop.f32.mrf.mxu0  ;;  %v860_v12 = vadd.f32 %v859_v8, %v858_v4 }
 0x114   :  { %v656_v10 = vmax.f32 %v601_v6, 0.0  ;;  %v484_v11 = vadd.f32 %v778_v7, %v1294_v34  ;;  %v861_v13 = vpop.f32.mrf.mxu1 }
 0x115   :  { %v780_v14 = vpop.f32.mrf.mxu0 }
 0x116   :  { %678 = vst.msk [vmem:[%s1403_s3 + $0x50] sm:$0xff] %vm667_vm0, %v656_v10  ;;  %v604_v15 = vadd.f32 %v860_v12, %v484_v11  ;;  %v781_v16 = vadd.f32 %v780_v14, %v779_v9  ;;  %v862_v17 = vpop.f32.mrf.mxu1 }
 0x117   :  { %v782_v18 = vpop.f32.mrf.mxu0  ;;  %v863_v21 = vadd.f32 %v862_v17, %v861_v13 }
 0x118   :  { %v657_v19 = vmax.f32 %v604_v15, 0.0  ;;  %v489_v20 = vadd.f32 %v781_v16, %v1294_v34  ;;  %v864_v22 = vpop.f32.mrf.mxu1 }
 0x119   :  { %v783_v23 = vpop.f32.mrf.mxu0 }
 0x11a   :  { %679 = vst.msk [vmem:[%s1403_s3 + $0x58] sm:$0xff] %vm667_vm0, %v657_v19  ;;  %v609_v24 = vadd.f32 %v863_v21, %v489_v20  ;;  %v784_v25 = vadd.f32 %v783_v23, %v782_v18  ;;  %v865_v26 = vpop.f32.mrf.mxu1 }
 0x11b   :  { %v785_v27 = vpop.f32.mrf.mxu0  ;;  %v866_v30 = vadd.f32 %v865_v26, %v864_v22 }
 0x11c   :  { %v658_v28 = vmax.f32 %v609_v24, 0.0  ;;  %v492_v29 = vadd.f32 %v784_v25, %v1294_v34  ;;  %v867_v31 = vpop.f32.mrf.mxu1 }
 0x11d   :  { %v786_v32 = vpop.f32.mrf.mxu0 }
 0x11e   :  { %680 = vst.msk [vmem:[%s1403_s3 + $0x60] sm:$0xff] %vm667_vm0, %v658_v28  ;;  %v612_v33 = vadd.f32 %v866_v30, %v492_v29  ;;  %v787_v35 = vadd.f32 %v786_v32, %v785_v27  ;;  %v868_v36 = vpop.f32.mrf.mxu1 }
 0x11f   :  { %v788_v37 = vpop.f32.mrf.mxu0  ;;  %v869_v40 = vadd.f32 %v868_v36, %v867_v31 }
 0x120   :  { %v659_v38 = vmax.f32 %v612_v33, 0.0  ;;  %v497_v39 = vadd.f32 %v787_v35, %v1294_v34  ;;  %v870_v41 = vpop.f32.mrf.mxu1 }
 0x121   :  { %v789_v42 = vpop.f32.mrf.mxu0 }
 0x122   :  { %681 = vst.msk [vmem:[%s1403_s3 + $0x68] sm:$0xff] %vm667_vm0, %v659_v38  ;;  %v617_v43 = vadd.f32 %v869_v40, %v497_v39  ;;  %v790_v44 = vadd.f32 %v789_v42, %v788_v37  ;;  %v871_v45 = vpop.f32.mrf.mxu1 }
 0x123   :  { %v791_v46 = vpop.f32.mrf.mxu0  ;;  %v872_v49 = vadd.f32 %v871_v45, %v870_v41 }
 0x124   :  { %v660_v47 = vmax.f32 %v617_v43, 0.0  ;;  %v500_v48 = vadd.f32 %v790_v44, %v1294_v34  ;;  %v873_v50 = vpop.f32.mrf.mxu1 }
 0x125   :  { %v792_v51 = vpop.f32.mrf.mxu0 }
 0x126   :  { %682 = vst.msk [vmem:[%s1403_s3 + $0x70] sm:$0xff] %vm667_vm0, %v660_v47  ;;  %v620_v52 = vadd.f32 %v872_v49, %v500_v48  ;;  %v793_v53 = vadd.f32 %v792_v51, %v791_v46  ;;  %v874_v54 = vpop.f32.mrf.mxu1 }
 0x127   :  { %v794_v55 = vpop.f32.mrf.mxu0  ;;  %v875_v58 = vadd.f32 %v874_v54, %v873_v50 }
 0x128   :  { %v661_v56 = vmax.f32 %v620_v52, 0.0  ;;  %v505_v57 = vadd.f32 %v793_v53, %v1294_v34  ;;  %v876_v59 = vpop.f32.mrf.mxu1 }
 0x129   :  { %v795_v60 = vpop.f32.mrf.mxu0 }
 0x12a   :  { %683 = vst.msk [vmem:[%s1403_s3 + $0x78] sm:$0xff] %vm667_vm0, %v661_v56  ;;  %v625_v61 = vadd.f32 %v875_v58, %v505_v57  ;;  %v796_v62 = vadd.f32 %v795_v60, %v794_v55  ;;  %v877_v63 = vpop.f32.mrf.mxu1 }
 0x12b   :  { %v797_v0 = vpop.f32.mrf.mxu0  ;;  %v878_v3 = vadd.f32 %v877_v63, %v876_v59 }
 0x12c   :  { %v662_v1 = vmax.f32 %v625_v61, 0.0  ;;  %v508_v2 = vadd.f32 %v796_v62, %v1294_v34  ;;  %v879_v4 = vpop.f32.mrf.mxu1 }
 0x12d   :  { %v798_v5 = vpop.f32.mrf.mxu0 }
 0x12e   :  { %684 = vst.msk [vmem:[%s1403_s3 + $0x80] sm:$0xff] %vm667_vm0, %v662_v1  ;;  %v628_v6 = vadd.f32 %v878_v3, %v508_v2  ;;  %v799_v7 = vadd.f32 %v798_v5, %v797_v0  ;;  %v880_v8 = vpop.f32.mrf.mxu1 }
 0x12f   :  { %v800_v9 = vpop.f32.mrf.mxu0  ;;  %v881_v12 = vadd.f32 %v880_v8, %v879_v4 }
 0x130   :  { %v663_v10 = vmax.f32 %v628_v6, 0.0  ;;  %v513_v11 = vadd.f32 %v799_v7, %v1294_v34  ;;  %v882_v13 = vpop.f32.mrf.mxu1 }
 0x131   :  { %v801_v14 = vpop.f32.mrf.mxu0 }
 0x132   :  { %685 = vst.msk [vmem:[%s1403_s3 + $0x88] sm:$0xff] %vm667_vm0, %v663_v10  ;;  %v633_v15 = vadd.f32 %v881_v12, %v513_v11  ;;  %v802_v16 = vadd.f32 %v801_v14, %v800_v9  ;;  %v883_v17 = vpop.f32.mrf.mxu1 }
 0x133   :  { %v803_v18 = vpop.f32.mrf.mxu0  ;;  %v884_v21 = vadd.f32 %v883_v17, %v882_v13 }
 0x134   :  { %v664_v19 = vmax.f32 %v633_v15, 0.0  ;;  %v516_v20 = vadd.f32 %v802_v16, %v1294_v34  ;;  %v885_v22 = vpop.f32.mrf.mxu1 }
 0x135   :  { %v804_v23 = vpop.f32.mrf.mxu0 }
 0x136   :  { %686 = vst.msk [vmem:[%s1403_s3 + $0x90] sm:$0xff] %vm667_vm0, %v664_v19  ;;  %v636_v24 = vadd.f32 %v884_v21, %v516_v20  ;;  %v805_v25 = vadd.f32 %v804_v23, %v803_v18  ;;  %v886_v26 = vpop.f32.mrf.mxu1 }
 0x137   :  { %v806_v27 = vpop.f32.mrf.mxu0  ;;  %v887_v30 = vadd.f32 %v886_v26, %v885_v22 }
 0x138   :  { %v665_v28 = vmax.f32 %v636_v24, 0.0  ;;  %v521_v29 = vadd.f32 %v805_v25, %v1294_v34  ;;  %v888_v31 = vpop.f32.mrf.mxu1 }
 0x139   :  { %v807_v32 = vpop.f32.mrf.mxu0 }
 0x13a   :  { %687 = vst.msk [vmem:[%s1403_s3 + $0x98] sm:$0xff] %vm667_vm0, %v665_v28  ;;  %v641_v33 = vadd.f32 %v887_v30, %v521_v29  ;;  %v889_v35 = vpop.f32.mrf.mxu1 }
 0x13c   :  { %v666_v36 = vmax.f32 %v641_v33, 0.0 }
 0x13e   :  { %689 = vst.msk [vmem:[%s1403_s3 + $0xa0] sm:$0x3] %vm688_vm1, %v666_v36 }

// kernel: dqn_forward_pallas.6
= control target key start
LH: loop header
LB: loop body
LE: loop exit
PB: predicated region body
PF: predicated region fallthrough
CT: control target
= control target key end

     0   :  { %v980_v39 = vmov 0.0   ;;  %vm981_vm0 = vmmov 0   ;;  %vm410_vm1 = vcmask 523264   ;;  %vm721_vm2 = vcmask 517120   ;;  %s1475_s1 = inlined_call_operand.vmem [shape: bf16[576,64], index: 1, kind: input, shape index: {}]   ;;  %s1476_s0 = inlined_call_operand.vmem [shape: f32[98,576], index: 0, kind: input, shape index: {}]   ;;  %s1477_s2 = inlined_call_operand.vmem [shape: f32[1,64], index: 2, kind: input, shape index: {}]   ;;  %s1478_s3 = inlined_call_operand.vmem [shape: f32[98,64], index: 3, kind: output, shape index: {}]  }
   0x1   :  { %v944_v0 = vld [vmem:[%s1475_s1 + $0x78] sm:$0xff]   ;;  %v948_v4 = vld [vmem:[%s1475_s1 + $0x70] sm:$0xff]   ;;  %v952_v8 = vld [vmem:[%s1475_s1 + $0x68] sm:$0xff]  }
   0x2   :  { %v945_v1 = vld [vmem:[%s1475_s1 + $0xf8] sm:$0xff]   ;;  %771 = vmatprep.subr.bf16.mxu0 %v944_v0  ;;  %v949_v5 = vld [vmem:[%s1475_s1 + $0xf0] sm:$0xff]   ;;  %v953_v9 = vld [vmem:[%s1475_s1 + $0xe8] sm:$0xff]  }
   0x3   :  { %v946_v2 = vld [vmem:[%s1475_s1 + $0x38] sm:$0xff]   ;;  %829 = vmatprep.subr.bf16.mxu1 %v945_v1  ;;  %v950_v6 = vld [vmem:[%s1475_s1 + $0x30] sm:$0xff]   ;;  %v954_v10 = vld [vmem:[%s1475_s1 + $0x28] sm:$0xff]  }
   0x4   :  { %v947_v3 = vld [vmem:[%s1475_s1 + $0xb8] sm:$0xff]   ;;  %772 = vmatpush3.bf16.msra.mxu0 %v946_v2  ;;  %v951_v7 = vld [vmem:[%s1475_s1 + $0xb0] sm:$0xff]   ;;  %v955_v11 = vld [vmem:[%s1475_s1 + $0xa8] sm:$0xff]  }
   0x5   :  { %830 = vmatpush3.bf16.msra.mxu1 %v947_v3  ;;  %773 = vmatprep.subr.bf16.mxu0 %v948_v4  ;;  %v956_v12 = vld [vmem:[%s1475_s1 + $0x60] sm:$0xff]   ;;  %v960_v16 = vld [vmem:[%s1475_s1 + $0x58] sm:$0xff]   ;;  %v964_v20 = vld [vmem:[%s1475_s1 + $0x50] sm:$0xff]  }
   0x6   :  { %831 = vmatprep.subr.bf16.mxu1 %v949_v5  ;;  %v957_v13 = vld [vmem:[%s1475_s1 + $0xe0] sm:$0xff]   ;;  %v961_v17 = vld [vmem:[%s1475_s1 + $0xd8] sm:$0xff]   ;;  %v965_v21 = vld [vmem:[%s1475_s1 + $0xd0] sm:$0xff]  }
   0x7   :  { %v958_v14 = vld [vmem:[%s1475_s1 + $0x20] sm:$0xff]   ;;  %v962_v18 = vld [vmem:[%s1475_s1 + $0x18] sm:$0xff]   ;;  %v966_v22 = vld [vmem:[%s1475_s1 + $0x10] sm:$0xff]  }
   0x8   :  { %774 = vmatpush3.bf16.msra.mxu0 %v950_v6  ;;  %v959_v15 = vld [vmem:[%s1475_s1 + $0xa0] sm:$0xff]   ;;  %v963_v19 = vld [vmem:[%s1475_s1 + $0x98] sm:$0xff]   ;;  %v967_v23 = vld [vmem:[%s1475_s1 + $0x90] sm:$0xff]  }
   0x9   :  { %832 = vmatpush3.bf16.msra.mxu1 %v951_v7  ;;  %775 = vmatprep.subr.bf16.mxu0 %v952_v8  ;;  %v968_v24 = vld [vmem:[%s1475_s1 + $0x48] sm:$0xff]   ;;  %v972_v28 = vld [vmem:[%s1475_s1 + $0x40] sm:$0xff]   ;;  %v21_v33 = vld [vmem:[%s1476_s0 + $0x30] sm:$0xff] }
   0xa   :  { %833 = vmatprep.subr.bf16.mxu1 %v953_v9  ;;  %v969_v25 = vld [vmem:[%s1475_s1 + $0xc8] sm:$0xff]   ;;  %v973_v29 = vld [vmem:[%s1475_s1 + $0xc0] sm:$0xff]   ;;  %v18_v34 = vld [vmem:[%s1476_s0 + $0x18] sm:$0xff] }
   0xb   :  { %v970_v26 = vld [vmem:[%s1475_s1 + $0x8] sm:$0xff]   ;;  %v974_v30 = vld [vmem:[%s1475_s1] sm:$0xff]   ;;  %v17_v42 = vld [vmem:[%s1476_s0 + $0x10] sm:$0xff] }
   0xc   :  { %776 = vmatpush3.bf16.msra.mxu0 %v954_v10  ;;  %v971_v27 = vld [vmem:[%s1475_s1 + $0x88] sm:$0xff]   ;;  %v975_v31 = vld [vmem:[%s1475_s1 + $0x80] sm:$0xff]   ;;  %v22_v43 = vld [vmem:[%s1476_s0 + $0x38] sm:$0xff] }
   0xd   :  { %834 = vmatpush3.bf16.msra.mxu1 %v955_v11  ;;  %777 = vmatprep.subr.bf16.mxu0 %v956_v12  ;;  %v16_v32 = vld [vmem:[%s1476_s0 + $0x8] sm:$0xff]  ;;  %v23_v36 = vld [vmem:[%s1476_s0 + $0x40] sm:$0xff]  ;;  %v82_v44 = vpack.c.bf16 %v22_v43, %v17_v42  ;;  %v976_v45 = vld [vmem:[%s1475_s1 + $0x118] sm:$0xff]  }
   0xe   :  { %835 = vmatprep.subr.bf16.mxu1 %v957_v13  ;;  %v81_v35 = vpack.c.bf16 %v21_v33, %v16_v32  ;;  %v15_v37 = vld [vmem:[%s1476_s0] sm:$0xff]  ;;  %v20_v38 = vld [vmem:[%s1476_s0 + $0x28] sm:$0xff]  ;;  %v83_v40 = vpack.c.bf16 %v23_v36, %v18_v34  ;;  %v26_v46 = vld [vmem:[%s1476_s0 + $0x58] sm:$0xff] }
   0xf   :  { %v80_v41 = vpack.c.bf16 %v20_v38, %v15_v37  ;;  %v31_v47 = vld [vmem:[%s1476_s0 + $0x80] sm:$0xff]  ;;  %v28_v48 = vld [vmem:[%s1476_s0 + $0x68] sm:$0xff]  ;;  %v33_v49 = vld [vmem:[%s1476_s0 + $0x90] sm:$0xff] }
  0x10   :  { %778 = vmatpush3.bf16.msra.mxu0 %v958_v14  ;;  %464 = vmatprep.mubr.bf16.mxu0 %v81_v35  ;;  %v86_v50 = vpack.c.bf16 %v31_v47, %v26_v46  ;;  %v88_v51 = vpack.c.bf16 %v33_v49, %v28_v48  ;;  %v25_v52 = vld [vmem:[%s1476_s0 + $0x50] sm:$0xff]  ;;  %v30_v53 = vld [vmem:[%s1476_s0 + $0x78] sm:$0xff]  ;;  %v27_v54 = vld [vmem:[%s1476_s0 + $0x60] sm:$0xff] }
  0x11   :  { %836 = vmatpush3.bf16.msra.mxu1 %v959_v15  ;;  %779 = vmatprep.subr.bf16.mxu0 %v960_v16  ;;  %v32_v55 = vld [vmem:[%s1476_s0 + $0x88] sm:$0xff]  ;;  %v41_v57 = vld [vmem:[%s1476_s0 + $0xd0] sm:$0xff]  ;;  %v38_v58 = vld [vmem:[%s1476_s0 + $0xb8] sm:$0xff]  ;;  %v85_v60 = vpack.c.bf16 %v30_v53, %v25_v52 }
  0x12   :  { %837 = vmatprep.subr.bf16.mxu1 %v961_v17  ;;  %552 = vmatprep.mubr.bf16.mxu1 %v83_v40  ;;  %v36_v56 = vld [vmem:[%s1476_s0 + $0xa8] sm:$0xff]  ;;  %v43_v59 = vld [vmem:[%s1476_s0 + $0xe0] sm:$0xff]  ;;  %v977_v61 = vld [vmem:[%s1475_s1 + $0x110] sm:$0xff]   ;;  %v87_v62 = vpack.c.bf16 %v32_v55, %v27_v54 }
  0x13   :  { %v91_v63 = vpack.c.bf16 %v41_v57, %v36_v56  ;;  %v93_v0 = vpack.c.bf16 %v43_v59, %v38_v58  ;;  %v35_v1 = vld [vmem:[%s1476_s0 + $0xa0] sm:$0xff]  ;;  %v40_v2 = vld [vmem:[%s1476_s0 + $0xc8] sm:$0xff]  ;;  %v37_v3 = vld [vmem:[%s1476_s0 + $0xb0] sm:$0xff] }
  0x14   :  { %780 = vmatpush3.bf16.msra.mxu0 %v962_v18  ;;  %v978_v4 = vld [vmem:[%s1475_s1 + $0x108] sm:$0xff]   ;;  %v42_v5 = vld [vmem:[%s1476_s0 + $0xd8] sm:$0xff]  ;;  %v51_v7 = vld [vmem:[%s1476_s0 + $0x120] sm:$0xff]  ;;  %v90_v10 = vpack.c.bf16 %v40_v2, %v35_v1 }
  0x15   :  { %838 = vmatpush3.bf16.msra.mxu1 %v963_v19  ;;  %781 = vmatprep.subr.bf16.mxu0 %v964_v20  ;;  %v46_v6 = vld [vmem:[%s1476_s0 + $0xf8] sm:$0xff]  ;;  %v48_v8 = vld [vmem:[%s1476_s0 + $0x108] sm:$0xff]  ;;  %v53_v9 = vld [vmem:[%s1476_s0 + $0x130] sm:$0xff]  ;;  %v92_v11 = vpack.c.bf16 %v42_v5, %v37_v3 }
  0x16   :  { %839 = vmatprep.subr.bf16.mxu1 %v965_v21  ;;  %v96_v12 = vpack.c.bf16 %v51_v7, %v46_v6  ;;  %v98_v13 = vpack.c.bf16 %v53_v9, %v48_v8  ;;  %v979_v14 = vld [vmem:[%s1475_s1 + $0x100] sm:$0xff]   ;;  %v45_v15 = vld [vmem:[%s1476_s0 + $0xf0] sm:$0xff]  ;;  %v50_v16 = vld [vmem:[%s1476_s0 + $0x118] sm:$0xff] }
  0x17   :  { %v47_v17 = vld [vmem:[%s1476_s0 + $0x100] sm:$0xff]  ;;  %v52_v18 = vld [vmem:[%s1476_s0 + $0x128] sm:$0xff]  ;;  %v61_v20 = vld [vmem:[%s1476_s0 + $0x170] sm:$0xff] }
  0x18   :  { %782 = vmatpush3.bf16.msra.mxu0 %v966_v22  ;;  %v56_v19 = vld [vmem:[%s1476_s0 + $0x148] sm:$0xff]  ;;  %v58_v21 = vld [vmem:[%s1476_s0 + $0x158] sm:$0xff]  ;;  %v63_v22 = vld [vmem:[%s1476_s0 + $0x180] sm:$0xff] }
  0x19   :  { %840 = vmatpush3.bf16.msra.mxu1 %v967_v23  ;;  %783 = vmatprep.subr.bf16.mxu0 %v968_v24  ;;  %v95_v23 = vpack.c.bf16 %v50_v16, %v45_v15  ;;  %v97_v24 = vpack.c.bf16 %v52_v18, %v47_v17  ;;  %v71_v32 = vld [vmem:[%s1476_s0 + $0x1c0] sm:$0xff]  ;;  %v68_v33 = vld [vmem:[%s1476_s0 + $0x1a8] sm:$0xff]  ;;  %v73_v34 = vld [vmem:[%s1476_s0 + $0x1d0] sm:$0xff] }
  0x1a   :  { %841 = vmatprep.subr.bf16.mxu1 %v969_v25  ;;  %v101_v25 = vpack.c.bf16 %v61_v20, %v56_v19  ;;  %v108_v38 = vpack.c.bf16 %v73_v34, %v68_v33  ;;  %v65_v40 = vld [vmem:[%s1476_s0 + $0x190] sm:$0xff]  ;;  %v67_v42 = vld [vmem:[%s1476_s0 + $0x1a0] sm:$0xff]  ;;  %v72_v43 = vld [vmem:[%s1476_s0 + $0x1c8] sm:$0xff] }
  0x1b   :  { %v107_v47 = vpack.c.bf16 %v72_v43, %v67_v42  ;;  %v19_v54 = vld [vmem:[%s1476_s0 + $0x20] sm:$0xff]  ;;  %v24_v55 = vld [vmem:[%s1476_s0 + $0x48] sm:$0xff]  ;;  %v49_v7 = vld [vmem:[%s1476_s0 + $0x110] sm:$0xff] }
  0x1c   :  { %784 = vmatpush3.bf16.msra.mxu0 %v970_v26  ;;  %v103_v26 = vpack.c.bf16 %v63_v22, %v58_v21  ;;  %v59_v56 = vld [vmem:[%s1476_s0 + $0x160] sm:$0xff]  ;;  %v64_v57 = vld [vmem:[%s1476_s0 + $0x188] sm:$0xff]  ;;  %v84_v58 = vpack.c.bf16 %v24_v55, %v19_v54  ;;  %v54_v8 = vld [vmem:[%s1476_s0 + $0x138] sm:$0xff] }
  0x1d   :  { %842 = vmatpush3.bf16.msra.mxu1 %v971_v27  ;;  %785 = vmatprep.subr.bf16.mxu0 %v972_v28  ;;  %v55_v27 = vld [vmem:[%s1476_s0 + $0x140] sm:$0xff]  ;;  %v60_v28 = vld [vmem:[%s1476_s0 + $0x168] sm:$0xff]  ;;  %v104_v59 = vpack.c.bf16 %v64_v57, %v59_v56  ;;  %v99_v9 = vpack.c.bf16 %v54_v8, %v49_v7 }
  0x1e   :  { %843 = vmatprep.subr.bf16.mxu1 %v973_v29  ;;  %v57_v29 = vld [vmem:[%s1476_s0 + $0x150] sm:$0xff]  ;;  %v100_v35 = vpack.c.bf16 %v60_v28, %v55_v27  ;;  %v39_v2 = vld [vmem:[%s1476_s0 + $0xc0] sm:$0xff]  ;;  %v44_v3 = vld [vmem:[%s1476_s0 + $0xe8] sm:$0xff] }
  0x1f   :  { %v94_v5 = vpack.c.bf16 %v44_v3, %v39_v2 }
  0x20   :  { %786 = vmatpush3.bf16.msra.mxu0 %v974_v30  ;;  %v62_v30 = vld [vmem:[%s1476_s0 + $0x178] sm:$0xff] }
  0x21   :  { %844 = vmatpush3.bf16.msra.mxu1 %v975_v31  ;;  %898 = vmatprep.subr.bf16.mxu0 %v980_v39  ;;  %v66_v31 = vld [vmem:[%s1476_s0 + $0x198] sm:$0xff]  ;;  %v102_v36 = vpack.c.bf16 %v62_v30, %v57_v29 }
  0x22   :  { %934 = vmatprep.subr.bf16.mxu1 %v980_v39  ;;  %v106_v37 = vpack.c.bf16 %v71_v32, %v66_v31 }
  0x23   :  { %465 = vmatmul.mubr.bf16.vlgmr.msra.gmra.mxu0 %v80_v41  ;;  %v70_v41 = vld [vmem:[%s1476_s0 + $0x1b8] sm:$0xff] }
  0x24   :  { %553 = vmatmul.mubr.bf16.vlgmr.msra.gmra.mxu1 %v82_v44  ;;  %899 = vmatpush3.bf16.msra.mxu0 %v976_v45  ;;  %v76_v44 = vld [vmem:[%s1476_s0 + $0x1e8] sm:$0x3]  ;;  %v105_v46 = vpack.c.bf16 %v70_v41, %v65_v40 }
  0x25   :  { %938 = vmatpush3.bf16.msra.mxu1 %v976_v45  ;;  %900 = vmatprep.subr.bf16.mxu0 %v980_v39  ;;  %v78_v45 = vld [vmem:[%s1476_s0 + $0x1f8] sm:$0x3]  ;;  %v111_v48 = vpack.c.bf16 %v76_v44, %v76_v44 }
  0x26   :  { %472 = vmatprep.mubr.bf16.mxu0 %v86_v50  ;;  %560 = vmatprep.mubr.bf16.mxu1 %v88_v51  ;;  %v113_v49 = vpack.c.bf16 %v78_v45, %v78_v45  ;;  %v75_v50 = vld [vmem:[%s1476_s0 + $0x1e0] sm:$0x3]  ;;  %v77_v51 = vld [vmem:[%s1476_s0 + $0x1f0] sm:$0x3] }
  0x27   :  { %935 = vmatprep.subr.bf16.mxu1 %v980_v39  ;;  %v110_v52 = vpack.c.bf16 %v75_v50, %v75_v50  ;;  %v112_v53 = vpack.c.bf16 %v77_v51, %v77_v51 }
  0x28   :  { %901 = vmatpush3.bf16.msra.mxu0 %v977_v61 }
  0x29   :  { %939 = vmatpush3.bf16.msra.mxu1 %v977_v61  ;;  %902 = vmatprep.subr.bf16.mxu0 %v980_v39  ;;  %v34_v61 = vld [vmem:[%s1476_s0 + $0x98] sm:$0xff] }
  0x2a   :  { %936 = vmatprep.subr.bf16.mxu1 %v980_v39 }
  0x2b   :  { %473 = vmatmul.mubr.bf16.gmra.mxu0 %v85_v60  ;;  %v29_v60 = vld [vmem:[%s1476_s0 + $0x70] sm:$0xff] }
  0x2c   :  { %561 = vmatmul.mubr.bf16.gmra.mxu1 %v87_v62  ;;  %480 = vmatprep.mubr.bf16.mxu0 %v91_v63  ;;  %v69_v62 = vld [vmem:[%s1476_s0 + $0x1b0] sm:$0xff]  ;;  %v74_v63 = vld [vmem:[%s1476_s0 + $0x1d8] sm:$0xff] }
  0x2d   :  { %568 = vmatprep.mubr.bf16.mxu1 %v93_v0  ;;  %903 = vmatpush3.bf16.msra.mxu0 %v978_v4  ;;  %v89_v0 = vpack.c.bf16 %v34_v61, %v29_v60  ;;  %v109_v1 = vpack.c.bf16 %v74_v63, %v69_v62 }
  0x2e   :  { %940 = vmatpush3.bf16.msra.mxu1 %v978_v4  ;;  %904 = vmatprep.subr.bf16.mxu0 %v980_v39  ;;  %v79_v4 = vld [vmem:[%s1476_s0 + $0x200] sm:$0x3] }
  0x2f   :  { %937 = vmatprep.subr.bf16.mxu1 %v980_v39  ;;  %v114_v6 = vpack.c.bf16 %v79_v4, %v79_v4 }
  0x31   :  { %905 = vmatpush3.bf16.msra.mxu0 %v979_v14 }
  0x32   :  { %941 = vmatpush3.bf16.msra.mxu1 %v979_v14 }
  0x33   :  { %481 = vmatmul.mubr.bf16.gmra.mxu0 %v90_v10 }
  0x34   :  { %569 = vmatmul.mubr.bf16.gmra.mxu1 %v92_v11  ;;  %488 = vmatprep.mubr.bf16.mxu0 %v96_v12 }
  0x35   :  { %576 = vmatprep.mubr.bf16.mxu1 %v98_v13 }
  0x3b   :  { %489 = vmatmul.mubr.bf16.gmra.mxu0 %v95_v23 }
  0x3c   :  { %577 = vmatmul.mubr.bf16.gmra.mxu1 %v97_v24  ;;  %496 = vmatprep.mubr.bf16.mxu0 %v101_v25 }
  0x3d   :  { %584 = vmatprep.mubr.bf16.mxu1 %v103_v26 }
  0x43   :  { %497 = vmatmul.mubr.bf16.gmra.mxu0 %v100_v35 }
  0x44   :  { %585 = vmatmul.mubr.bf16.gmra.mxu1 %v102_v36  ;;  %504 = vmatprep.mubr.bf16.mxu0 %v106_v37 }
  0x45   :  { %592 = vmatprep.mubr.bf16.mxu1 %v108_v38 }
  0x4b   :  { %505 = vmatmul.mubr.bf16.gmra.mxu0 %v105_v46 }
  0x4c   :  { %593 = vmatmul.mubr.bf16.gmra.mxu1 %v107_v47  ;;  %512 = vmatprep.mubr.bf16.mxu0 %v111_v48 }
  0x4d   :  { %600 = vmatprep.mubr.bf16.mxu1 %v113_v49 }
  0x53   :  { %513 = vmatmul.mubr.bf16.gmra.mxu0 %v110_v52 }
  0x54   :  { %601 = vmatmul.mubr.bf16.gmra.mxu1 %v112_v53  ;;  %906 = vmatprep.mubr.msk.bf16.mxu0 %vm981_vm0, %v980_v39 }
  0x55   :  { %922 = vmatprep.mubr.msk.bf16.mxu1 %vm981_vm0, %v980_v39 }
  0x5b   :  { %907 = vmatmul.mubr.msk.bf16.vlgmr.msra.gmra.mxu0 %vm410_vm1, %v84_v58 }
  0x5c   :  { %923 = vmatmul.mubr.msk.bf16.vlgmr.msra.gmra.mxu1 %vm410_vm1, %v104_v59  ;;  %910 = vmatprep.mubr.msk.bf16.mxu0 %vm981_vm0, %v980_v39  ;;  %v1381_v59 = vld [vmem:[%s1477_s2] ss:$0 sm:$0xff] }
  0x5d   :  { %926 = vmatprep.mubr.msk.bf16.mxu1 %vm981_vm0, %v980_v39 }
  0x63   :  { %911 = vmatmul.mubr.msk.bf16.gmra.mxu0 %vm410_vm1, %v89_v0 }
  0x64   :  { %927 = vmatmul.mubr.msk.bf16.gmra.mxu1 %vm410_vm1, %v109_v1  ;;  %914 = vmatprep.mubr.msk.bf16.mxu0 %vm981_vm0, %v980_v39 }
  0x65   :  { %930 = vmatprep.mubr.msk.bf16.mxu1 %vm981_vm0, %v980_v39 }
  0x6b   :  { %915 = vmatmul.mubr.msk.bf16.gmra.mxu0 %vm410_vm1, %v94_v5 }
  0x6c   :  { %931 = vmatmul.mubr.msk.bf16.gmra.mxu1 %vm410_vm1, %v114_v6  ;;  %918 = vmatprep.mubr.msk.bf16.mxu0 %vm981_vm0, %v980_v39 }
  0x73   :  { %919 = vmatmul.mubr.msk.bf16.gmra.mxu0 %vm410_vm1, %v99_v9 }
  0xe3   :  { %v787_v10 = vpop.f32.mrf.mxu0 }
  0xe4   :  { %v845_v11 = vpop.f32.mrf.mxu1 }
  0xe5   :  { %v788_v12 = vpop.f32.mrf.mxu0 }
  0xe6   :  { %v846_v13 = vpop.f32.mrf.mxu1  ;;  %v789_v57 = vadd.f32 %v788_v12, %v787_v10 }
  0xe7   :  { %v790_v14 = vpop.f32.mrf.mxu0  ;;  %v847_v2 = vadd.f32 %v846_v13, %v845_v11 }
  0xe8   :  { %v848_v15 = vpop.f32.mrf.mxu1  ;;  %v467_v1 = vadd.f32 %v789_v57, %v1381_v59 }
  0xe9   :  { %v791_v16 = vpop.f32.mrf.mxu0 }
  0xea   :  { %v849_v17 = vpop.f32.mrf.mxu1  ;;  %v792_v63 = vadd.f32 %v791_v16, %v790_v14  ;;  %v555_v14 = vadd.f32 %v847_v2, %v467_v1 }
  0xeb   :  { %v793_v39 = vpop.f32.mrf.mxu0  ;;  %v850_v10 = vadd.f32 %v849_v17, %v848_v15 }
  0xec   :  { %v1334_v18 = vpop.f32.mrf.mxu1  ;;  %v470_v9 = vadd.f32 %v792_v63, %v1381_v59 }
  0xed   :  { %v794_v19 = vpop.f32.mrf.mxu0 }
  0xee   :  { %v1336_v20 = vpop.f32.mrf.mxu1  ;;  %v795_v12 = vadd.f32 %v794_v19, %v793_v39  ;;  %v558_v15 = vadd.f32 %v850_v10, %v470_v9 }
  0xef   :  { %v1338_v21 = vpop.f32.mrf.mxu0 }
  0xf0   :  { %v1340_v22 = vpop.f32.mrf.mxu1 }
  0xf1   :  { %v1342_v23 = vpop.f32.mrf.mxu0 }
  0xf2   :  { %v1344_v24 = vpop.f32.mrf.mxu1  ;;  %v798_v17 = vadd.f32 %v1342_v23, %v1338_v21 }
  0xf3   :  { %v1346_v25 = vpop.f32.mrf.mxu0 }
  0xf4   :  { %v1348_v26 = vpop.f32.mrf.mxu1 }
  0xf5   :  { %v1350_v27 = vpop.f32.mrf.mxu0 }
  0xf6   :  { %v1352_v28 = vpop.f32.mrf.mxu1 }
  0xf7   :  { %v1354_v29 = vpop.f32.mrf.mxu0 }
  0xf8   :  { %v1356_v30 = vpop.f32.mrf.mxu1 }
  0xf9   :  { %v1358_v31 = vpop.f32.mrf.mxu0 }
  0xfa   :  { %v1360_v32 = vpop.f32.mrf.mxu1 }
  0xfb   :  { %v1362_v33 = vpop.f32.mrf.mxu0 }
  0xfc   :  { %v1364_v34 = vpop.f32.mrf.mxu1 }
  0xfd   :  { %v1366_v35 = vpop.f32.mrf.mxu0 }
  0xfe   :  { %v1368_v36 = vpop.f32.mrf.mxu1 }
  0xff   :  { %v1370_v37 = vpop.f32.mrf.mxu0 }
 0x100   :  { %v1372_v38 = vpop.f32.mrf.mxu1 }
 0x101   :  { %1479 = vst [vmem:[#allocation2_spill] sm:$0xff] %v1372_v38  ;;  %v1374_v40 = vpop.f32.mrf.mxu0 }
 0x102   :  { %1480 = vst [vmem:[#allocation3_spill] sm:$0xff] %v1374_v40  ;;  %v1376_v41 = vpop.f32.mrf.mxu1 }
 0x103   :  { %1481 = vst [vmem:[#allocation4_spill] sm:$0xff] %v1376_v41  ;;  %v811_v42 = vpop.f32.mrf.mxu0 }
 0x104   :  { %v869_v43 = vpop.f32.mrf.mxu1 }
 0x105   :  { %v812_v44 = vpop.f32.mrf.mxu0 }
 0x106   :  { %v870_v45 = vpop.f32.mrf.mxu1  ;;  %v813_v60 = vadd.f32 %v812_v44, %v811_v42 }
 0x107   :  { %v814_v46 = vpop.f32.mrf.mxu0  ;;  %v871_v5 = vadd.f32 %v870_v45, %v869_v43  ;;  %v475_v43 = vadd.f32 %v795_v12, %v1381_v59  ;;  %v853_v45 = vadd.f32 %v1336_v20, %v1334_v18 }
 0x108   :  { %v872_v47 = vpop.f32.mrf.mxu1  ;;  %v499_v4 = vadd.f32 %v813_v60, %v1381_v59 }
 0x109   :  { %v815_v48 = vpop.f32.mrf.mxu0 }
 0x10a   :  { %v873_v49 = vpop.f32.mrf.mxu1  ;;  %v816_v6 = vadd.f32 %v815_v48, %v814_v46  ;;  %v587_v13 = vadd.f32 %v871_v5, %v499_v4 }
 0x10b   :  { %v817_v50 = vpop.f32.mrf.mxu0  ;;  %v874_v57 = vadd.f32 %v873_v49, %v872_v47 }
 0x10c   :  { %v875_v51 = vpop.f32.mrf.mxu1  ;;  %v502_v16 = vadd.f32 %v816_v6, %v1381_v59 }
 0x10d   :  { %v818_v52 = vpop.f32.mrf.mxu0 }
 0x10e   :  { %v876_v53 = vpop.f32.mrf.mxu1  ;;  %v819_v44 = vadd.f32 %v818_v52, %v817_v50  ;;  %v590_v60 = vadd.f32 %v874_v57, %v502_v16 }
 0x10f   :  { %v820_v54 = vpop.f32.mrf.mxu0  ;;  %v877_v19 = vadd.f32 %v876_v53, %v875_v51  ;;  %v478_v51 = vadd.f32 %v798_v17, %v1381_v59  ;;  %v801_v53 = vadd.f32 %v1350_v27, %v1346_v25  ;;  %v1482_v17 = vld [vmem:[#allocation3_spill] sm:$0xff] }
 0x110   :  { %v878_v55 = vpop.f32.mrf.mxu1  ;;  %v507_v39 = vadd.f32 %v819_v44, %v1381_v59 }
 0x111   :  { %v821_v56 = vpop.f32.mrf.mxu0 }
 0x112   :  { %v879_v58 = vpop.f32.mrf.mxu1  ;;  %v822_v49 = vadd.f32 %v821_v56, %v820_v54  ;;  %v595_v63 = vadd.f32 %v877_v19, %v507_v39  ;;  %v810_v39 = vadd.f32 %v1482_v17, %v1370_v37  ;;  %v1484_v37 = vld [vmem:[#allocation4_spill] sm:$0xff] }
 0x113   :  { %v823_v61 = vpop.f32.mrf.mxu0  ;;  %v880_v2 = vadd.f32 %v879_v58, %v878_v55  ;;  %v483_v55 = vadd.f32 %v801_v53, %v1381_v59  ;;  %v859_v58 = vadd.f32 %v1352_v28, %v1348_v26  ;;  %v862_v28 = vadd.f32 %v1360_v32, %v1356_v30 }
 0x114   :  { %v1383_v62 = vpop.f32.mrf.mxu1  ;;  %v510_v1 = vadd.f32 %v822_v49, %v1381_v59 }
 0x115   :  { %v824_v0 = vpop.f32.mrf.mxu0 }
 0x116   :  { %v1386_v3 = vpop.f32.mrf.mxu1  ;;  %v598_v12 = vadd.f32 %v880_v2, %v510_v1 }
 0x117   :  { %v826_v7 = vpop.f32.mrf.mxu0 }
 0x118   :  { %v884_v8 = vpop.f32.mrf.mxu1  ;;  %v804_v7 = vadd.f32 %v1358_v31, %v1354_v29  ;;  %v883_v29 = vadd.f32 %v1386_v3, %v1383_v62 }
 0x119   :  { %v827_v42 = vpop.f32.mrf.mxu0 }
 0x11a   :  { %v885_v41 = vpop.f32.mrf.mxu1  ;;  %v486_v26 = vadd.f32 %v804_v7, %v1381_v59 }
 0x11b   :  { %v642_v11 = vpop.f32.mrf.mxu0 }
 0x11c   :  { %v643_v38 = vadd.f32 %v642_v11, %v555_v14  ;;  %v674_v40 = vpop.f32.mrf.mxu1  ;;  %v807_v14 = vadd.f32 %v1366_v35, %v1362_v33  ;;  %v571_v11 = vadd.f32 %v859_v58, %v483_v55  ;;  %v574_v35 = vadd.f32 %v862_v28, %v486_v26 }
 0x11d   :  { %v675_v46 = vadd.f32 %v674_v40, %v587_v13  ;;  %v908_v48 = vpop.f32.mrf.mxu0  ;;  %v856_v40 = vadd.f32 %v1344_v24, %v1340_v22  ;;  %v825_v22 = vadd.f32 %v824_v0, %v823_v61 }
 0x11e   :  { %v696_v41 = vmax.f32 %v643_v38, 0.0  ;;  %v924_v47 = vpop.f32.mrf.mxu1  ;;  %v563_v38 = vadd.f32 %v853_v45, %v475_v43  ;;  %v491_v48 = vadd.f32 %v807_v14, %v1381_v59 }
 0x11f   :  { %v704_v50 = vmax.f32 %v675_v46, 0.0  ;;  %v645_v52 = vpop.f32.mrf.mxu0  ;;  %v566_v8 = vadd.f32 %v856_v40, %v478_v51  ;;  %v515_v9 = vadd.f32 %v825_v22, %v1381_v59 }
 0x120   :  { %709 = vst.msk [vmem:[%s1478_s3] sm:$0xff] %vm410_vm1, %v696_v41  ;;  %v646_v18 = vadd.f32 %v645_v52, %v558_v15  ;;  %v677_v20 = vpop.f32.mrf.mxu1  ;;  %v865_v15 = vadd.f32 %v1368_v36, %v1364_v34  ;;  %v494_v34 = vadd.f32 %v810_v39, %v1381_v59  ;;  %v1483_v36 = vld [vmem:[#allocation2_spill] sm:$0xff] }
 0x121   :  { %717 = vst.msk [vmem:[%s1478_s3 + $0x40] sm:$0xff] %vm410_vm1, %v704_v50  ;;  %v678_v21 = vadd.f32 %v677_v20, %v590_v60  ;;  %v909_v23 = vpop.f32.mrf.mxu0  ;;  %v603_v45 = vadd.f32 %v883_v29, %v515_v9 }
 0x122   :  { %v697_v54 = vmax.f32 %v646_v18, 0.0  ;;  %v925_v56 = vpop.f32.mrf.mxu1  ;;  %v868_v18 = vadd.f32 %v1484_v37, %v1483_v36  ;;  %v579_v40 = vadd.f32 %v865_v15, %v491_v48 }
 0x123   :  { %v705_v24 = vmax.f32 %v678_v21, 0.0  ;;  %v650_v4 = vpop.f32.mrf.mxu0 }
 0x124   :  { %710 = vst.msk [vmem:[%s1478_s3 + $0x8] sm:$0xff] %vm410_vm1, %v697_v54  ;;  %v651_v5 = vadd.f32 %v650_v4, %v563_v38  ;;  %v682_v6 = vpop.f32.mrf.mxu1  ;;  %v582_v54 = vadd.f32 %v868_v18, %v494_v34 }
 0x125   :  { %718 = vst.msk [vmem:[%s1478_s3 + $0x48] sm:$0xff] %vm410_vm1, %v705_v24  ;;  %v683_v25 = vadd.f32 %v682_v6, %v595_v63  ;;  %v912_v27 = vpop.f32.mrf.mxu0 }
 0x126   :  { %v698_v61 = vmax.f32 %v651_v5, 0.0  ;;  %v928_v0 = vpop.f32.mrf.mxu1 }
 0x127   :  { %v706_v31 = vmax.f32 %v683_v25, 0.0  ;;  %v653_v10 = vpop.f32.mrf.mxu0 }
 0x128   :  { %711 = vst.msk [vmem:[%s1478_s3 + $0x10] sm:$0xff] %vm410_vm1, %v698_v61  ;;  %v654_v42 = vadd.f32 %v653_v10, %v566_v8  ;;  %v685_v44 = vpop.f32.mrf.mxu1 }
 0x129   :  { %719 = vst.msk [vmem:[%s1478_s3 + $0x50] sm:$0xff] %vm410_vm1, %v706_v31  ;;  %v686_v62 = vadd.f32 %v685_v44, %v598_v12  ;;  %v913_v3 = vpop.f32.mrf.mxu0 }
 0x12a   :  { %v699_v16 = vmax.f32 %v654_v42, 0.0  ;;  %v929_v57 = vpop.f32.mrf.mxu1 }
 0x12b   :  { %v707_v13 = vmax.f32 %v686_v62, 0.0  ;;  %v658_v43 = vpop.f32.mrf.mxu0 }
 0x12c   :  { %712 = vst.msk [vmem:[%s1478_s3 + $0x18] sm:$0xff] %vm410_vm1, %v699_v16  ;;  %v659_v30 = vadd.f32 %v658_v43, %v571_v11  ;;  %v690_v32 = vpop.f32.mrf.mxu1 }
 0x12d   :  { %720 = vst.msk [vmem:[%s1478_s3 + $0x58] sm:$0xff] %vm410_vm1, %v707_v13  ;;  %v691_v46 = vadd.f32 %v690_v32, %v603_v45  ;;  %v916_v33 = vpop.f32.mrf.mxu0 }
 0x12e   :  { %v700_v19 = vmax.f32 %v659_v30, 0.0  ;;  %v932_v41 = vpop.f32.mrf.mxu1 }
 0x12f   :  { %v708_v47 = vmax.f32 %v691_v46, 0.0  ;;  %v661_v49 = vpop.f32.mrf.mxu0 }
 0x130   :  { %713 = vst.msk [vmem:[%s1478_s3 + $0x20] sm:$0xff] %vm410_vm1, %v700_v19  ;;  %v662_v50 = vadd.f32 %v661_v49, %v574_v35  ;;  %v693_v52 = vpop.f32.mrf.mxu1 }
 0x131   :  { %722 = vst.msk [vmem:[%s1478_s3 + $0x60] sm:$0x3] %vm721_vm2, %v708_v47  ;;  %v917_v60 = vpop.f32.mrf.mxu0 }
 0x132   :  { %v701_v20 = vmax.f32 %v662_v50, 0.0  ;;  %v933_v21 = vpop.f32.mrf.mxu1 }
 0x133   :  { %v666_v23 = vpop.f32.mrf.mxu0 }
 0x134   :  { %714 = vst.msk [vmem:[%s1478_s3 + $0x28] sm:$0xff] %vm410_vm1, %v701_v20  ;;  %v667_v38 = vadd.f32 %v666_v23, %v579_v40 }
 0x135   :  { %v920_v51 = vpop.f32.mrf.mxu0 }
 0x136   :  { %v702_v53 = vmax.f32 %v667_v38, 0.0 }
 0x137   :  { %v669_v56 = vpop.f32.mrf.mxu0 }
 0x138   :  { %715 = vst.msk [vmem:[%s1478_s3 + $0x30] sm:$0xff] %vm410_vm1, %v702_v53  ;;  %v670_v59 = vadd.f32 %v669_v56, %v582_v54 }
 0x139   :  { %v921_v63 = vpop.f32.mrf.mxu0 }
 0x13a   :  { %v703_v1 = vmax.f32 %v670_v59, 0.0 }
 0x13c   :  { %716 = vst.msk [vmem:[%s1478_s3 + $0x38] sm:$0xff] %vm410_vm1, %v703_v1 }

// kernel: dqn_forward_pallas.7
= control target key start
LH: loop header
LB: loop body
LE: loop exit
PB: predicated region body
PF: predicated region fallthrough
CT: control target
= control target key end

     0   :  { %10 = vsyncpa [#allocation4], 0  ;;  %s2597_s18 = smov 0   ;;  %s2935_s0 = inlined_call_operand.vmem [shape: f32[2,3200], index: 0, kind: input, shape index: {}]   ;;  %s2936_s1 = inlined_call_operand.vmem [shape: bf16[3200,512], index: 1, kind: input, shape index: {}]   ;;  %s2937_s2 = inlined_call_operand.vmem [shape: f32[1,512], index: 2, kind: input, shape index: {}]   ;;  %s2938_s3 = inlined_call_operand.vmem [shape: bf16[512,128], index: 3, kind: input, shape index: {}]   ;;  %s2939_s4 = inlined_call_operand.vmem [shape: f32[1,128], index: 4, kind: input, shape index: {}]   ;;  %s2940_s5 = inlined_call_operand.hbm [shape: f32[2,128], index: 5, kind: output, shape index: {}]  }
   0x1 LB: > { %s2603_s19 = sadd.s32 4294967295, %s2561_s18   ;;  %p1987_p0 = scmp.ge.s32.totalorder %s2561_s18, 1  ;;  %s2561_s18 = sphi %s2597_s18, %s16_s18  }
   0x2   : > { %p196_p1 = scmp.lt.s32.totalorder %s2561_s18, 6 }
   0x4   : > { %p197_p2 = pnand %p1987_p0, %p196_p1 }
   0x5   : > { %s225_s20 = smul.u32 (!%p197_p2), 5, %s2603_s19  ;;  %p1991_p5 = scmp.ne.s32.totalorder (!%p197_p2), %s2603_s19, 0 }
   0x6   : > { %200 = sbr.rel (%p197_p2) target bundleno = 641 (0x281), region = 40 }
   0x7   : > { %s231_s21 = smul.u32 (!%p197_p2), 80, %s2603_s19  ;;  %p226_p3 = scmp.lt.s32.totalorder (!%p197_p2), %s225_s20, 24 }
   0x9   : > { %p232_p4 = scmp.lt.s32.totalorder (!%p197_p2), %s231_s21, 399 }
   0xb   : > { %s2942_s20 = smov (!%p226_p3, %s225_s20), 24  ;;  %s2944_s21 = smov (!%p232_p4, %s231_s21), 399 }
   0xc   : > { %s1988_s22 = sshll.u32 %s2942_s20, 1  ;;  %s2191_s26 = sshll.u32 %s2944_s21, 4 }
   0xd   : > { %s2612_s25 = scalar_lea.vmem %s2935_s0, %s1988_s22  ;;  %s2617_s29 = scalar_lea.vmem %s2936_s1, %s2191_s26 }
   0xe   : > { %242 = sbr.rel (%p1991_p5) target bundleno = 21 (0x15), region = 44 }
  0x13   : > { %v2563_v0 = vmov 0.0  }
  0x14   : > { %243 = vst [vmem:[#allocation2] sm:$0xff] %v2563_v0 }
  0x15 PF: > { %v2254_v1 = vld [vmem:[%s2617_s29 + $0xe4] ss:$16 sps:$4 sm:$0xff]   ;;  %v2258_v3 = vld [vmem:[%s2617_s29 + $0xe0] ss:$16 sps:$4 sm:$0xff]   ;;  %v2564_v37 = vmov 1983009808   ;;  %v253_v39 = vlaneseq }
  0x16   : > { %v2256_v2 = vld [vmem:[%s2617_s29 + $0x2e4] ss:$16 sps:$4 sm:$0xff]   ;;  %1243 = vmatprep.subr.bf16.mxu0 %v2254_v1  ;;  %v2259_v4 = vld [vmem:[%s2617_s29 + $0x2e0] ss:$16 sps:$4 sm:$0xff]   ;;  %v251_v38 = vunpack.c.l.s4 %v2564_v37  ;;  %v2378_v37 = vld [vmem:[%s2617_s29 + $0x68] ss:$16 sps:$4 sm:$0xff]  }
  0x17   : > { %1284 = vmatprep.subr.bf16.mxu1 %v2256_v2  ;;  %v2260_v5 = vld [vmem:[%s2617_s29 + $0xc4] ss:$16 sps:$4 sm:$0xff]   ;;  %1244 = vmatpush1.bf16.msra.mxu0 %v2258_v3  ;;  %v2264_v7 = vld [vmem:[%s2617_s29 + $0xc0] ss:$16 sps:$4 sm:$0xff]   ;;  %v2659_v44 = vshrl.u32 %v253_v39, 7  ;;  %p2153_p6 = scmp.ne.s32.totalorder %s2603_s19, 4 }
  0x18   : > { %1285 = vmatpush1.bf16.msra.mxu1 %v2259_v4  ;;  %v2262_v6 = vld [vmem:[%s2617_s29 + $0x2c4] ss:$16 sps:$4 sm:$0xff]   ;;  %1245 = vmatprep.subr.bf16.mxu0 %v2260_v5  ;;  %v2265_v8 = vld [vmem:[%s2617_s29 + $0x2c0] ss:$16 sps:$4 sm:$0xff]   ;;  %v252_v43 = vunpack.c.0.s8 %v251_v38  ;;  %v2386_v39 = vld [vmem:[%s2617_s29 + $0x4c] ss:$16 sps:$4 sm:$0xff]  }
  0x19   : > { %1286 = vmatprep.subr.bf16.mxu1 %v2262_v6  ;;  %v2266_v9 = vld [vmem:[%s2617_s29 + $0xa4] ss:$16 sps:$4 sm:$0xff]   ;;  %v2270_v11 = vld [vmem:[%s2617_s29 + $0xa0] ss:$16 sps:$4 sm:$0xff]  }
  0x1a   : > { %v2268_v10 = vld [vmem:[%s2617_s29 + $0x2a4] ss:$16 sps:$4 sm:$0xff]   ;;  %v2271_v12 = vld [vmem:[%s2617_s29 + $0x2a0] ss:$16 sps:$4 sm:$0xff]   ;;  %v2667_v50 = vsub.s32 %v252_v43, %v2659_v44  ;;  %v2392_v43 = vld [vmem:[%s2617_s29 + $0x2c] ss:$16 sps:$4 sm:$0xff]  }
  0x1b   : > { %1246 = vmatpush1.bf16.msra.mxu0 %v2264_v7  ;;  %v2272_v13 = vld [vmem:[%s2617_s29 + $0x84] ss:$16 sps:$4 sm:$0xff]   ;;  %v2276_v15 = vld [vmem:[%s2617_s29 + $0x80] ss:$16 sps:$4 sm:$0xff]  }
  0x1c   : > { %1287 = vmatpush1.bf16.msra.mxu1 %v2265_v8  ;;  %1247 = vmatprep.subr.bf16.mxu0 %v2266_v9  ;;  %v2274_v14 = vld [vmem:[%s2617_s29 + $0x284] ss:$16 sps:$4 sm:$0xff]   ;;  %v2277_v16 = vld [vmem:[%s2617_s29 + $0x280] ss:$16 sps:$4 sm:$0xff]  }
  0x1d   : > { %1288 = vmatprep.subr.bf16.mxu1 %v2268_v10  ;;  %v2278_v17 = vld [vmem:[%s2617_s29 + $0x64] ss:$16 sps:$4 sm:$0xff]   ;;  %v2282_v19 = vld [vmem:[%s2617_s29 + $0x60] ss:$16 sps:$4 sm:$0xff]  }
  0x1e   : > { %v2280_v18 = vld [vmem:[%s2617_s29 + $0x264] ss:$16 sps:$4 sm:$0xff]   ;;  %v2283_v20 = vld [vmem:[%s2617_s29 + $0x260] ss:$16 sps:$4 sm:$0xff]  }
  0x1f   : > { %1248 = vmatpush1.bf16.msra.mxu0 %v2270_v11  ;;  %v2284_v21 = vld [vmem:[%s2617_s29 + $0x44] ss:$16 sps:$4 sm:$0xff]   ;;  %v2288_v23 = vld [vmem:[%s2617_s29 + $0x40] ss:$16 sps:$4 sm:$0xff]  }
  0x20   : > { %1289 = vmatpush1.bf16.msra.mxu1 %v2271_v12  ;;  %1249 = vmatprep.subr.bf16.mxu0 %v2272_v13  ;;  %v2286_v22 = vld [vmem:[%s2617_s29 + $0x244] ss:$16 sps:$4 sm:$0xff]   ;;  %v2289_v24 = vld [vmem:[%s2617_s29 + $0x240] ss:$16 sps:$4 sm:$0xff]  }
  0x21   : > { %1290 = vmatprep.subr.bf16.mxu1 %v2274_v14  ;;  %v2290_v25 = vld [vmem:[%s2617_s29 + $0x24] ss:$16 sps:$4 sm:$0xff]   ;;  %v2294_v27 = vld [vmem:[%s2617_s29 + $0x20] ss:$16 sps:$4 sm:$0xff]  }
  0x22   : > { %v2292_v26 = vld [vmem:[%s2617_s29 + $0x224] ss:$16 sps:$4 sm:$0xff]   ;;  %v2295_v28 = vld [vmem:[%s2617_s29 + $0x220] ss:$16 sps:$4 sm:$0xff]  }
  0x23   : > { %1250 = vmatpush1.bf16.msra.mxu0 %v2276_v15  ;;  %v2296_v29 = vld [vmem:[%s2617_s29 + $0x4] ss:$16 sps:$4 sm:$0xff]   ;;  %v2300_v31 = vld [vmem:[%s2617_s29] ss:$16 sps:$4 sm:$0xff]  }
  0x24   : > { %1291 = vmatpush1.bf16.msra.mxu1 %v2277_v16  ;;  %1251 = vmatprep.subr.bf16.mxu0 %v2278_v17  ;;  %v2298_v30 = vld [vmem:[%s2617_s29 + $0x204] ss:$16 sps:$4 sm:$0xff]   ;;  %v2301_v32 = vld [vmem:[%s2617_s29 + $0x200] ss:$16 sps:$4 sm:$0xff]   ;;  %v2356_v16 = vld [vmem:[%s2617_s29 + $0xec] ss:$16 sps:$4 sm:$0xff]  }
  0x25   : > { %1292 = vmatprep.subr.bf16.mxu1 %v2280_v18  ;;  %v2302_v33 = vld [vmem:[%s2617_s29 + $0x1e4] ss:$16 sps:$4 sm:$0xff]   ;;  %v2306_v35 = vld [vmem:[%s2617_s29 + $0x1e0] ss:$16 sps:$4 sm:$0xff]  }
  0x26   : > { %v2304_v34 = vld [vmem:[%s2617_s29 + $0x3e4] ss:$16 sps:$4 sm:$0xff]   ;;  %v2307_v36 = vld [vmem:[%s2617_s29 + $0x3e0] ss:$16 sps:$4 sm:$0xff]  }
  0x27   : > { %1252 = vmatpush1.bf16.msra.mxu0 %v2282_v19  ;;  %v2308_v40 = vld [vmem:[%s2617_s29 + $0x1c4] ss:$16 sps:$4 sm:$0xff]   ;;  %v2312_v42 = vld [vmem:[%s2617_s29 + $0x1c0] ss:$16 sps:$4 sm:$0xff]  }
  0x28   : > { %1293 = vmatpush1.bf16.msra.mxu1 %v2283_v20  ;;  %1253 = vmatprep.subr.bf16.mxu0 %v2284_v21  ;;  %v2310_v41 = vld [vmem:[%s2617_s29 + $0x3c4] ss:$16 sps:$4 sm:$0xff]   ;;  %v2313_v45 = vld [vmem:[%s2617_s29 + $0x3c0] ss:$16 sps:$4 sm:$0xff]   ;;  %v2354_v20 = vld [vmem:[%s2617_s29 + $0xe8] ss:$16 sps:$4 sm:$0xff]  }
  0x29   : > { %1294 = vmatprep.subr.bf16.mxu1 %v2286_v22  ;;  %v2314_v46 = vld [vmem:[%s2617_s29 + $0x1a4] ss:$16 sps:$4 sm:$0xff]   ;;  %v2318_v48 = vld [vmem:[%s2617_s29 + $0x1a0] ss:$16 sps:$4 sm:$0xff]   ;;  %v2362_v22 = vld [vmem:[%s2617_s29 + $0xcc] ss:$16 sps:$4 sm:$0xff]  }
  0x2a   : > { %v2316_v47 = vld [vmem:[%s2617_s29 + $0x3a4] ss:$16 sps:$4 sm:$0xff]   ;;  %v2319_v49 = vld [vmem:[%s2617_s29 + $0x3a0] ss:$16 sps:$4 sm:$0xff]  }
  0x2b   : > { %1254 = vmatpush1.bf16.msra.mxu0 %v2288_v23  ;;  %v2320_v51 = vld [vmem:[%s2617_s29 + $0x184] ss:$16 sps:$4 sm:$0xff]   ;;  %v2324_v54 = vld [vmem:[%s2617_s29 + $0x180] ss:$16 sps:$4 sm:$0xff]  }
  0x2c   : > { %1295 = vmatpush1.bf16.msra.mxu1 %v2289_v24  ;;  %1255 = vmatprep.subr.bf16.mxu0 %v2290_v25  ;;  %v2322_v52 = vld [vmem:[%s2617_s29 + $0x384] ss:$16 sps:$4 sm:$0xff]   ;;  %v2325_v57 = vld [vmem:[%s2617_s29 + $0x380] ss:$16 sps:$4 sm:$0xff]   ;;  %v2360_v24 = vld [vmem:[%s2617_s29 + $0xc8] ss:$16 sps:$4 sm:$0xff]  }
  0x2d   : > { %1296 = vmatprep.subr.bf16.mxu1 %v2292_v26  ;;  %v245_v53 = vld [vmem:[%s2612_s25] sm:$0xff]  ;;  %v2368_v26 = vld [vmem:[%s2617_s29 + $0xac] ss:$16 sps:$4 sm:$0xff]  }
  0x2e   : > { %v256_v55 = vrot.slane %v245_v53, %v2667_v50  ;;  %v249_v56 = vcombine.high %v245_v53, %v245_v53  ;;  %v2326_v58 = vld [vmem:[%s2617_s29 + $0x164] ss:$16 sps:$4 sm:$0xff]   ;;  %v2330_v62 = vld [vmem:[%s2617_s29 + $0x160] ss:$16 sps:$4 sm:$0xff]   ;;  %v2401_v53 = vld [vmem:[%s2617_s29 + $0x1ec] ss:$16 sps:$4 sm:$0xff]  }
  0x2f   : > { %1256 = vmatpush1.bf16.msra.mxu0 %v2294_v27  ;;  %v2328_v59 = vld [vmem:[%s2617_s29 + $0x364] ss:$16 sps:$4 sm:$0xff]   ;;  %v2331_v1 = vld [vmem:[%s2617_s29 + $0x360] ss:$16 sps:$4 sm:$0xff]   ;;  %v2565_v27 = vmov 0  }
  0x30   : > { %1297 = vmatpush1.bf16.msra.mxu1 %v2295_v28  ;;  %1257 = vmatprep.subr.bf16.mxu0 %v2296_v29  ;;  %v264_v60 = vcombine.high %v256_v55, %v256_v55  ;;  %v263_v61 = vrot.slane %v249_v56, %v2667_v50  ;;  %v2332_v2 = vld [vmem:[%s2617_s29 + $0x144] ss:$16 sps:$4 sm:$0xff]   ;;  %v2336_v5 = vld [vmem:[%s2617_s29 + $0x140] ss:$16 sps:$4 sm:$0xff]   ;;  %v2697_v17 = vpack.c.bf16 %v256_v55, %v256_v55  ;;  %v2366_v29 = vld [vmem:[%s2617_s29 + $0xa8] ss:$16 sps:$4 sm:$0xff]  }
  0x31   : > { %1298 = vmatprep.subr.bf16.mxu1 %v2298_v30  ;;  %v2334_v3 = vld [vmem:[%s2617_s29 + $0x344] ss:$16 sps:$4 sm:$0xff]   ;;  %v2337_v6 = vld [vmem:[%s2617_s29 + $0x340] ss:$16 sps:$4 sm:$0xff]   ;;  %v2399_v56 = vld [vmem:[%s2617_s29 + $0x1e8] ss:$16 sps:$4 sm:$0xff]  }
  0x32   : > { %v279_v63 = vpack.c.bf16 %v264_v60, %v264_v60  ;;  %v265_v0 = vcombine.high %v263_v61, %v263_v61  ;;  %v2338_v7 = vld [vmem:[%s2617_s29 + $0x124] ss:$16 sps:$4 sm:$0xff]   ;;  %v2342_v9 = vld [vmem:[%s2617_s29 + $0x120] ss:$16 sps:$4 sm:$0xff]   ;;  %v2699_v18 = vpack.c.bf16 %v263_v61, %v263_v61  ;;  %v2405_v60 = vld [vmem:[%s2617_s29 + $0x1c8] ss:$16 sps:$4 sm:$0xff]  }
  0x33   : > { %1258 = vmatpush1.bf16.msra.mxu0 %v2300_v31  ;;  %v2340_v8 = vld [vmem:[%s2617_s29 + $0x324] ss:$16 sps:$4 sm:$0xff]   ;;  %v2343_v10 = vld [vmem:[%s2617_s29 + $0x320] ss:$16 sps:$4 sm:$0xff]   ;;  %v2374_v31 = vld [vmem:[%s2617_s29 + $0x8c] ss:$16 sps:$4 sm:$0xff]  }
  0x34   : > { %1299 = vmatpush1.bf16.msra.mxu1 %v2301_v32  ;;  %1259 = vmatprep.subr.bf16.mxu0 %v2302_v33  ;;  %v2682_v4 = vpack.c.bf16 %v265_v0, %v265_v0  ;;  %v2344_v11 = vld [vmem:[%s2617_s29 + $0x104] ss:$16 sps:$4 sm:$0xff]   ;;  %v2348_v13 = vld [vmem:[%s2617_s29 + $0x100] ss:$16 sps:$4 sm:$0xff]   ;;  %v2372_v33 = vld [vmem:[%s2617_s29 + $0x88] ss:$16 sps:$4 sm:$0xff]  }
  0x35   : > { %1300 = vmatprep.subr.bf16.mxu1 %v2304_v34  ;;  %1275 = vmatprep.mubr.bf16.mxu0 %v279_v63  ;;  %v2346_v12 = vld [vmem:[%s2617_s29 + $0x304] ss:$16 sps:$4 sm:$0xff]   ;;  %v2349_v14 = vld [vmem:[%s2617_s29 + $0x300] ss:$16 sps:$4 sm:$0xff]   ;;  %v2408_v61 = vld [vmem:[%s2617_s29 + $0x2c8] ss:$16 sps:$4 sm:$0xff]  }
  0x36   : > { %1316 = vmatprep.mubr.bf16.mxu1 %v2682_v4  ;;  %v2353_v15 = vld [vmem:[%s2617_s29 + $0x4e4] ss:$16 sps:$4 sm:$0xff]   ;;  %v2351_v19 = vld [vmem:[%s2617_s29 + $0x4e0] ss:$16 sps:$4 sm:$0xff]   ;;  %v2411_v0 = vld [vmem:[%s2617_s29 + $0x1a8] ss:$16 sps:$4 sm:$0xff]  }
  0x37   : > { %1260 = vmatpush2.bf16.msra.mxu0 %v2306_v35  ;;  %v2359_v21 = vld [vmem:[%s2617_s29 + $0x4c4] ss:$16 sps:$4 sm:$0xff]   ;;  %v2357_v23 = vld [vmem:[%s2617_s29 + $0x4c0] ss:$16 sps:$4 sm:$0xff]   ;;  %v2380_v35 = vld [vmem:[%s2617_s29 + $0x6c] ss:$16 sps:$4 sm:$0xff]  }
  0x38   : > { %1301 = vmatpush2.bf16.msra.mxu1 %v2307_v36  ;;  %1261 = vmatprep.subr.bf16.mxu0 %v2308_v40  ;;  %v2365_v25 = vld [vmem:[%s2617_s29 + $0x4a4] ss:$16 sps:$4 sm:$0xff]   ;;  %v2363_v28 = vld [vmem:[%s2617_s29 + $0x4a0] ss:$16 sps:$4 sm:$0xff]  }
  0x39   : > { %1302 = vmatprep.subr.bf16.mxu1 %v2310_v41  ;;  %v2371_v30 = vld [vmem:[%s2617_s29 + $0x484] ss:$16 sps:$4 sm:$0xff]   ;;  %v2369_v32 = vld [vmem:[%s2617_s29 + $0x480] ss:$16 sps:$4 sm:$0xff]   ;;  %v2384_v41 = vld [vmem:[%s2617_s29 + $0x48] ss:$16 sps:$4 sm:$0xff]  }
  0x3a   : > { %v2377_v34 = vld [vmem:[%s2617_s29 + $0x464] ss:$16 sps:$4 sm:$0xff]   ;;  %v2375_v36 = vld [vmem:[%s2617_s29 + $0x460] ss:$16 sps:$4 sm:$0xff]  }
  0x3b   : > { %1262 = vmatpush2.bf16.msra.mxu0 %v2312_v42  ;;  %v2383_v38 = vld [vmem:[%s2617_s29 + $0x444] ss:$16 sps:$4 sm:$0xff]   ;;  %v2381_v40 = vld [vmem:[%s2617_s29 + $0x440] ss:$16 sps:$4 sm:$0xff]  }
  0x3c   : > { %1303 = vmatpush2.bf16.msra.mxu1 %v2313_v45  ;;  %1263 = vmatprep.subr.bf16.mxu0 %v2314_v46  ;;  %v2389_v42 = vld [vmem:[%s2617_s29 + $0x424] ss:$16 sps:$4 sm:$0xff]   ;;  %v2387_v45 = vld [vmem:[%s2617_s29 + $0x420] ss:$16 sps:$4 sm:$0xff]   ;;  %v2390_v46 = vld [vmem:[%s2617_s29 + $0x28] ss:$16 sps:$4 sm:$0xff]  }
  0x3d   : > { %1304 = vmatprep.subr.bf16.mxu1 %v2316_v47  ;;  %v2395_v47 = vld [vmem:[%s2617_s29 + $0x404] ss:$16 sps:$4 sm:$0xff]  }
  0x3f   : > { %1264 = vmatpush2.bf16.msra.mxu0 %v2318_v48  ;;  %v2398_v48 = vld [vmem:[%s2617_s29 + $0xc] ss:$16 sps:$4 sm:$0xff]  }
  0x40   : > { %1305 = vmatpush2.bf16.msra.mxu1 %v2319_v49  ;;  %1265 = vmatprep.subr.bf16.mxu0 %v2320_v51  ;;  %v2393_v49 = vld [vmem:[%s2617_s29 + $0x400] ss:$16 sps:$4 sm:$0xff]   ;;  %v1992_v51 = vld.sshfl [vmem:[%s2612_s25 + $0x8] sm:$0x3 pattern:$0x76325410] }
  0x41   : > { %1306 = vmatprep.subr.bf16.mxu1 %v2322_v52  ;;  %v2396_v52 = vld [vmem:[%s2617_s29 + $0x8] ss:$16 sps:$4 sm:$0xff]   ;;  %v2737_v55 = vpack.c.bf16 %v1992_v51, %v1992_v51 }
  0x42   : > { %v2483_v51 = vld [vmem:[%s2617_s29 + $0x328] ss:$16 sps:$4 sm:$0xff]  }
  0x43   : > { %1266 = vmatpush2.bf16.msra.mxu0 %v2324_v54  ;;  %v2404_v54 = vld [vmem:[%s2617_s29 + $0x2ec] ss:$16 sps:$4 sm:$0xff]  }
  0x44   : > { %1307 = vmatpush2.bf16.msra.mxu1 %v2325_v57  ;;  %1267 = vmatprep.subr.bf16.mxu0 %v2326_v58  ;;  %v2402_v57 = vld [vmem:[%s2617_s29 + $0x2e8] ss:$16 sps:$4 sm:$0xff]   ;;  %v2407_v58 = vld [vmem:[%s2617_s29 + $0x1cc] ss:$16 sps:$4 sm:$0xff]  }
  0x45   : > { %1308 = vmatprep.subr.bf16.mxu1 %v2328_v59  ;;  %v2410_v59 = vld [vmem:[%s2617_s29 + $0x2cc] ss:$16 sps:$4 sm:$0xff]  }
  0x47   : > { %1268 = vmatpush2.bf16.msra.mxu0 %v2330_v62  ;;  %v2413_v62 = vld [vmem:[%s2617_s29 + $0x1ac] ss:$16 sps:$4 sm:$0xff]  }
  0x48   : > { %1309 = vmatpush2.bf16.msra.mxu1 %v2331_v1  ;;  %1269 = vmatprep.subr.bf16.mxu0 %v2332_v2  ;;  %v2414_v1 = vld [vmem:[%s2617_s29 + $0x2a8] ss:$16 sps:$4 sm:$0xff]   ;;  %v2419_v2 = vld [vmem:[%s2617_s29 + $0x18c] ss:$16 sps:$4 sm:$0xff]  }
  0x49   : > { %1310 = vmatprep.subr.bf16.mxu1 %v2334_v3  ;;  %v2422_v3 = vld [vmem:[%s2617_s29 + $0x28c] ss:$16 sps:$4 sm:$0xff]  }
  0x4b   : > { %1270 = vmatpush2.bf16.msra.mxu0 %v2336_v5  ;;  %v2417_v5 = vld [vmem:[%s2617_s29 + $0x188] ss:$16 sps:$4 sm:$0xff]  }
  0x4c   : > { %1311 = vmatpush2.bf16.msra.mxu1 %v2337_v6  ;;  %1271 = vmatprep.subr.bf16.mxu0 %v2338_v7  ;;  %v2420_v6 = vld [vmem:[%s2617_s29 + $0x288] ss:$16 sps:$4 sm:$0xff]   ;;  %v2428_v7 = vld [vmem:[%s2617_s29 + $0x26c] ss:$16 sps:$4 sm:$0xff]  }
  0x4d   : > { %1312 = vmatprep.subr.bf16.mxu1 %v2340_v8  ;;  %v2423_v8 = vld [vmem:[%s2617_s29 + $0x168] ss:$16 sps:$4 sm:$0xff]  }
  0x4f   : > { %1272 = vmatpush2.bf16.msra.mxu0 %v2342_v9  ;;  %v2426_v9 = vld [vmem:[%s2617_s29 + $0x268] ss:$16 sps:$4 sm:$0xff]  }
  0x50   : > { %1313 = vmatpush2.bf16.msra.mxu1 %v2343_v10  ;;  %1273 = vmatprep.subr.bf16.mxu0 %v2344_v11  ;;  %v2431_v10 = vld [vmem:[%s2617_s29 + $0x14c] ss:$16 sps:$4 sm:$0xff]  }
  0x51   : > { %1314 = vmatprep.subr.bf16.mxu1 %v2346_v12  ;;  %v2434_v11 = vld [vmem:[%s2617_s29 + $0x24c] ss:$16 sps:$4 sm:$0xff]   ;;  %v2429_v12 = vld [vmem:[%s2617_s29 + $0x148] ss:$16 sps:$4 sm:$0xff]  }
  0x53   : > { %1274 = vmatpush2.bf16.msra.mxu0 %v2348_v13  ;;  %v2432_v13 = vld [vmem:[%s2617_s29 + $0x248] ss:$16 sps:$4 sm:$0xff]  }
  0x54   : > { %1315 = vmatpush2.bf16.msra.mxu1 %v2349_v14  ;;  %1325 = vmatprep.subr.bf16.mxu0 %v2353_v15  ;;  %v2437_v14 = vld [vmem:[%s2617_s29 + $0x12c] ss:$16 sps:$4 sm:$0xff]  }
  0x55   : > { %1366 = vmatprep.subr.bf16.mxu1 %v2356_v16  ;;  %v2440_v15 = vld [vmem:[%s2617_s29 + $0x22c] ss:$16 sps:$4 sm:$0xff]   ;;  %v2435_v16 = vld [vmem:[%s2617_s29 + $0x128] ss:$16 sps:$4 sm:$0xff]  }
  0x56   : > { %1276 = vmatmul.mubr.bf16.vlgmr.msra.gmra.mxu0 %v2697_v17 }
  0x57   : > { %1317 = vmatmul.mubr.bf16.vlgmr.msra.gmra.mxu1 %v2699_v18  ;;  %1326 = vmatpush1.bf16.msra.mxu0 %v2351_v19  ;;  %v2438_v19 = vld [vmem:[%s2617_s29 + $0x228] ss:$16 sps:$4 sm:$0xff]  }
  0x58   : > { %1367 = vmatpush1.bf16.msra.mxu1 %v2354_v20  ;;  %1327 = vmatprep.subr.bf16.mxu0 %v2359_v21  ;;  %v2443_v20 = vld [vmem:[%s2617_s29 + $0x10c] ss:$16 sps:$4 sm:$0xff]  }
  0x59   : > { %1368 = vmatprep.subr.bf16.mxu1 %v2362_v22  ;;  %1357 = vmatprep.mubr.bf16.mxu0 %v2565_v27  ;;  %v2446_v21 = vld [vmem:[%s2617_s29 + $0x20c] ss:$16 sps:$4 sm:$0xff]   ;;  %v2441_v22 = vld [vmem:[%s2617_s29 + $0x108] ss:$16 sps:$4 sm:$0xff]  }
  0x5a   : > { %1398 = vmatprep.mubr.bf16.mxu1 %v279_v63  ;;  %v2416_v63 = vld [vmem:[%s2617_s29 + $0x2ac] ss:$16 sps:$4 sm:$0xff]  }
  0x5b   : > { %1328 = vmatpush1.bf16.msra.mxu0 %v2357_v23  ;;  %v2444_v23 = vld [vmem:[%s2617_s29 + $0x208] ss:$16 sps:$4 sm:$0xff]  }
  0x5c   : > { %1369 = vmatpush1.bf16.msra.mxu1 %v2360_v24  ;;  %1329 = vmatprep.subr.bf16.mxu0 %v2365_v25  ;;  %v2449_v24 = vld [vmem:[%s2617_s29 + $0x3ec] ss:$16 sps:$4 sm:$0xff]  }
  0x5d   : > { %1370 = vmatprep.subr.bf16.mxu1 %v2368_v26  ;;  %v2452_v25 = vld [vmem:[%s2617_s29 + $0x4ec] ss:$16 sps:$4 sm:$0xff]   ;;  %v2447_v26 = vld [vmem:[%s2617_s29 + $0x3e8] ss:$16 sps:$4 sm:$0xff]  }
  0x5f   : > { %1330 = vmatpush1.bf16.msra.mxu0 %v2363_v28  ;;  %v2450_v28 = vld [vmem:[%s2617_s29 + $0x4e8] ss:$16 sps:$4 sm:$0xff]  }
  0x60   : > { %1371 = vmatpush1.bf16.msra.mxu1 %v2366_v29  ;;  %1331 = vmatprep.subr.bf16.mxu0 %v2371_v30  ;;  %v2455_v29 = vld [vmem:[%s2617_s29 + $0x3cc] ss:$16 sps:$4 sm:$0xff]  }
  0x61   : > { %1372 = vmatprep.subr.bf16.mxu1 %v2374_v31  ;;  %v2458_v30 = vld [vmem:[%s2617_s29 + $0x4cc] ss:$16 sps:$4 sm:$0xff]   ;;  %v2453_v31 = vld [vmem:[%s2617_s29 + $0x3c8] ss:$16 sps:$4 sm:$0xff]  }
  0x63   : > { %1332 = vmatpush1.bf16.msra.mxu0 %v2369_v32  ;;  %v2456_v32 = vld [vmem:[%s2617_s29 + $0x4c8] ss:$16 sps:$4 sm:$0xff]  }
  0x64   : > { %1373 = vmatpush1.bf16.msra.mxu1 %v2372_v33  ;;  %1333 = vmatprep.subr.bf16.mxu0 %v2377_v34  ;;  %v2461_v33 = vld [vmem:[%s2617_s29 + $0x3ac] ss:$16 sps:$4 sm:$0xff]  }
  0x65   : > { %1374 = vmatprep.subr.bf16.mxu1 %v2380_v35  ;;  %v2464_v34 = vld [vmem:[%s2617_s29 + $0x4ac] ss:$16 sps:$4 sm:$0xff]   ;;  %v2459_v35 = vld [vmem:[%s2617_s29 + $0x3a8] ss:$16 sps:$4 sm:$0xff]  }
  0x67   : > { %1334 = vmatpush1.bf16.msra.mxu0 %v2375_v36  ;;  %v2467_v36 = vld [vmem:[%s2617_s29 + $0x38c] ss:$16 sps:$4 sm:$0xff]  }
  0x68   : > { %1375 = vmatpush1.bf16.msra.mxu1 %v2378_v37  ;;  %1335 = vmatprep.subr.bf16.mxu0 %v2383_v38  ;;  %v2470_v37 = vld [vmem:[%s2617_s29 + $0x48c] ss:$16 sps:$4 sm:$0xff]   ;;  %v2465_v38 = vld [vmem:[%s2617_s29 + $0x388] ss:$16 sps:$4 sm:$0xff]  }
  0x69   : > { %1376 = vmatprep.subr.bf16.mxu1 %v2386_v39  ;;  %v2468_v39 = vld [vmem:[%s2617_s29 + $0x488] ss:$16 sps:$4 sm:$0xff]  }
  0x6b   : > { %1336 = vmatpush1.bf16.msra.mxu0 %v2381_v40  ;;  %v2476_v40 = vld [vmem:[%s2617_s29 + $0x46c] ss:$16 sps:$4 sm:$0xff]  }
  0x6c   : > { %1377 = vmatpush1.bf16.msra.mxu1 %v2384_v41  ;;  %1337 = vmatprep.subr.bf16.mxu0 %v2389_v42  ;;  %v2471_v41 = vld [vmem:[%s2617_s29 + $0x368] ss:$16 sps:$4 sm:$0xff]  }
  0x6d   : > { %1378 = vmatprep.subr.bf16.mxu1 %v2392_v43  ;;  %v2474_v42 = vld [vmem:[%s2617_s29 + $0x468] ss:$16 sps:$4 sm:$0xff]   ;;  %v2479_v43 = vld [vmem:[%s2617_s29 + $0x34c] ss:$16 sps:$4 sm:$0xff]  }
  0x6f   : > { %1338 = vmatpush1.bf16.msra.mxu0 %v2387_v45  ;;  %v2482_v45 = vld [vmem:[%s2617_s29 + $0x44c] ss:$16 sps:$4 sm:$0xff]  }
  0x70   : > { %1379 = vmatpush1.bf16.msra.mxu1 %v2390_v46  ;;  %1339 = vmatprep.subr.bf16.mxu0 %v2395_v47  ;;  %v2477_v46 = vld [vmem:[%s2617_s29 + $0x348] ss:$16 sps:$4 sm:$0xff]  }
  0x71   : > { %1380 = vmatprep.subr.bf16.mxu1 %v2398_v48  ;;  %v2480_v47 = vld [vmem:[%s2617_s29 + $0x448] ss:$16 sps:$4 sm:$0xff]   ;;  %v2485_v48 = vld [vmem:[%s2617_s29 + $0x32c] ss:$16 sps:$4 sm:$0xff]  }
  0x73   : > { %1340 = vmatpush1.bf16.msra.mxu0 %v2393_v49  ;;  %v2488_v49 = vld [vmem:[%s2617_s29 + $0x42c] ss:$16 sps:$4 sm:$0xff]  }
  0x74   : > { %1381 = vmatpush1.bf16.msra.mxu1 %v2396_v52  ;;  %1407 = vmatprep.subr.bf16.mxu0 %v2404_v54  ;;  %v2486_v52 = vld [vmem:[%s2617_s29 + $0x428] ss:$16 sps:$4 sm:$0xff]   ;;  %v2494_v54 = vld [vmem:[%s2617_s29 + $0x40c] ss:$16 sps:$4 sm:$0xff]  }
  0x75   : > { %1382 = vmatprep.subr.bf16.mxu1 %v2401_v53  ;;  %v2491_v53 = vld [vmem:[%s2617_s29 + $0x30c] ss:$16 sps:$4 sm:$0xff]  }
  0x76   : > { %1358 = vmatmul.mubr.bf16.vlgmr.msra.gmra.mxu0 %v2737_v55 }
  0x77   : > { %1408 = vmatpush1.bf16.msra.mxu0 %v2402_v57  ;;  %1439 = vmatprep.mubr.bf16.mxu0 %v2682_v4  ;;  %v2425_v4 = vld [vmem:[%s2617_s29 + $0x16c] ss:$16 sps:$4 sm:$0xff]   ;;  %v2492_v57 = vld [vmem:[%s2617_s29 + $0x408] ss:$16 sps:$4 sm:$0xff]  }
  0x78   : > { %1383 = vmatpush2.bf16.msra.mxu1 %v2399_v56  ;;  %1409 = vmatprep.subr.bf16.mxu0 %v2410_v59  ;;  %v2489_v56 = vld [vmem:[%s2617_s29 + $0x308] ss:$16 sps:$4 sm:$0xff]  }
  0x79   : > { %1384 = vmatprep.subr.bf16.mxu1 %v2407_v58 }
  0x7b   : > { %1410 = vmatpush1.bf16.msra.mxu0 %v2408_v61 }
  0x7c   : > { %1385 = vmatpush2.bf16.msra.mxu1 %v2405_v60  ;;  %1411 = vmatprep.subr.bf16.mxu0 %v2416_v63 }
  0x7d   : > { %1386 = vmatprep.subr.bf16.mxu1 %v2413_v62 }
  0x7f   : > { %1412 = vmatpush1.bf16.msra.mxu0 %v2414_v1 }
  0x80   : > { %1387 = vmatpush2.bf16.msra.mxu1 %v2411_v0  ;;  %1413 = vmatprep.subr.bf16.mxu0 %v2422_v3 }
  0x81   : > { %1388 = vmatprep.subr.bf16.mxu1 %v2419_v2 }
  0x83   : > { %1414 = vmatpush1.bf16.msra.mxu0 %v2420_v6 }
  0x84   : > { %1389 = vmatpush2.bf16.msra.mxu1 %v2417_v5  ;;  %1415 = vmatprep.subr.bf16.mxu0 %v2428_v7 }
  0x85   : > { %1390 = vmatprep.subr.bf16.mxu1 %v2425_v4 }
  0x87   : > { %1416 = vmatpush1.bf16.msra.mxu0 %v2426_v9 }
  0x88   : > { %1391 = vmatpush2.bf16.msra.mxu1 %v2423_v8  ;;  %1417 = vmatprep.subr.bf16.mxu0 %v2434_v11 }
  0x89   : > { %1392 = vmatprep.subr.bf16.mxu1 %v2431_v10 }
  0x8b   : > { %1418 = vmatpush1.bf16.msra.mxu0 %v2432_v13 }
  0x8c   : > { %1393 = vmatpush2.bf16.msra.mxu1 %v2429_v12  ;;  %1419 = vmatprep.subr.bf16.mxu0 %v2440_v15 }
  0x8d   : > { %1394 = vmatprep.subr.bf16.mxu1 %v2437_v14 }
  0x8f   : > { %1420 = vmatpush1.bf16.msra.mxu0 %v2438_v19 }
  0x90   : > { %1395 = vmatpush2.bf16.msra.mxu1 %v2435_v16  ;;  %1421 = vmatprep.subr.bf16.mxu0 %v2446_v21 }
  0x91   : > { %1396 = vmatprep.subr.bf16.mxu1 %v2443_v20 }
  0x93   : > { %1422 = vmatpush1.bf16.msra.mxu0 %v2444_v23 }
  0x94   : > { %1397 = vmatpush2.bf16.msra.mxu1 %v2441_v22  ;;  %1423 = vmatprep.subr.bf16.mxu0 %v2449_v24 }
  0x95   : > { %1448 = vmatprep.subr.bf16.mxu1 %v2452_v25 }
  0x97   : > { %1399 = vmatmul.mubr.bf16.vlgmr.msra.gmra.mxu1 %v2697_v17  ;;  %1424 = vmatpush2.bf16.msra.mxu0 %v2447_v26  ;;  %v2462_v17 = vld [vmem:[%s2617_s29 + $0x4a8] ss:$16 sps:$4 sm:$0xff]  }
  0x98   : > { %1449 = vmatpush1.bf16.msra.mxu1 %v2450_v28  ;;  %1425 = vmatprep.subr.bf16.mxu0 %v2455_v29 }
  0x99   : > { %1450 = vmatprep.subr.bf16.mxu1 %v2458_v30  ;;  %1480 = vmatprep.mubr.bf16.mxu1 %v2565_v27  ;;  %v2473_v27 = vld [vmem:[%s2617_s29 + $0x36c] ss:$16 sps:$4 sm:$0xff]  }
  0x9b   : > { %1426 = vmatpush2.bf16.msra.mxu0 %v2453_v31  ;;  %v244_v31 = vld [vmem:[#allocation2] sm:$0xff] }
  0x9c   : > { %1451 = vmatpush1.bf16.msra.mxu1 %v2456_v32  ;;  %1427 = vmatprep.subr.bf16.mxu0 %v2461_v33 }
  0x9d   : > { %1452 = vmatprep.subr.bf16.mxu1 %v2464_v34 }
  0x9f   : > { %1428 = vmatpush2.bf16.msra.mxu0 %v2459_v35 }
  0xa0   : > { %1453 = vmatpush1.bf16.msra.mxu1 %v2462_v17  ;;  %1429 = vmatprep.subr.bf16.mxu0 %v2467_v36 }
  0xa1   : > { %1454 = vmatprep.subr.bf16.mxu1 %v2470_v37 }
  0xa3   : > { %1430 = vmatpush2.bf16.msra.mxu0 %v2465_v38 }
  0xa4   : > { %1455 = vmatpush1.bf16.msra.mxu1 %v2468_v39  ;;  %1431 = vmatprep.subr.bf16.mxu0 %v2473_v27 }
  0xa5   : > { %1456 = vmatprep.subr.bf16.mxu1 %v2476_v40 }
  0xa7   : > { %1432 = vmatpush2.bf16.msra.mxu0 %v2471_v41 }
  0xa8   : > { %1457 = vmatpush1.bf16.msra.mxu1 %v2474_v42  ;;  %1433 = vmatprep.subr.bf16.mxu0 %v2479_v43 }
  0xa9   : > { %1458 = vmatprep.subr.bf16.mxu1 %v2482_v45 }
  0xab   : > { %1434 = vmatpush2.bf16.msra.mxu0 %v2477_v46 }
  0xac   : > { %1459 = vmatpush1.bf16.msra.mxu1 %v2480_v47  ;;  %1435 = vmatprep.subr.bf16.mxu0 %v2485_v48 }
  0xad   : > { %1460 = vmatprep.subr.bf16.mxu1 %v2488_v49 }
  0xaf   : > { %1436 = vmatpush2.bf16.msra.mxu0 %v2483_v51 }
  0xb0   : > { %1461 = vmatpush1.bf16.msra.mxu1 %v2486_v52  ;;  %1437 = vmatprep.subr.bf16.mxu0 %v2491_v53 }
  0xb1   : > { %1462 = vmatprep.subr.bf16.mxu1 %v2494_v54 }
  0xb3   : > { %1438 = vmatpush2.bf16.msra.mxu0 %v2489_v56 }
  0xb4   : > { %1463 = vmatpush1.bf16.msra.mxu1 %v2492_v57 }
  0xb6   : > { %1440 = vmatmul.mubr.bf16.vlgmr.msra.gmra.mxu0 %v2699_v18 }
  0xb7   : > { %1481 = vmatmul.mubr.bf16.vlgmr.msra.gmra.mxu1 %v2737_v55 }
 0x116   : > { %v1277_v58 = vpop.f32.mrf.mxu0 }
 0x117   : > { %v1318_v59 = vpop.f32.mrf.mxu1 }
 0x118   : > { %v1319_v60 = vadd.f32 %v1318_v59, %v1277_v58  ;;  %v1279_v61 = vpop.f32.mrf.mxu0 }
 0x119   : > { %v1320_v62 = vpop.f32.mrf.mxu1 }
 0x11a   : > { %v1321_v63 = vadd.f32 %v1320_v62, %v1279_v61  ;;  %v1281_v0 = vpop.f32.mrf.mxu0 }
 0x11b   : > { %v1322_v1 = vpop.f32.mrf.mxu1 }
 0x11c   : > { %v1282_v2 = vpop.f32.mrf.mxu0 }
 0x11d   : > { %v1323_v3 = vpop.f32.mrf.mxu1 }
 0x136   : > { %v1359_v5 = vpop.f32.mrf.mxu0 }
 0x137   : > { %v1360_v6 = vadd.f32 %v1359_v5, %v1319_v60 }
 0x138   : > { %v1361_v4 = vpop.f32.mrf.mxu0 }
 0x139   : > { %v1362_v7 = vadd.f32 %v1361_v4, %v1321_v63 }
 0x13a   : > { %v1363_v8 = vpop.f32.mrf.mxu0 }
 0x13b   : > { %v1493_v9 = vcombine.low %v1360_v6, %v1362_v7 }
 0x13c   : > { %v1364_v10 = vpop.f32.mrf.mxu0 }
 0x13d   : > { %v1501_v29 = vrot.slane %v1493_v9, %v2667_v50 }
 0x157   : > { %v1400_v18 = vpop.f32.mrf.mxu1 }
 0x159   : > { %v1402_v11 = vpop.f32.mrf.mxu1 }
 0x15b   : > { %v1404_v55 = vpop.f32.mrf.mxu1 }
 0x15d   : > { %v1405_v12 = vpop.f32.mrf.mxu1 }
 0x176   : > { %v1441_v13 = vpop.f32.mrf.mxu0 }
 0x177   : > { %v1482_v14 = vpop.f32.mrf.mxu1  ;;  %v1442_v15 = vadd.f32 %v1441_v13, %v1400_v18 }
 0x178   : > { %v1443_v16 = vpop.f32.mrf.mxu0 }
 0x179   : > { %v1484_v19 = vpop.f32.mrf.mxu1  ;;  %v1444_v20 = vadd.f32 %v1443_v16, %v1402_v11  ;;  %v1483_v23 = vadd.f32 %v1482_v14, %v1442_v15 }
 0x17a   : > { %v1445_v21 = vpop.f32.mrf.mxu0 }
 0x17b   : > { %v1486_v22 = vpop.f32.mrf.mxu1  ;;  %v1485_v24 = vadd.f32 %v1484_v19, %v1444_v20 }
 0x17c   : > { %v1446_v25 = vpop.f32.mrf.mxu0 }
 0x17d   : > { %v1487_v26 = vpop.f32.mrf.mxu1  ;;  %v1494_v28 = vcombine.low %v1483_v23, %v1485_v24 }
 0x17f   : > { %v1508_v30 = vrot.slane %v1494_v28, %v2667_v50 }
 0x181   : > { %v1509_v32 = vcombine.low %v1501_v29, %v1508_v30  ;;  %1516 = sbr.rel (%p2153_p6) target bundleno = 626 (0x272), region = 48 }
 0x183   : > { %v1511_v33 = vadd.f32 %v1509_v32, %v244_v31 }
 0x185   : > { %1512 = vst [vmem:[#allocation2] sm:$0xff] %v1511_v33 }
 0x186   : > { %v2495_v34 = vld [vmem:[%s2938_s3 + $0x78] sm:$0xff]   ;;  %v2499_v37 = vld [vmem:[%s2938_s3 + $0x70] sm:$0xff]   ;;  %v2503_v40 = vld [vmem:[%s2938_s3 + $0x68] sm:$0xff]   ;;  %v1522_v62 = vsub.s32 0, %v2659_v44  ;;  %v1526_v0 = vsub.s32 1, %v2659_v44  ;;  %v1530_v2 = vsub.s32 2, %v2659_v44 }
 0x187   : > { %v2496_v35 = vld [vmem:[%s2938_s3 + $0xf8] sm:$0xff]   ;;  %2192 = vmatprep.subr.bf16.mxu0 %v2495_v34  ;;  %v2500_v38 = vld [vmem:[%s2938_s3 + $0xf0] sm:$0xff]   ;;  %v2504_v41 = vld [vmem:[%s2938_s3 + $0xe8] sm:$0xff]   ;;  %v1534_v5 = vsub.s32 3, %v2659_v44 }
 0x188   : > { %v2497_v17 = vld [vmem:[%s2938_s3 + $0x38] sm:$0xff]   ;;  %2214 = vmatprep.subr.bf16.mxu1 %v2496_v35  ;;  %v2501_v39 = vld [vmem:[%s2938_s3 + $0x30] sm:$0xff]   ;;  %v2505_v42 = vld [vmem:[%s2938_s3 + $0x28] sm:$0xff]  }
 0x189   : > { %v2498_v36 = vld [vmem:[%s2938_s3 + $0xb8] sm:$0xff]   ;;  %2193 = vmatpush3.bf16.msra.mxu0 %v2497_v17  ;;  %v2502_v27 = vld [vmem:[%s2938_s3 + $0xb0] sm:$0xff]   ;;  %v2506_v43 = vld [vmem:[%s2938_s3 + $0xa8] sm:$0xff]  }
 0x18a   : > { %2215 = vmatpush3.bf16.msra.mxu1 %v2498_v36  ;;  %2194 = vmatprep.subr.bf16.mxu0 %v2499_v37  ;;  %v2507_v45 = vld [vmem:[%s2938_s3 + $0x60] sm:$0xff]   ;;  %v2511_v49 = vld [vmem:[%s2938_s3 + $0x58] sm:$0xff]   ;;  %v2515_v54 = vld [vmem:[%s2938_s3 + $0x50] sm:$0xff]  }
 0x18b   : > { %2216 = vmatprep.subr.bf16.mxu1 %v2500_v38  ;;  %v2508_v46 = vld [vmem:[%s2938_s3 + $0xe0] sm:$0xff]   ;;  %v2512_v51 = vld [vmem:[%s2938_s3 + $0xd8] sm:$0xff]   ;;  %v2516_v56 = vld [vmem:[%s2938_s3 + $0xd0] sm:$0xff]  }
 0x18c   : > { %v2509_v47 = vld [vmem:[%s2938_s3 + $0x20] sm:$0xff]   ;;  %v2513_v52 = vld [vmem:[%s2938_s3 + $0x18] sm:$0xff]   ;;  %v2517_v57 = vld [vmem:[%s2938_s3 + $0x10] sm:$0xff]  }
 0x18d   : > { %2195 = vmatpush3.bf16.msra.mxu0 %v2501_v39  ;;  %v2510_v48 = vld [vmem:[%s2938_s3 + $0xa0] sm:$0xff]   ;;  %v2514_v53 = vld [vmem:[%s2938_s3 + $0x98] sm:$0xff]   ;;  %v2518_v58 = vld [vmem:[%s2938_s3 + $0x90] sm:$0xff]  }
 0x18e   : > { %2217 = vmatpush3.bf16.msra.mxu1 %v2502_v27  ;;  %2196 = vmatprep.subr.bf16.mxu0 %v2503_v40  ;;  %v2519_v59 = vld [vmem:[%s2938_s3 + $0x48] sm:$0xff]   ;;  %v2523_v1 = vld [vmem:[%s2938_s3 + $0x40] sm:$0xff]  }
 0x18f   : > { %2218 = vmatprep.subr.bf16.mxu1 %v2504_v41  ;;  %v2520_v60 = vld [vmem:[%s2938_s3 + $0xc8] sm:$0xff]   ;;  %v2524_v3 = vld [vmem:[%s2938_s3 + $0xc0] sm:$0xff]  }
 0x190   : > { %v2521_v61 = vld [vmem:[%s2938_s3 + $0x8] sm:$0xff]   ;;  %v2525_v6 = vld [vmem:[%s2938_s3] sm:$0xff]  }
 0x191   : > { %2197 = vmatpush3.bf16.msra.mxu0 %v2505_v42  ;;  %v2522_v63 = vld [vmem:[%s2938_s3 + $0x88] sm:$0xff]   ;;  %v2526_v4 = vld [vmem:[%s2938_s3 + $0x80] sm:$0xff]  }
 0x192   : > { %2219 = vmatpush3.bf16.msra.mxu1 %v2506_v43  ;;  %2198 = vmatprep.subr.bf16.mxu0 %v2507_v45  ;;  %v1518_v7 = vld [vmem:[%s2937_s2] sm:$0xf] }
 0x193   : > { %2220 = vmatprep.subr.bf16.mxu1 %v2508_v46  ;;  %v1523_v8 = vrot.slane %v1518_v7, %v1522_v62  ;;  %v1527_v9 = vrot.slane %v1518_v7, %v1526_v0  ;;  %v1531_v10 = vrot.slane %v1518_v7, %v1530_v2  ;;  %v1535_v44 = vrot.slane %v1518_v7, %v1534_v5  ;;  %v1517_v13 = vld [vmem:[#allocation2] sm:$0xff] }
 0x194   : > { %v2154_v31 = vld [vmem:[%s2939_s4] ss:$0 sm:$0xff] }
 0x195   : > { %2199 = vmatpush3.bf16.msra.mxu0 %v2509_v47  ;;  %v1536_v18 = vcombine.low %v1523_v8, %v1527_v9  ;;  %v1537_v11 = vcombine.low %v1531_v10, %v1535_v44 }
 0x196   : > { %2221 = vmatpush3.bf16.msra.mxu1 %v2510_v48  ;;  %2200 = vmatprep.subr.bf16.mxu0 %v2511_v49 }
 0x197   : > { %2222 = vmatprep.subr.bf16.mxu1 %v2512_v51  ;;  %v1544_v55 = vrot.slane %v1536_v18, %v2667_v50  ;;  %v1551_v12 = vrot.slane %v1537_v11, %v2667_v50 }
 0x199   : > { %2201 = vmatpush3.bf16.msra.mxu0 %v2513_v52  ;;  %v1552_v14 = vcombine.low %v1544_v55, %v1551_v12 }
 0x19a   : > { %2223 = vmatpush3.bf16.msra.mxu1 %v2514_v53  ;;  %2202 = vmatprep.subr.bf16.mxu0 %v2515_v54 }
 0x19b   : > { %2224 = vmatprep.subr.bf16.mxu1 %v2516_v56  ;;  %v1554_v15 = vadd.f32 %v1552_v14, %v1517_v13 }
 0x19d   : > { %2203 = vmatpush3.bf16.msra.mxu0 %v2517_v57  ;;  %v1555_v16 = vmax.f32 %v1554_v15, 0.0 }
 0x19e   : > { %2225 = vmatpush3.bf16.msra.mxu1 %v2518_v58  ;;  %2204 = vmatprep.subr.bf16.mxu0 %v2519_v59 }
 0x19f   : > { %2226 = vmatprep.subr.bf16.mxu1 %v2520_v60  ;;  %v1564_v19 = vrot.slane %v1555_v16, %v2667_v50  ;;  %v1557_v20 = vcombine.high %v1555_v16, %v1555_v16 }
 0x1a1   : > { %2205 = vmatpush3.bf16.msra.mxu0 %v2521_v61  ;;  %v1572_v21 = vcombine.high %v1564_v19, %v1564_v19  ;;  %v1571_v22 = vrot.slane %v1557_v20, %v2667_v50  ;;  %v1578_v23 = vpack.c.bf16 %v1564_v19, %v1564_v19 }
 0x1a2   : > { %2227 = vmatpush3.bf16.msra.mxu1 %v2522_v63  ;;  %2206 = vmatprep.subr.bf16.mxu0 %v2523_v1 }
 0x1a3   : > { %2228 = vmatprep.subr.bf16.mxu1 %v2524_v3  ;;  %v1579_v24 = vpack.c.bf16 %v1572_v21, %v1572_v21  ;;  %v1573_v25 = vcombine.high %v1571_v22, %v1571_v22  ;;  %v1580_v26 = vpack.c.bf16 %v1571_v22, %v1571_v22 }
 0x1a5   : > { %2207 = vmatpush3.bf16.msra.mxu0 %v2525_v6  ;;  %1877 = vmatprep.mubr.bf16.mxu0 %v1579_v24  ;;  %v1581_v28 = vpack.c.bf16 %v1573_v25, %v1573_v25 }
 0x1a6   : > { %2229 = vmatpush3.bf16.msra.mxu1 %v2526_v4 }
 0x1a7   : > { %1917 = vmatprep.mubr.bf16.mxu1 %v1581_v28 }
 0x1a8   : > { %1878 = vmatmul.mubr.bf16.vlgmr.msra.gmra.mxu0 %v1578_v23 }
 0x1a9   : > { %1918 = vmatmul.mubr.bf16.vlgmr.msra.gmra.mxu1 %v1580_v26 }
 0x268   : > { %v2208_v29 = vpop.f32.mrf.mxu0 }
 0x269   : > { %v2230_v30 = vpop.f32.mrf.mxu1 }
 0x26a   : > { %v2209_v32 = vpop.f32.mrf.mxu0 }
 0x26b   : > { %v2210_v33 = vadd.f32 %v2209_v32, %v2208_v29  ;;  %v2231_v34 = vpop.f32.mrf.mxu1 }
 0x26c   : > { %v2211_v35 = vpop.f32.mrf.mxu0  ;;  %v2232_v17 = vadd.f32 %v2231_v34, %v2230_v30 }
 0x26d   : > { %v1880_v50 = vadd.f32 %v2210_v33, %v2154_v31  ;;  %v2233_v36 = vpop.f32.mrf.mxu1 }
 0x26e   : > { %v2212_v37 = vpop.f32.mrf.mxu0 }
 0x26f   : > { %v1920_v38 = vadd.f32 %v2232_v17, %v1880_v50  ;;  %v2234_v39 = vpop.f32.mrf.mxu1 }
 0x271   : > { %1925 = vst [vmem:[#allocation3] sm:$0x3] %v1920_v38 }
 0x272 PF: > { %p2240_p7 = scmp.eq.s32.totalorder %s2603_s19, 4  ;;  %s2566_s29 = smov [#allocation3]  }
 0x273   : > { %s1933_s30 = sshll.u32 %s2566_s29, 4  ;;  %s1934_s30 = int_to_ptr.vmem [resolvable:$true] %s1933_s30 }
 0x274   : > { %s2527_s6 = scalar_lea.vmem %s1934_s30, 32  ;;  %p2534_p11 = scmp.lt.s32.totalorder %s1934_s30, %s1934_s30 }
 0x275   : > { %p2528_p8 = scmp.ne.s32.totalorder %s1934_s30, %s2527_s6  ;;  %p2535_p12 = scmp.lt.s32.totalorder %s2527_s6, %s2527_s6 }
 0x277   : > { %p2529_p9 = pnand %p2528_p8, %p2240_p7  ;;  %p2536_p13 = por %p2535_p12, %p2534_p11 }
 0x279   : > { %p2530_p10 = pneg %p2529_p9 }
 0x27b   : > { %p2537_p0 = pnand %p2536_p13, %p2530_p10 }
 0x27d   : > { %2540 = shalt.err (!%p2537_p0)
}
 0x27e   : > { %2237 = dma.vmem_to_hbm [thread:$0]  (%p2240_p7), %s1934_s30, 32, %s2940_s5, [#allocation4]  }
 0x27f   : > { %2556 = dma.done.wait (%p2240_p7), [#allocation4], 32  }
 0x280   : > { %2558 = vsyncadd (%p2240_p7), [#allocation4], 4294967264 }
 0x281 PF: > { %s16_s18 = sadd.s32 1, %s2561_s18  }
 0x282   : > { %p13_p1 = scmp.ge.s32.totalorder %s16_s18, 7  }
 0x284   :  { %15 = sbr.rel (!%p13_p1) target bundleno = 1 (0x1), region = 78 }
 0x289   :  { %1946 = vsyncpa [#allocation4], 1 }
 0x28a   :  { %1948 = vsyncpa [#allocation4 + $0x1], 1 }

</bundles_post_ra>
